<compile_context>
chip_gen: v7x
topology: tpu7x:2x2x1
jax: 0.10.0
libtpu: 0.0.40
codegen_flags: <defaults>
</compile_context>

<pallas_src>
import functools

import jax
import jax.numpy as jnp
from jax import lax
from jax.experimental import pallas as pl
from jax.experimental.pallas import tpu as pltpu


_LANE = 128
_VMEM_MIN = 32 << 20   # never below the default scoped limit
_VMEM_MAX = 40 << 20   # headroom under v7x's 64 MiB physical VMEM


def _round_up(v, m):
    return ((v + m - 1) // m) * m


# ------------------------------ gate-wise padding ---------------------------- #

def _pad_gate_cols(w_t, H, Hp):
    """(in, 3H) -> (in, 3Hp), keeping the [r|z|n] gate blocks lane-aligned at multiples of Hp."""
    if Hp == H:
        return w_t
    parts = [jnp.pad(w_t[:, g * H:(g + 1) * H], ((0, 0), (0, Hp - H))) for g in range(3)]
    return jnp.concatenate(parts, axis=1)


def _pad_gate_vec(b, H, Hp):
    if Hp == H:
        return b
    parts = [jnp.pad(b[g * H:(g + 1) * H], (0, Hp - H)) for g in range(3)]
    return jnp.concatenate(parts)


# ----------------------------- parameter packing ----------------------------- #

def _pack_layer(layer_p, H, Hp, in_splits, in_splits_padded, compute_dtype):
    """Pack one layer's fwd/bwd weights into lane-aligned, gate-padded stacks.

    in_splits        : original per-stack input widths (e.g. [F_in] or [H, H]).
    in_splits_padded : padded widths matching the activation arrays ([F_in] or [Hp, Hp]).
    Returns:
      w_ih  : (2, K_pad, 3Hp)  compute_dtype   (projection weights, transposed)
      w_hh  : (2, Hp, 3Hp)     float32         (recurrence stays in f32)
      b_proj: (2, 1, 3Hp)      float32         (b_ih + b_hh[r,z] folded)
      b_hn  : (2, 1, Hp)       float32         (b_hh of the n gate; multiplied by r)
    """
    w_ih_l, w_hh_l, b_proj_l, b_hn_l = [], [], [], []
    for dname in ("fwd", "bwd"):
        w_ih, w_hh, b_ih, b_hh = layer_p[dname]
        pieces, off = [], 0
        for w_orig, w_pad in zip(in_splits, in_splits_padded):
            blk = _pad_gate_cols(w_ih[:, off:off + w_orig].T, H, Hp)   # (w_orig, 3Hp)
            if w_pad > w_orig:
                blk = jnp.pad(blk, ((0, w_pad - w_orig), (0, 0)))
            pieces.append(blk)
            off += w_orig
        w_ih_l.append(jnp.concatenate(pieces, axis=0))                 # (K_pad, 3Hp)

        whh_t = _pad_gate_cols(w_hh.T, H, Hp)                          # (H, 3Hp)
        w_hh_l.append(jnp.pad(whh_t, ((0, Hp - H), (0, 0))))           # (Hp, 3Hp)

        # Fold b_ih fully and b_hh for r/z into the projection bias; b_hh_n stays separate.
        b_proj = b_ih + jnp.concatenate([b_hh[:2 * H], jnp.zeros((H,), b_hh.dtype)])
        b_proj_l.append(_pad_gate_vec(b_proj, H, Hp).reshape(1, 3 * Hp))
        b_hn_l.append(jnp.pad(b_hh[2 * H:], (0, Hp - H)).reshape(1, Hp))

    return (jnp.stack(w_ih_l).astype(compute_dtype),
            jnp.stack(w_hh_l).astype(jnp.float32),
            jnp.stack(b_proj_l).astype(jnp.float32),
            jnp.stack(b_hn_l).astype(jnp.float32))


# ------------------------------- block sizing -------------------------------- #

def _layer_block_bytes(Tt, B, Hp, feats, K, act_itemsize):
    """Approx VMEM footprint of one grid step (double-buffered blocks + scratch)."""
    G = 3 * Hp
    total = 0
    total += 2 * sum(2 * Tt * B * f * act_itemsize for f in feats)   # fwd+bwd act inputs
    total += 2 * 2 * Tt * B * Hp * act_itemsize                      # y_f + y_b outputs
    total += 2 * 2 * (K * G + Hp * G + G + Hp) * 4                   # both-direction weights
    total += 2 * Tt * B * G * 4 + 2 * B * Hp * 4                     # gi + h scratch
    return total


def _pick_time_block(T, B, Hp, feats, K, act_itemsize, max_block):
    """Largest divisor of T (<= max_block) whose block is sublane-legal and fits VMEM budget."""
    budget = _VMEM_MAX - (8 << 20)
    divisors = [c for c in range(1, T + 1) if T % c == 0]
    valid = [c for c in divisors if (c * B) % 8 == 0 or c == T]
    if not valid:
        valid = [T]
    fits = lambda c: _layer_block_bytes(c, B, Hp, feats, K, act_itemsize) <= budget
    preferred = [c for c in valid if c <= max_block and fits(c)]
    if preferred:
        return max(preferred)
    small = [c for c in valid if fits(c)]
    return min(small) if small else min(valid)


# ---------------------------- fused layer kernel ----------------------------- #

def _bigru_layer_kernel(*refs, n_stack, Tt, B, Hp, feats):
    x_f = refs[:n_stack]                              # forward-order activation blocks
    x_b = refs[n_stack:2 * n_stack]                   # reverse-order activation blocks
    w_ih_ref, w_hh_ref, b_proj_ref, b_hn_ref = refs[2 * n_stack:2 * n_stack + 4]
    y_f_ref, y_b_ref = refs[2 * n_stack + 4:2 * n_stack + 6]
    gi_f, gi_b, h_f, h_b = refs[2 * n_stack + 6:]

    @pl.when(pl.program_id(0) == 0)
    def _():
        h_f[...] = jnp.zeros_like(h_f)
        h_b[...] = jnp.zeros_like(h_b)

    # ---- fused, time-independent input projection for this block (both directions) ----
    def project(x_refs, d, gi_ref):
        acc, off = None, 0
        for s in range(n_stack):
            contrib = jnp.dot(x_refs[s][...],
                              w_ih_ref[d, off:off + feats[s], :],
                              preferred_element_type=jnp.float32)
            acc = contrib if acc is None else acc + contrib
            off += feats[s]
        gi_ref[...] = acc + b_proj_ref[d]

    project(x_f, 0, gi_f)
    project(x_b, 1, gi_b)

    # Hoisted out of the unrolled loop (JAX does not CSE broadcast_in_dim).
    w_hh_f = w_hh_ref[0]
    w_hh_b = w_hh_ref[1]
    bhn_f = jnp.broadcast_to(b_hn_ref[0], (B, Hp))
    bhn_b = jnp.broadcast_to(b_hn_ref[1], (B, Hp))

    def gru_cell(gi_t, h, whh, bhn):
        gh = jnp.dot(h, whh, preferred_element_type=jnp.float32)      # f32 recurrence
        r = jax.nn.sigmoid(gi_t[:, 0:Hp] + gh[:, 0:Hp])
        z = jax.nn.sigmoid(gi_t[:, Hp:2 * Hp] + gh[:, Hp:2 * Hp])
        n = jnp.tanh(gi_t[:, 2 * Hp:3 * Hp] + r * (gh[:, 2 * Hp:3 * Hp] + bhn))
        return (1.0 - z) * n + z * h

    # ---- interleaved fwd/bwd recurrences, static per-step offsets ----
    for i in range(Tt):
        jf, jb = i, Tt - 1 - i
        hf = gru_cell(gi_f[jf * B:(jf + 1) * B, :], h_f[...], w_hh_f, bhn_f)
        hb = gru_cell(gi_b[jb * B:(jb + 1) * B, :], h_b[...], w_hh_b, bhn_b)
        h_f[...] = hf
        h_b[...] = hb
        y_f_ref[jf * B:(jf + 1) * B, :] = hf.astype(y_f_ref.dtype)
        y_b_ref[jb * B:(jb + 1) * B, :] = hb.astype(y_b_ref.dtype)


def _bigru_layer(acts, w_ih, w_hh, b_proj, b_hn, *, T, B, Hp, feats,
                 compute_dtype, max_time_block):
    """acts: list of (T*B, feat) time-major activations -> (y_fwd, y_bwd) each (T*B, Hp)."""
    n_stack = len(acts)
    G = 3 * Hp
    K = w_ih.shape[1]
    itemsize = jnp.dtype(compute_dtype).itemsize

    Tt = _pick_time_block(T, B, Hp, feats, K, itemsize, max_time_block)
    nb = T // Tt

    fwd_map = lambda t: (t, 0)
    bwd_map = lambda t: (nb - 1 - t, 0)

    in_specs = (
        [pl.BlockSpec((Tt * B, f), fwd_map) for f in feats] +
        [pl.BlockSpec((Tt * B, f), bwd_map) for f in feats] +
        [pl.BlockSpec((2, K, G), lambda t: (0, 0, 0)),
         pl.BlockSpec((2, Hp, G), lambda t: (0, 0, 0)),
         pl.BlockSpec((2, 1, G), lambda t: (0, 0, 0)),
         pl.BlockSpec((2, 1, Hp), lambda t: (0, 0, 0))]
    )
    out_specs = [pl.BlockSpec((Tt * B, Hp), fwd_map),
                 pl.BlockSpec((Tt * B, Hp), bwd_map)]
    out_shape = [jax.ShapeDtypeStruct((T * B, Hp), compute_dtype)] * 2

    scratch = [pltpu.VMEM((Tt * B, G), jnp.float32),   # gi forward block
               pltpu.VMEM((Tt * B, G), jnp.float32),   # gi backward block
               pltpu.VMEM((B, Hp), jnp.float32),       # h forward (carried)
               pltpu.VMEM((B, Hp), jnp.float32)]       # h backward (carried)

    footprint = _layer_block_bytes(Tt, B, Hp, feats, K, itemsize)
    vmem_limit = int(min(max(_VMEM_MIN, footprint + (8 << 20)), _VMEM_MAX))

    kernel = functools.partial(_bigru_layer_kernel, n_stack=n_stack, Tt=Tt, B=B,
                               Hp=Hp, feats=tuple(feats))

    y_f, y_b = pl.pallas_call(
        kernel,
        out_shape=out_shape,
        grid_spec=pltpu.PrefetchScalarGridSpec(
            num_scalar_prefetch=0,
            grid=(nb,),
            in_specs=in_specs,
            out_specs=out_specs,
            scratch_shapes=scratch),
        compiler_params=pltpu.CompilerParams(
            dimension_semantics=("arbitrary",),       # carried hidden state across time blocks
            vmem_limit_bytes=vmem_limit),
    )(*acts, *acts, w_ih, w_hh, b_proj, b_hn)
    return y_f, y_b


# ------------------------------- BiGRU forward -------------------------------- #

def bigru_forward(x, params, *, compute_dtype=jnp.float32, max_time_block=16):
    """x: (B, T, input_size) -> (B, T, 2*hidden_size)  (batch_first, like PyTorch, eval mode)."""
    B, T, F_in = x.shape
    H = params[0]["fwd"][1].shape[1]            # w_hh: (3H, H)
    Hp = _round_up(H, _LANE)

    # Single transpose on entry; activations stay flattened time-major (T*B, feat).
    act = jnp.transpose(x, (1, 0, 2)).reshape(T * B, F_in).astype(compute_dtype)
    acts = [act]
    in_splits = [F_in]          # original per-stack widths
    act_widths = [F_in]         # padded per-stack widths (match activation arrays)

    for layer_p in params:
        w_ih_s, w_hh_s, b_proj_s, b_hn_s = _pack_layer(
            layer_p, H, Hp, in_splits, act_widths, compute_dtype)
        y_f, y_b = _bigru_layer(acts, w_ih_s, w_hh_s, b_proj_s, b_hn_s,
                                T=T, B=B, Hp=Hp, feats=act_widths,
                                compute_dtype=compute_dtype,
                                max_time_block=max_time_block)
        acts = [y_f, y_b]                        # feeds next layer: no concat, no stacking copy
        in_splits = [H, H]
        act_widths = [Hp, Hp]

    out = jnp.concatenate([acts[0][:, :H], acts[1][:, :H]], axis=-1)   # (T*B, 2H)
    out = out.reshape(T, B, 2 * H)
    return jnp.transpose(out, (1, 0, 2)).astype(jnp.float32)           # (B, T, 2H)


# ------------------------------ parameter init -------------------------------- #

def init_bigru_params(key, input_size, hidden_size, num_layers):
    """Shapes matching nn.GRU(input, hidden, num_layers, bidirectional=True)."""
    k = 1.0 / jnp.sqrt(hidden_size)
    params = []
    for layer in range(num_layers):
        in_size = input_size if layer == 0 else 2 * hidden_size
        layer_p = {}
        for direction in ("fwd", "bwd"):
            key, k1, k2, k3, k4 = jax.random.split(key, 5)
            w_ih = jax.random.uniform(k1, (3 * hidden_size, in_size), jnp.float32, -k, k)
            w_hh = jax.random.uniform(k2, (3 * hidden_size, hidden_size), jnp.float32, -k, k)
            b_ih = jax.random.uniform(k3, (3 * hidden_size,), jnp.float32, -k, k)
            b_hh = jax.random.uniform(k4, (3 * hidden_size,), jnp.float32, -k, k)
            layer_p[direction] = (w_ih, w_hh, b_ih, b_hh)
        params.append(layer_p)
    return params


# ---------------------------- pure-JAX reference ------------------------------ #

def _gru_ref_direction(x_tbf, w_ih, w_hh, b_ih, b_hh):
    H = w_hh.shape[1]
    B = x_tbf.shape[1]

    def step(h, x_t):
        gi = x_t @ w_ih.T + b_ih
        gh = h @ w_hh.T + b_hh
        r = jax.nn.sigmoid(gi[:, :H] + gh[:, :H])
        z = jax.nn.sigmoid(gi[:, H:2 * H] + gh[:, H:2 * H])
        n = jnp.tanh(gi[:, 2 * H:] + r * gh[:, 2 * H:])
        h_new = (1.0 - z) * n + z * h
        return h_new, h_new

    _, ys = lax.scan(step, jnp.zeros((B, H), jnp.float32), x_tbf)
    return ys


def bigru_ref(x, params):
    h = x
    for layer_p in params:
        x_tbf = jnp.transpose(h, (1, 0, 2)).astype(jnp.float32)
        out_f = _gru_ref_direction(x_tbf, *layer_p["fwd"])
        out_b = _gru_ref_direction(x_tbf[::-1], *layer_p["bwd"])[::-1]
        h = jnp.transpose(jnp.concatenate([out_f, out_b], axis=-1), (1, 0, 2))
    return h


# ----------------------------------- main -------------------------------------- #

if __name__ == "__main__":
    B, T = 2, 8
    input_size, hidden_size, num_layers = 16, 32, 2

    key = jax.random.PRNGKey(0)
    kx, kp = jax.random.split(key)
    x = jax.random.normal(kx, (B, T, input_size), jnp.float32)
    params = init_bigru_params(kp, input_size, hidden_size, num_layers)

    ref = jax.block_until_ready(bigru_ref(x, params))

    # float32 path (tight tolerance)
    out = jax.block_until_ready(bigru_forward(x, params))
    assert out.shape == (B, T, 2 * hidden_size), out.shape
    err = float(jnp.max(jnp.abs(out - ref)))
    assert jnp.allclose(out, ref, atol=1e-4, rtol=1e-4), err

    # bf16 weights/activations path (f32 recurrence, gates & accumulation) — loose tolerance.
    out_bf16 = jax.block_until_ready(bigru_forward(x, params, compute_dtype=jnp.bfloat16))
    err_bf16 = float(jnp.max(jnp.abs(out_bf16 - ref)))
    assert jnp.allclose(out_bf16, ref, atol=1e-1, rtol=1e-1), err_bf16

    print("KERNEL_OK")
</pallas_src>

<mosaic_0001>
module attributes {stable_mosaic.version = 11 : i64} {
  func.func @_bigru_layer_kernel(%arg0: i32, %arg1: memref<16x16xf32, #tpu.memory_space<vmem>>, %arg2: memref<16x16xf32, #tpu.memory_space<vmem>>, %arg3: memref<2x16x384xf32, #tpu.memory_space<vmem>>, %arg4: memref<2x128x384xf32, #tpu.memory_space<vmem>>, %arg5: memref<2x1x384xf32, #tpu.memory_space<vmem>>, %arg6: memref<2x1x128xf32, #tpu.memory_space<vmem>>, %arg7: memref<16x128xf32, #tpu.memory_space<vmem>>, %arg8: memref<16x128xf32, #tpu.memory_space<vmem>>, %arg9: memref<16x384xf32, #tpu.memory_space<vmem>>, %arg10: memref<16x384xf32, #tpu.memory_space<vmem>>, %arg11: memref<2x128xf32, #tpu.memory_space<vmem>>, %arg12: memref<2x128xf32, #tpu.memory_space<vmem>>) attributes {dimension_semantics = [#tpu.dimension_semantics<arbitrary>], iteration_bounds = array<i64: 1>, scalar_prefetch = 0 : i64, scratch_operands = 4 : i64, tpu.core_type = #tpu.core_type<tc>, window_params = [{transform_indices = @transform_0, window_bounds = array<i64: 16, 16>}, {transform_indices = @transform_1, window_bounds = array<i64: 16, 16>}, {pipeline_mode = #tpu.pipeline_mode<synchronous>, transform_indices = @transform_2, window_bounds = array<i64: 2, 16, 384>}, {pipeline_mode = #tpu.pipeline_mode<synchronous>, transform_indices = @transform_3, window_bounds = array<i64: 2, 128, 384>}, {pipeline_mode = #tpu.pipeline_mode<synchronous>, transform_indices = @transform_4, window_bounds = array<i64: 2, 1, 384>}, {pipeline_mode = #tpu.pipeline_mode<synchronous>, transform_indices = @transform_5, window_bounds = array<i64: 2, 1, 128>}, {transform_indices = @transform_6, window_bounds = array<i64: 16, 128>}, {transform_indices = @transform_7, window_bounds = array<i64: 16, 128>}]} {
    %c0_i32 = arith.constant 0 : i32
    %0 = arith.cmpi eq, %arg0, %c0_i32 : i32
    %1 = arith.extui %0 : i1 to i32
    %c0_i32_0 = arith.constant 0 : i32
    %2 = arith.cmpi ne, %1, %c0_i32_0 : i32
    scf.if %2 {
      %cst_217 = arith.constant 0.000000e+00 : f32
      %545 = vector.broadcast %cst_217 : f32 to vector<2x128xf32>
      %c0_218 = arith.constant 0 : index
      %c0_219 = arith.constant 0 : index
      %546 = vector.load %arg11[%c0_218, %c0_219] : memref<2x128xf32, #tpu.memory_space<vmem>>, vector<2x128xf32>
      tpu.vector_store %arg11[%c0_218, %c0_219], %545 {strides = array<i32>} : memref<2x128xf32, #tpu.memory_space<vmem>>, vector<2x128xf32>,
      %cst_220 = arith.constant 0.000000e+00 : f32
      %547 = vector.broadcast %cst_220 : f32 to vector<2x128xf32>
      %c0_221 = arith.constant 0 : index
      %c0_222 = arith.constant 0 : index
      %548 = vector.load %arg12[%c0_221, %c0_222] : memref<2x128xf32, #tpu.memory_space<vmem>>, vector<2x128xf32>
      tpu.vector_store %arg12[%c0_221, %c0_222], %547 {strides = array<i32>} : memref<2x128xf32, #tpu.memory_space<vmem>>, vector<2x128xf32>,
    } else {
    }
    %c0 = arith.constant 0 : index
    %c0_1 = arith.constant 0 : index
    %3 = vector.load %arg1[%c0, %c0_1] : memref<16x16xf32, #tpu.memory_space<vmem>>, vector<16x16xf32>
    %c0_2 = arith.constant 0 : index
    %c0_3 = arith.constant 0 : index
    %c0_4 = arith.constant 0 : index
    %4 = vector.load %arg3[%c0_2, %c0_3, %c0_4] : memref<2x16x384xf32, #tpu.memory_space<vmem>>, vector<1x16x384xf32>
    %5 = vector.shape_cast %4 : vector<1x16x384xf32> to vector<16x384xf32>
    %cst = arith.constant dense<0.000000e+00> : vector<16x384xf32>
    %6 = tpu.matmul %3, %5, %cst {dimension_numbers = #tpu.dot_dimension_numbers<[1], [0], [0], [1], [0, 0, 1, 1], [], []>} : vector<16x16xf32>, vector<16x384xf32>, vector<16x384xf32> -> vector<16x384xf32>
    %c0_5 = arith.constant 0 : index
    %c0_6 = arith.constant 0 : index
    %c0_7 = arith.constant 0 : index
    %7 = vector.load %arg5[%c0_5, %c0_6, %c0_7] : memref<2x1x384xf32, #tpu.memory_space<vmem>>, vector<1x1x384xf32>
    %8 = vector.shape_cast %7 : vector<1x1x384xf32> to vector<1x384xf32>
    %9 = vector.broadcast %8 : vector<1x384xf32> to vector<16x384xf32>
    %10 = arith.addf %6, %9 : vector<16x384xf32>
    %c0_8 = arith.constant 0 : index
    %c0_9 = arith.constant 0 : index
    %11 = vector.load %arg9[%c0_8, %c0_9] : memref<16x384xf32, #tpu.memory_space<vmem>>, vector<16x384xf32>
    tpu.vector_store %arg9[%c0_8, %c0_9], %10 {strides = array<i32>} : memref<16x384xf32, #tpu.memory_space<vmem>>, vector<16x384xf32>,
    %c0_10 = arith.constant 0 : index
    %c0_11 = arith.constant 0 : index
    %12 = vector.load %arg2[%c0_10, %c0_11] : memref<16x16xf32, #tpu.memory_space<vmem>>, vector<16x16xf32>
    %c1 = arith.constant 1 : index
    %c0_12 = arith.constant 0 : index
    %c0_13 = arith.constant 0 : index
    %13 = vector.load %arg3[%c1, %c0_12, %c0_13] : memref<2x16x384xf32, #tpu.memory_space<vmem>>, vector<1x16x384xf32>
    %14 = vector.shape_cast %13 : vector<1x16x384xf32> to vector<16x384xf32>
    %cst_14 = arith.constant dense<0.000000e+00> : vector<16x384xf32>
    %15 = tpu.matmul %12, %14, %cst_14 {dimension_numbers = #tpu.dot_dimension_numbers<[1], [0], [0], [1], [0, 0, 1, 1], [], []>} : vector<16x16xf32>, vector<16x384xf32>, vector<16x384xf32> -> vector<16x384xf32>
    %c1_15 = arith.constant 1 : index
    %c0_16 = arith.constant 0 : index
    %c0_17 = arith.constant 0 : index
    %16 = vector.load %arg5[%c1_15, %c0_16, %c0_17] : memref<2x1x384xf32, #tpu.memory_space<vmem>>, vector<1x1x384xf32>
    %17 = vector.shape_cast %16 : vector<1x1x384xf32> to vector<1x384xf32>
    %18 = vector.broadcast %17 : vector<1x384xf32> to vector<16x384xf32>
    %19 = arith.addf %15, %18 : vector<16x384xf32>
    %c0_18 = arith.constant 0 : index
    %c0_19 = arith.constant 0 : index
    %20 = vector.load %arg10[%c0_18, %c0_19] : memref<16x384xf32, #tpu.memory_space<vmem>>, vector<16x384xf32>
    tpu.vector_store %arg10[%c0_18, %c0_19], %19 {strides = array<i32>} : memref<16x384xf32, #tpu.memory_space<vmem>>, vector<16x384xf32>,
    %c0_20 = arith.constant 0 : index
    %c0_21 = arith.constant 0 : index
    %c0_22 = arith.constant 0 : index
    %21 = vector.load %arg4[%c0_20, %c0_21, %c0_22] : memref<2x128x384xf32, #tpu.memory_space<vmem>>, vector<1x128x384xf32>
    %22 = vector.shape_cast %21 : vector<1x128x384xf32> to vector<128x384xf32>
    %c1_23 = arith.constant 1 : index
    %c0_24 = arith.constant 0 : index
    %c0_25 = arith.constant 0 : index
    %23 = vector.load %arg4[%c1_23, %c0_24, %c0_25] : memref<2x128x384xf32, #tpu.memory_space<vmem>>, vector<1x128x384xf32>
    %24 = vector.shape_cast %23 : vector<1x128x384xf32> to vector<128x384xf32>
    %c0_26 = arith.constant 0 : index
    %c0_27 = arith.constant 0 : index
    %c0_28 = arith.constant 0 : index
    %25 = vector.load %arg6[%c0_26, %c0_27, %c0_28] : memref<2x1x128xf32, #tpu.memory_space<vmem>>, vector<1x1x128xf32>
    %26 = vector.shape_cast %25 : vector<1x1x128xf32> to vector<1x128xf32>
    %27 = vector.shape_cast %26 : vector<1x128xf32> to vector<1x128xf32>
    %28 = vector.broadcast %27 : vector<1x128xf32> to vector<2x128xf32>
    %c1_29 = arith.constant 1 : index
    %c0_30 = arith.constant 0 : index
    %c0_31 = arith.constant 0 : index
    %29 = vector.load %arg6[%c1_29, %c0_30, %c0_31] : memref<2x1x128xf32, #tpu.memory_space<vmem>>, vector<1x1x128xf32>
    %30 = vector.shape_cast %29 : vector<1x1x128xf32> to vector<1x128xf32>
    %31 = vector.shape_cast %30 : vector<1x128xf32> to vector<1x128xf32>
    %32 = vector.broadcast %31 : vector<1x128xf32> to vector<2x128xf32>
    %c0_32 = arith.constant 0 : index
    %c0_33 = arith.constant 0 : index
    %33 = vector.load %arg9[%c0_32, %c0_33] : memref<16x384xf32, #tpu.memory_space<vmem>>, vector<2x384xf32>
    %c0_34 = arith.constant 0 : index
    %c0_35 = arith.constant 0 : index
    %34 = vector.load %arg11[%c0_34, %c0_35] : memref<2x128xf32, #tpu.memory_space<vmem>>, vector<2x128xf32>
    %cst_36 = arith.constant dense<0.000000e+00> : vector<2x384xf32>
    %35 = tpu.matmul %34, %22, %cst_36 {dimension_numbers = #tpu.dot_dimension_numbers<[1], [0], [0], [1], [0, 0, 1, 1], [], []>} : vector<2x128xf32>, vector<128x384xf32>, vector<2x384xf32> -> vector<2x384xf32>
    %36 = vector.extract_strided_slice %33 {offsets = [0, 0], sizes = [2, 128], strides = [1, 1]} : vector<2x384xf32> to vector<2x128xf32>
    %37 = vector.extract_strided_slice %35 {offsets = [0, 0], sizes = [2, 128], strides = [1, 1]} : vector<2x384xf32> to vector<2x128xf32>
    %38 = arith.addf %36, %37 : vector<2x128xf32>
    %39 = arith.negf %38 : vector<2x128xf32>
    %40 = math.exp %39 : vector<2x128xf32>
    %cst_37 = arith.constant 1.000000e+00 : f32
    %41 = vector.broadcast %cst_37 : f32 to vector<2x128xf32>
    %42 = arith.addf %41, %40 : vector<2x128xf32>
    %43 = arith.divf %41, %42 : vector<2x128xf32>
    %44 = vector.extract_strided_slice %33 {offsets = [0, 128], sizes = [2, 128], strides = [1, 1]} : vector<2x384xf32> to vector<2x128xf32>
    %45 = vector.extract_strided_slice %35 {offsets = [0, 128], sizes = [2, 128], strides = [1, 1]} : vector<2x384xf32> to vector<2x128xf32>
    %46 = arith.addf %44, %45 : vector<2x128xf32>
    %47 = arith.negf %46 : vector<2x128xf32>
    %48 = math.exp %47 : vector<2x128xf32>
    %cst_38 = arith.constant 1.000000e+00 : f32
    %49 = vector.broadcast %cst_38 : f32 to vector<2x128xf32>
    %50 = arith.addf %49, %48 : vector<2x128xf32>
    %51 = arith.divf %49, %50 : vector<2x128xf32>
    %52 = vector.extract_strided_slice %33 {offsets = [0, 256], sizes = [2, 128], strides = [1, 1]} : vector<2x384xf32> to vector<2x128xf32>
    %53 = vector.extract_strided_slice %35 {offsets = [0, 256], sizes = [2, 128], strides = [1, 1]} : vector<2x384xf32> to vector<2x128xf32>
    %54 = arith.addf %53, %28 : vector<2x128xf32>
    %55 = arith.mulf %43, %54 : vector<2x128xf32>
    %56 = arith.addf %52, %55 : vector<2x128xf32>
    %57 = math.tanh %56 : vector<2x128xf32>
    %cst_39 = arith.constant 1.000000e+00 : f32
    %58 = vector.broadcast %cst_39 : f32 to vector<2x128xf32>
    %59 = arith.subf %58, %51 : vector<2x128xf32>
    %60 = arith.mulf %59, %57 : vector<2x128xf32>
    %61 = arith.mulf %51, %34 : vector<2x128xf32>
    %62 = arith.addf %60, %61 : vector<2x128xf32>
    %c14 = arith.constant 14 : index
    %c0_40 = arith.constant 0 : index
    %63 = vector.load %arg10[%c14, %c0_40] : memref<16x384xf32, #tpu.memory_space<vmem>>, vector<2x384xf32>
    %c0_41 = arith.constant 0 : index
    %c0_42 = arith.constant 0 : index
    %64 = vector.load %arg12[%c0_41, %c0_42] : memref<2x128xf32, #tpu.memory_space<vmem>>, vector<2x128xf32>
    %cst_43 = arith.constant dense<0.000000e+00> : vector<2x384xf32>
    %65 = tpu.matmul %64, %24, %cst_43 {dimension_numbers = #tpu.dot_dimension_numbers<[1], [0], [0], [1], [0, 0, 1, 1], [], []>} : vector<2x128xf32>, vector<128x384xf32>, vector<2x384xf32> -> vector<2x384xf32>
    %66 = vector.extract_strided_slice %63 {offsets = [0, 0], sizes = [2, 128], strides = [1, 1]} : vector<2x384xf32> to vector<2x128xf32>
    %67 = vector.extract_strided_slice %65 {offsets = [0, 0], sizes = [2, 128], strides = [1, 1]} : vector<2x384xf32> to vector<2x128xf32>
    %68 = arith.addf %66, %67 : vector<2x128xf32>
    %69 = arith.negf %68 : vector<2x128xf32>
    %70 = math.exp %69 : vector<2x128xf32>
    %cst_44 = arith.constant 1.000000e+00 : f32
    %71 = vector.broadcast %cst_44 : f32 to vector<2x128xf32>
    %72 = arith.addf %71, %70 : vector<2x128xf32>
    %73 = arith.divf %71, %72 : vector<2x128xf32>
    %74 = vector.extract_strided_slice %63 {offsets = [0, 128], sizes = [2, 128], strides = [1, 1]} : vector<2x384xf32> to vector<2x128xf32>
    %75 = vector.extract_strided_slice %65 {offsets = [0, 128], sizes = [2, 128], strides = [1, 1]} : vector<2x384xf32> to vector<2x128xf32>
    %76 = arith.addf %74, %75 : vector<2x128xf32>
    %77 = arith.negf %76 : vector<2x128xf32>
    %78 = math.exp %77 : vector<2x128xf32>
    %cst_45 = arith.constant 1.000000e+00 : f32
    %79 = vector.broadcast %cst_45 : f32 to vector<2x128xf32>
    %80 = arith.addf %79, %78 : vector<2x128xf32>
    %81 = arith.divf %79, %80 : vector<2x128xf32>
    %82 = vector.extract_strided_slice %63 {offsets = [0, 256], sizes = [2, 128], strides = [1, 1]} : vector<2x384xf32> to vector<2x128xf32>
    %83 = vector.extract_strided_slice %65 {offsets = [0, 256], sizes = [2, 128], strides = [1, 1]} : vector<2x384xf32> to vector<2x128xf32>
    %84 = arith.addf %83, %32 : vector<2x128xf32>
    %85 = arith.mulf %73, %84 : vector<2x128xf32>
    %86 = arith.addf %82, %85 : vector<2x128xf32>
    %87 = math.tanh %86 : vector<2x128xf32>
    %cst_46 = arith.constant 1.000000e+00 : f32
    %88 = vector.broadcast %cst_46 : f32 to vector<2x128xf32>
    %89 = arith.subf %88, %81 : vector<2x128xf32>
    %90 = arith.mulf %89, %87 : vector<2x128xf32>
    %91 = arith.mulf %81, %64 : vector<2x128xf32>
    %92 = arith.addf %90, %91 : vector<2x128xf32>
    %c0_47 = arith.constant 0 : index
    %c0_48 = arith.constant 0 : index
    %93 = vector.load %arg11[%c0_47, %c0_48] : memref<2x128xf32, #tpu.memory_space<vmem>>, vector<2x128xf32>
    tpu.vector_store %arg11[%c0_47, %c0_48], %62 {strides = array<i32>} : memref<2x128xf32, #tpu.memory_space<vmem>>, vector<2x128xf32>,
    %c0_49 = arith.constant 0 : index
    %c0_50 = arith.constant 0 : index
    %94 = vector.load %arg12[%c0_49, %c0_50] : memref<2x128xf32, #tpu.memory_space<vmem>>, vector<2x128xf32>
    tpu.vector_store %arg12[%c0_49, %c0_50], %92 {strides = array<i32>} : memref<2x128xf32, #tpu.memory_space<vmem>>, vector<2x128xf32>,
    %c0_51 = arith.constant 0 : index
    %c0_52 = arith.constant 0 : index
    %95 = vector.load %arg7[%c0_51, %c0_52] : memref<16x128xf32, #tpu.memory_space<vmem>>, vector<2x128xf32>
    tpu.vector_store %arg7[%c0_51, %c0_52], %62 {strides = array<i32>} : memref<16x128xf32, #tpu.memory_space<vmem>>, vector<2x128xf32>,
    %c14_53 = arith.constant 14 : index
    %c0_54 = arith.constant 0 : index
    %96 = vector.load %arg8[%c14_53, %c0_54] : memref<16x128xf32, #tpu.memory_space<vmem>>, vector<2x128xf32>
    tpu.vector_store %arg8[%c14_53, %c0_54], %92 {strides = array<i32>} : memref<16x128xf32, #tpu.memory_space<vmem>>, vector<2x128xf32>,
    %c2 = arith.constant 2 : index
    %c0_55 = arith.constant 0 : index
    %97 = vector.load %arg9[%c2, %c0_55] : memref<16x384xf32, #tpu.memory_space<vmem>>, vector<2x384xf32>
    %c0_56 = arith.constant 0 : index
    %c0_57 = arith.constant 0 : index
    %98 = vector.load %arg11[%c0_56, %c0_57] : memref<2x128xf32, #tpu.memory_space<vmem>>, vector<2x128xf32>
    %cst_58 = arith.constant dense<0.000000e+00> : vector<2x384xf32>
    %99 = tpu.matmul %98, %22, %cst_58 {dimension_numbers = #tpu.dot_dimension_numbers<[1], [0], [0], [1], [0, 0, 1, 1], [], []>} : vector<2x128xf32>, vector<128x384xf32>, vector<2x384xf32> -> vector<2x384xf32>
    %100 = vector.extract_strided_slice %97 {offsets = [0, 0], sizes = [2, 128], strides = [1, 1]} : vector<2x384xf32> to vector<2x128xf32>
    %101 = vector.extract_strided_slice %99 {offsets = [0, 0], sizes = [2, 128], strides = [1, 1]} : vector<2x384xf32> to vector<2x128xf32>
    %102 = arith.addf %100, %101 : vector<2x128xf32>
    %103 = arith.negf %102 : vector<2x128xf32>
    %104 = math.exp %103 : vector<2x128xf32>
    %cst_59 = arith.constant 1.000000e+00 : f32
    %105 = vector.broadcast %cst_59 : f32 to vector<2x128xf32>
    %106 = arith.addf %105, %104 : vector<2x128xf32>
    %107 = arith.divf %105, %106 : vector<2x128xf32>
    %108 = vector.extract_strided_slice %97 {offsets = [0, 128], sizes = [2, 128], strides = [1, 1]} : vector<2x384xf32> to vector<2x128xf32>
    %109 = vector.extract_strided_slice %99 {offsets = [0, 128], sizes = [2, 128], strides = [1, 1]} : vector<2x384xf32> to vector<2x128xf32>
    %110 = arith.addf %108, %109 : vector<2x128xf32>
    %111 = arith.negf %110 : vector<2x128xf32>
    %112 = math.exp %111 : vector<2x128xf32>
    %cst_60 = arith.constant 1.000000e+00 : f32
    %113 = vector.broadcast %cst_60 : f32 to vector<2x128xf32>
    %114 = arith.addf %113, %112 : vector<2x128xf32>
    %115 = arith.divf %113, %114 : vector<2x128xf32>
    %116 = vector.extract_strided_slice %97 {offsets = [0, 256], sizes = [2, 128], strides = [1, 1]} : vector<2x384xf32> to vector<2x128xf32>
    %117 = vector.extract_strided_slice %99 {offsets = [0, 256], sizes = [2, 128], strides = [1, 1]} : vector<2x384xf32> to vector<2x128xf32>
    %118 = arith.addf %117, %28 : vector<2x128xf32>
    %119 = arith.mulf %107, %118 : vector<2x128xf32>
    %120 = arith.addf %116, %119 : vector<2x128xf32>
    %121 = math.tanh %120 : vector<2x128xf32>
    %cst_61 = arith.constant 1.000000e+00 : f32
    %122 = vector.broadcast %cst_61 : f32 to vector<2x128xf32>
    %123 = arith.subf %122, %115 : vector<2x128xf32>
    %124 = arith.mulf %123, %121 : vector<2x128xf32>
    %125 = arith.mulf %115, %98 : vector<2x128xf32>
    %126 = arith.addf %124, %125 : vector<2x128xf32>
    %c12 = arith.constant 12 : index
    %c0_62 = arith.constant 0 : index
    %127 = vector.load %arg10[%c12, %c0_62] : memref<16x384xf32, #tpu.memory_space<vmem>>, vector<2x384xf32>
    %c0_63 = arith.constant 0 : index
    %c0_64 = arith.constant 0 : index
    %128 = vector.load %arg12[%c0_63, %c0_64] : memref<2x128xf32, #tpu.memory_space<vmem>>, vector<2x128xf32>
    %cst_65 = arith.constant dense<0.000000e+00> : vector<2x384xf32>
    %129 = tpu.matmul %128, %24, %cst_65 {dimension_numbers = #tpu.dot_dimension_numbers<[1], [0], [0], [1], [0, 0, 1, 1], [], []>} : vector<2x128xf32>, vector<128x384xf32>, vector<2x384xf32> -> vector<2x384xf32>
    %130 = vector.extract_strided_slice %127 {offsets = [0, 0], sizes = [2, 128], strides = [1, 1]} : vector<2x384xf32> to vector<2x128xf32>
    %131 = vector.extract_strided_slice %129 {offsets = [0, 0], sizes = [2, 128], strides = [1, 1]} : vector<2x384xf32> to vector<2x128xf32>
    %132 = arith.addf %130, %131 : vector<2x128xf32>
    %133 = arith.negf %132 : vector<2x128xf32>
    %134 = math.exp %133 : vector<2x128xf32>
    %cst_66 = arith.constant 1.000000e+00 : f32
    %135 = vector.broadcast %cst_66 : f32 to vector<2x128xf32>
    %136 = arith.addf %135, %134 : vector<2x128xf32>
    %137 = arith.divf %135, %136 : vector<2x128xf32>
    %138 = vector.extract_strided_slice %127 {offsets = [0, 128], sizes = [2, 128], strides = [1, 1]} : vector<2x384xf32> to vector<2x128xf32>
    %139 = vector.extract_strided_slice %129 {offsets = [0, 128], sizes = [2, 128], strides = [1, 1]} : vector<2x384xf32> to vector<2x128xf32>
    %140 = arith.addf %138, %139 : vector<2x128xf32>
    %141 = arith.negf %140 : vector<2x128xf32>
    %142 = math.exp %141 : vector<2x128xf32>
    %cst_67 = arith.constant 1.000000e+00 : f32
    %143 = vector.broadcast %cst_67 : f32 to vector<2x128xf32>
    %144 = arith.addf %143, %142 : vector<2x128xf32>
    %145 = arith.divf %143, %144 : vector<2x128xf32>
    %146 = vector.extract_strided_slice %127 {offsets = [0, 256], sizes = [2, 128], strides = [1, 1]} : vector<2x384xf32> to vector<2x128xf32>
    %147 = vector.extract_strided_slice %129 {offsets = [0, 256], sizes = [2, 128], strides = [1, 1]} : vector<2x384xf32> to vector<2x128xf32>
    %148 = arith.addf %147, %32 : vector<2x128xf32>
    %149 = arith.mulf %137, %148 : vector<2x128xf32>
    %150 = arith.addf %146, %149 : vector<2x128xf32>
    %151 = math.tanh %150 : vector<2x128xf32>
    %cst_68 = arith.constant 1.000000e+00 : f32
    %152 = vector.broadcast %cst_68 : f32 to vector<2x128xf32>
    %153 = arith.subf %152, %145 : vector<2x128xf32>
    %154 = arith.mulf %153, %151 : vector<2x128xf32>
    %155 = arith.mulf %145, %128 : vector<2x128xf32>
    %156 = arith.addf %154, %155 : vector<2x128xf32>
    %c0_69 = arith.constant 0 : index
    %c0_70 = arith.constant 0 : index
    %157 = vector.load %arg11[%c0_69, %c0_70] : memref<2x128xf32, #tpu.memory_space<vmem>>, vector<2x128xf32>
    tpu.vector_store %arg11[%c0_69, %c0_70], %126 {strides = array<i32>} : memref<2x128xf32, #tpu.memory_space<vmem>>, vector<2x128xf32>,
    %c0_71 = arith.constant 0 : index
    %c0_72 = arith.constant 0 : index
    %158 = vector.load %arg12[%c0_71, %c0_72] : memref<2x128xf32, #tpu.memory_space<vmem>>, vector<2x128xf32>
    tpu.vector_store %arg12[%c0_71, %c0_72], %156 {strides = array<i32>} : memref<2x128xf32, #tpu.memory_space<vmem>>, vector<2x128xf32>,
    %c2_73 = arith.constant 2 : index
    %c0_74 = arith.constant 0 : index
    %159 = vector.load %arg7[%c2_73, %c0_74] : memref<16x128xf32, #tpu.memory_space<vmem>>, vector<2x128xf32>
    tpu.vector_store %arg7[%c2_73, %c0_74], %126 {strides = array<i32>} : memref<16x128xf32, #tpu.memory_space<vmem>>, vector<2x128xf32>,
    %c12_75 = arith.constant 12 : index
    %c0_76 = arith.constant 0 : index
    %160 = vector.load %arg8[%c12_75, %c0_76] : memref<16x128xf32, #tpu.memory_space<vmem>>, vector<2x128xf32>
    tpu.vector_store %arg8[%c12_75, %c0_76], %156 {strides = array<i32>} : memref<16x128xf32, #tpu.memory_space<vmem>>, vector<2x128xf32>,
    %c4 = arith.constant 4 : index
    %c0_77 = arith.constant 0 : index
    %161 = vector.load %arg9[%c4, %c0_77] : memref<16x384xf32, #tpu.memory_space<vmem>>, vector<2x384xf32>
    %c0_78 = arith.constant 0 : index
    %c0_79 = arith.constant 0 : index
    %162 = vector.load %arg11[%c0_78, %c0_79] : memref<2x128xf32, #tpu.memory_space<vmem>>, vector<2x128xf32>
    %cst_80 = arith.constant dense<0.000000e+00> : vector<2x384xf32>
    %163 = tpu.matmul %162, %22, %cst_80 {dimension_numbers = #tpu.dot_dimension_numbers<[1], [0], [0], [1], [0, 0, 1, 1], [], []>} : vector<2x128xf32>, vector<128x384xf32>, vector<2x384xf32> -> vector<2x384xf32>
    %164 = vector.extract_strided_slice %161 {offsets = [0, 0], sizes = [2, 128], strides = [1, 1]} : vector<2x384xf32> to vector<2x128xf32>
    %165 = vector.extract_strided_slice %163 {offsets = [0, 0], sizes = [2, 128], strides = [1, 1]} : vector<2x384xf32> to vector<2x128xf32>
    %166 = arith.addf %164, %165 : vector<2x128xf32>
    %167 = arith.negf %166 : vector<2x128xf32>
    %168 = math.exp %167 : vector<2x128xf32>
    %cst_81 = arith.constant 1.000000e+00 : f32
    %169 = vector.broadcast %cst_81 : f32 to vector<2x128xf32>
    %170 = arith.addf %169, %168 : vector<2x128xf32>
    %171 = arith.divf %169, %170 : vector<2x128xf32>
    %172 = vector.extract_strided_slice %161 {offsets = [0, 128], sizes = [2, 128], strides = [1, 1]} : vector<2x384xf32> to vector<2x128xf32>
    %173 = vector.extract_strided_slice %163 {offsets = [0, 128], sizes = [2, 128], strides = [1, 1]} : vector<2x384xf32> to vector<2x128xf32>
    %174 = arith.addf %172, %173 : vector<2x128xf32>
    %175 = arith.negf %174 : vector<2x128xf32>
    %176 = math.exp %175 : vector<2x128xf32>
    %cst_82 = arith.constant 1.000000e+00 : f32
    %177 = vector.broadcast %cst_82 : f32 to vector<2x128xf32>
    %178 = arith.addf %177, %176 : vector<2x128xf32>
    %179 = arith.divf %177, %178 : vector<2x128xf32>
    %180 = vector.extract_strided_slice %161 {offsets = [0, 256], sizes = [2, 128], strides = [1, 1]} : vector<2x384xf32> to vector<2x128xf32>
    %181 = vector.extract_strided_slice %163 {offsets = [0, 256], sizes = [2, 128], strides = [1, 1]} : vector<2x384xf32> to vector<2x128xf32>
    %182 = arith.addf %181, %28 : vector<2x128xf32>
    %183 = arith.mulf %171, %182 : vector<2x128xf32>
    %184 = arith.addf %180, %183 : vector<2x128xf32>
    %185 = math.tanh %184 : vector<2x128xf32>
    %cst_83 = arith.constant 1.000000e+00 : f32
    %186 = vector.broadcast %cst_83 : f32 to vector<2x128xf32>
    %187 = arith.subf %186, %179 : vector<2x128xf32>
    %188 = arith.mulf %187, %185 : vector<2x128xf32>
    %189 = arith.mulf %179, %162 : vector<2x128xf32>
    %190 = arith.addf %188, %189 : vector<2x128xf32>
    %c10 = arith.constant 10 : index
    %c0_84 = arith.constant 0 : index
    %191 = vector.load %arg10[%c10, %c0_84] : memref<16x384xf32, #tpu.memory_space<vmem>>, vector<2x384xf32>
    %c0_85 = arith.constant 0 : index
    %c0_86 = arith.constant 0 : index
    %192 = vector.load %arg12[%c0_85, %c0_86] : memref<2x128xf32, #tpu.memory_space<vmem>>, vector<2x128xf32>
    %cst_87 = arith.constant dense<0.000000e+00> : vector<2x384xf32>
    %193 = tpu.matmul %192, %24, %cst_87 {dimension_numbers = #tpu.dot_dimension_numbers<[1], [0], [0], [1], [0, 0, 1, 1], [], []>} : vector<2x128xf32>, vector<128x384xf32>, vector<2x384xf32> -> vector<2x384xf32>
    %194 = vector.extract_strided_slice %191 {offsets = [0, 0], sizes = [2, 128], strides = [1, 1]} : vector<2x384xf32> to vector<2x128xf32>
    %195 = vector.extract_strided_slice %193 {offsets = [0, 0], sizes = [2, 128], strides = [1, 1]} : vector<2x384xf32> to vector<2x128xf32>
    %196 = arith.addf %194, %195 : vector<2x128xf32>
    %197 = arith.negf %196 : vector<2x128xf32>
    %198 = math.exp %197 : vector<2x128xf32>
    %cst_88 = arith.constant 1.000000e+00 : f32
    %199 = vector.broadcast %cst_88 : f32 to vector<2x128xf32>
    %200 = arith.addf %199, %198 : vector<2x128xf32>
    %201 = arith.divf %199, %200 : vector<2x128xf32>
    %202 = vector.extract_strided_slice %191 {offsets = [0, 128], sizes = [2, 128], strides = [1, 1]} : vector<2x384xf32> to vector<2x128xf32>
    %203 = vector.extract_strided_slice %193 {offsets = [0, 128], sizes = [2, 128], strides = [1, 1]} : vector<2x384xf32> to vector<2x128xf32>
    %204 = arith.addf %202, %203 : vector<2x128xf32>
    %205 = arith.negf %204 : vector<2x128xf32>
    %206 = math.exp %205 : vector<2x128xf32>
    %cst_89 = arith.constant 1.000000e+00 : f32
    %207 = vector.broadcast %cst_89 : f32 to vector<2x128xf32>
    %208 = arith.addf %207, %206 : vector<2x128xf32>
    %209 = arith.divf %207, %208 : vector<2x128xf32>
    %210 = vector.extract_strided_slice %191 {offsets = [0, 256], sizes = [2, 128], strides = [1, 1]} : vector<2x384xf32> to vector<2x128xf32>
    %211 = vector.extract_strided_slice %193 {offsets = [0, 256], sizes = [2, 128], strides = [1, 1]} : vector<2x384xf32> to vector<2x128xf32>
    %212 = arith.addf %211, %32 : vector<2x128xf32>
    %213 = arith.mulf %201, %212 : vector<2x128xf32>
    %214 = arith.addf %210, %213 : vector<2x128xf32>
    %215 = math.tanh %214 : vector<2x128xf32>
    %cst_90 = arith.constant 1.000000e+00 : f32
    %216 = vector.broadcast %cst_90 : f32 to vector<2x128xf32>
    %217 = arith.subf %216, %209 : vector<2x128xf32>
    %218 = arith.mulf %217, %215 : vector<2x128xf32>
    %219 = arith.mulf %209, %192 : vector<2x128xf32>
    %220 = arith.addf %218, %219 : vector<2x128xf32>
    %c0_91 = arith.constant 0 : index
    %c0_92 = arith.constant 0 : index
    %221 = vector.load %arg11[%c0_91, %c0_92] : memref<2x128xf32, #tpu.memory_space<vmem>>, vector<2x128xf32>
    tpu.vector_store %arg11[%c0_91, %c0_92], %190 {strides = array<i32>} : memref<2x128xf32, #tpu.memory_space<vmem>>, vector<2x128xf32>,
    %c0_93 = arith.constant 0 : index
    %c0_94 = arith.constant 0 : index
    %222 = vector.load %arg12[%c0_93, %c0_94] : memref<2x128xf32, #tpu.memory_space<vmem>>, vector<2x128xf32>
    tpu.vector_store %arg12[%c0_93, %c0_94], %220 {strides = array<i32>} : memref<2x128xf32, #tpu.memory_space<vmem>>, vector<2x128xf32>,
    %c4_95 = arith.constant 4 : index
    %c0_96 = arith.constant 0 : index
    %223 = vector.load %arg7[%c4_95, %c0_96] : memref<16x128xf32, #tpu.memory_space<vmem>>, vector<2x128xf32>
    tpu.vector_store %arg7[%c4_95, %c0_96], %190 {strides = array<i32>} : memref<16x128xf32, #tpu.memory_space<vmem>>, vector<2x128xf32>,
    %c10_97 = arith.constant 10 : index
    %c0_98 = arith.constant 0 : index
    %224 = vector.load %arg8[%c10_97, %c0_98] : memref<16x128xf32, #tpu.memory_space<vmem>>, vector<2x128xf32>
    tpu.vector_store %arg8[%c10_97, %c0_98], %220 {strides = array<i32>} : memref<16x128xf32, #tpu.memory_space<vmem>>, vector<2x128xf32>,
    %c6 = arith.constant 6 : index
    %c0_99 = arith.constant 0 : index
    %225 = vector.load %arg9[%c6, %c0_99] : memref<16x384xf32, #tpu.memory_space<vmem>>, vector<2x384xf32>
    %c0_100 = arith.constant 0 : index
    %c0_101 = arith.constant 0 : index
    %226 = vector.load %arg11[%c0_100, %c0_101] : memref<2x128xf32, #tpu.memory_space<vmem>>, vector<2x128xf32>
    %cst_102 = arith.constant dense<0.000000e+00> : vector<2x384xf32>
    %227 = tpu.matmul %226, %22, %cst_102 {dimension_numbers = #tpu.dot_dimension_numbers<[1], [0], [0], [1], [0, 0, 1, 1], [], []>} : vector<2x128xf32>, vector<128x384xf32>, vector<2x384xf32> -> vector<2x384xf32>
    %228 = vector.extract_strided_slice %225 {offsets = [0, 0], sizes = [2, 128], strides = [1, 1]} : vector<2x384xf32> to vector<2x128xf32>
    %229 = vector.extract_strided_slice %227 {offsets = [0, 0], sizes = [2, 128], strides = [1, 1]} : vector<2x384xf32> to vector<2x128xf32>
    %230 = arith.addf %228, %229 : vector<2x128xf32>
    %231 = arith.negf %230 : vector<2x128xf32>
    %232 = math.exp %231 : vector<2x128xf32>
    %cst_103 = arith.constant 1.000000e+00 : f32
    %233 = vector.broadcast %cst_103 : f32 to vector<2x128xf32>
    %234 = arith.addf %233, %232 : vector<2x128xf32>
    %235 = arith.divf %233, %234 : vector<2x128xf32>
    %236 = vector.extract_strided_slice %225 {offsets = [0, 128], sizes = [2, 128], strides = [1, 1]} : vector<2x384xf32> to vector<2x128xf32>
    %237 = vector.extract_strided_slice %227 {offsets = [0, 128], sizes = [2, 128], strides = [1, 1]} : vector<2x384xf32> to vector<2x128xf32>
    %238 = arith.addf %236, %237 : vector<2x128xf32>
    %239 = arith.negf %238 : vector<2x128xf32>
    %240 = math.exp %239 : vector<2x128xf32>
    %cst_104 = arith.constant 1.000000e+00 : f32
    %241 = vector.broadcast %cst_104 : f32 to vector<2x128xf32>
    %242 = arith.addf %241, %240 : vector<2x128xf32>
    %243 = arith.divf %241, %242 : vector<2x128xf32>
    %244 = vector.extract_strided_slice %225 {offsets = [0, 256], sizes = [2, 128], strides = [1, 1]} : vector<2x384xf32> to vector<2x128xf32>
    %245 = vector.extract_strided_slice %227 {offsets = [0, 256], sizes = [2, 128], strides = [1, 1]} : vector<2x384xf32> to vector<2x128xf32>
    %246 = arith.addf %245, %28 : vector<2x128xf32>
    %247 = arith.mulf %235, %246 : vector<2x128xf32>
    %248 = arith.addf %244, %247 : vector<2x128xf32>
    %249 = math.tanh %248 : vector<2x128xf32>
    %cst_105 = arith.constant 1.000000e+00 : f32
    %250 = vector.broadcast %cst_105 : f32 to vector<2x128xf32>
    %251 = arith.subf %250, %243 : vector<2x128xf32>
    %252 = arith.mulf %251, %249 : vector<2x128xf32>
    %253 = arith.mulf %243, %226 : vector<2x128xf32>
    %254 = arith.addf %252, %253 : vector<2x128xf32>
    %c8 = arith.constant 8 : index
    %c0_106 = arith.constant 0 : index
    %255 = vector.load %arg10[%c8, %c0_106] : memref<16x384xf32, #tpu.memory_space<vmem>>, vector<2x384xf32>
    %c0_107 = arith.constant 0 : index
    %c0_108 = arith.constant 0 : index
    %256 = vector.load %arg12[%c0_107, %c0_108] : memref<2x128xf32, #tpu.memory_space<vmem>>, vector<2x128xf32>
    %cst_109 = arith.constant dense<0.000000e+00> : vector<2x384xf32>
    %257 = tpu.matmul %256, %24, %cst_109 {dimension_numbers = #tpu.dot_dimension_numbers<[1], [0], [0], [1], [0, 0, 1, 1], [], []>} : vector<2x128xf32>, vector<128x384xf32>, vector<2x384xf32> -> vector<2x384xf32>
    %258 = vector.extract_strided_slice %255 {offsets = [0, 0], sizes = [2, 128], strides = [1, 1]} : vector<2x384xf32> to vector<2x128xf32>
    %259 = vector.extract_strided_slice %257 {offsets = [0, 0], sizes = [2, 128], strides = [1, 1]} : vector<2x384xf32> to vector<2x128xf32>
    %260 = arith.addf %258, %259 : vector<2x128xf32>
    %261 = arith.negf %260 : vector<2x128xf32>
    %262 = math.exp %261 : vector<2x128xf32>
    %cst_110 = arith.constant 1.000000e+00 : f32
    %263 = vector.broadcast %cst_110 : f32 to vector<2x128xf32>
    %264 = arith.addf %263, %262 : vector<2x128xf32>
    %265 = arith.divf %263, %264 : vector<2x128xf32>
    %266 = vector.extract_strided_slice %255 {offsets = [0, 128], sizes = [2, 128], strides = [1, 1]} : vector<2x384xf32> to vector<2x128xf32>
    %267 = vector.extract_strided_slice %257 {offsets = [0, 128], sizes = [2, 128], strides = [1, 1]} : vector<2x384xf32> to vector<2x128xf32>
    %268 = arith.addf %266, %267 : vector<2x128xf32>
    %269 = arith.negf %268 : vector<2x128xf32>
    %270 = math.exp %269 : vector<2x128xf32>
    %cst_111 = arith.constant 1.000000e+00 : f32
    %271 = vector.broadcast %cst_111 : f32 to vector<2x128xf32>
    %272 = arith.addf %271, %270 : vector<2x128xf32>
    %273 = arith.divf %271, %272 : vector<2x128xf32>
    %274 = vector.extract_strided_slice %255 {offsets = [0, 256], sizes = [2, 128], strides = [1, 1]} : vector<2x384xf32> to vector<2x128xf32>
    %275 = vector.extract_strided_slice %257 {offsets = [0, 256], sizes = [2, 128], strides = [1, 1]} : vector<2x384xf32> to vector<2x128xf32>
    %276 = arith.addf %275, %32 : vector<2x128xf32>
    %277 = arith.mulf %265, %276 : vector<2x128xf32>
    %278 = arith.addf %274, %277 : vector<2x128xf32>
    %279 = math.tanh %278 : vector<2x128xf32>
    %cst_112 = arith.constant 1.000000e+00 : f32
    %280 = vector.broadcast %cst_112 : f32 to vector<2x128xf32>
    %281 = arith.subf %280, %273 : vector<2x128xf32>
    %282 = arith.mulf %281, %279 : vector<2x128xf32>
    %283 = arith.mulf %273, %256 : vector<2x128xf32>
    %284 = arith.addf %282, %283 : vector<2x128xf32>
    %c0_113 = arith.constant 0 : index
    %c0_114 = arith.constant 0 : index
    %285 = vector.load %arg11[%c0_113, %c0_114] : memref<2x128xf32, #tpu.memory_space<vmem>>, vector<2x128xf32>
    tpu.vector_store %arg11[%c0_113, %c0_114], %254 {strides = array<i32>} : memref<2x128xf32, #tpu.memory_space<vmem>>, vector<2x128xf32>,
    %c0_115 = arith.constant 0 : index
    %c0_116 = arith.constant 0 : index
    %286 = vector.load %arg12[%c0_115, %c0_116] : memref<2x128xf32, #tpu.memory_space<vmem>>, vector<2x128xf32>
    tpu.vector_store %arg12[%c0_115, %c0_116], %284 {strides = array<i32>} : memref<2x128xf32, #tpu.memory_space<vmem>>, vector<2x128xf32>,
    %c6_117 = arith.constant 6 : index
    %c0_118 = arith.constant 0 : index
    %287 = vector.load %arg7[%c6_117, %c0_118] : memref<16x128xf32, #tpu.memory_space<vmem>>, vector<2x128xf32>
    tpu.vector_store %arg7[%c6_117, %c0_118], %254 {strides = array<i32>} : memref<16x128xf32, #tpu.memory_space<vmem>>, vector<2x128xf32>,
    %c8_119 = arith.constant 8 : index
    %c0_120 = arith.constant 0 : index
    %288 = vector.load %arg8[%c8_119, %c0_120] : memref<16x128xf32, #tpu.memory_space<vmem>>, vector<2x128xf32>
    tpu.vector_store %arg8[%c8_119, %c0_120], %284 {strides = array<i32>} : memref<16x128xf32, #tpu.memory_space<vmem>>, vector<2x128xf32>,
    %c8_121 = arith.constant 8 : index
    %c0_122 = arith.constant 0 : index
    %289 = vector.load %arg9[%c8_121, %c0_122] : memref<16x384xf32, #tpu.memory_space<vmem>>, vector<2x384xf32>
    %c0_123 = arith.constant 0 : index
    %c0_124 = arith.constant 0 : index
    %290 = vector.load %arg11[%c0_123, %c0_124] : memref<2x128xf32, #tpu.memory_space<vmem>>, vector<2x128xf32>
    %cst_125 = arith.constant dense<0.000000e+00> : vector<2x384xf32>
    %291 = tpu.matmul %290, %22, %cst_125 {dimension_numbers = #tpu.dot_dimension_numbers<[1], [0], [0], [1], [0, 0, 1, 1], [], []>} : vector<2x128xf32>, vector<128x384xf32>, vector<2x384xf32> -> vector<2x384xf32>
    %292 = vector.extract_strided_slice %289 {offsets = [0, 0], sizes = [2, 128], strides = [1, 1]} : vector<2x384xf32> to vector<2x128xf32>
    %293 = vector.extract_strided_slice %291 {offsets = [0, 0], sizes = [2, 128], strides = [1, 1]} : vector<2x384xf32> to vector<2x128xf32>
    %294 = arith.addf %292, %293 : vector<2x128xf32>
    %295 = arith.negf %294 : vector<2x128xf32>
    %296 = math.exp %295 : vector<2x128xf32>
    %cst_126 = arith.constant 1.000000e+00 : f32
    %297 = vector.broadcast %cst_126 : f32 to vector<2x128xf32>
    %298 = arith.addf %297, %296 : vector<2x128xf32>
    %299 = arith.divf %297, %298 : vector<2x128xf32>
    %300 = vector.extract_strided_slice %289 {offsets = [0, 128], sizes = [2, 128], strides = [1, 1]} : vector<2x384xf32> to vector<2x128xf32>
    %301 = vector.extract_strided_slice %291 {offsets = [0, 128], sizes = [2, 128], strides = [1, 1]} : vector<2x384xf32> to vector<2x128xf32>
    %302 = arith.addf %300, %301 : vector<2x128xf32>
    %303 = arith.negf %302 : vector<2x128xf32>
    %304 = math.exp %303 : vector<2x128xf32>
    %cst_127 = arith.constant 1.000000e+00 : f32
    %305 = vector.broadcast %cst_127 : f32 to vector<2x128xf32>
    %306 = arith.addf %305, %304 : vector<2x128xf32>
    %307 = arith.divf %305, %306 : vector<2x128xf32>
    %308 = vector.extract_strided_slice %289 {offsets = [0, 256], sizes = [2, 128], strides = [1, 1]} : vector<2x384xf32> to vector<2x128xf32>
    %309 = vector.extract_strided_slice %291 {offsets = [0, 256], sizes = [2, 128], strides = [1, 1]} : vector<2x384xf32> to vector<2x128xf32>
    %310 = arith.addf %309, %28 : vector<2x128xf32>
    %311 = arith.mulf %299, %310 : vector<2x128xf32>
    %312 = arith.addf %308, %311 : vector<2x128xf32>
    %313 = math.tanh %312 : vector<2x128xf32>
    %cst_128 = arith.constant 1.000000e+00 : f32
    %314 = vector.broadcast %cst_128 : f32 to vector<2x128xf32>
    %315 = arith.subf %314, %307 : vector<2x128xf32>
    %316 = arith.mulf %315, %313 : vector<2x128xf32>
    %317 = arith.mulf %307, %290 : vector<2x128xf32>
    %318 = arith.addf %316, %317 : vector<2x128xf32>
    %c6_129 = arith.constant 6 : index
    %c0_130 = arith.constant 0 : index
    %319 = vector.load %arg10[%c6_129, %c0_130] : memref<16x384xf32, #tpu.memory_space<vmem>>, vector<2x384xf32>
    %c0_131 = arith.constant 0 : index
    %c0_132 = arith.constant 0 : index
    %320 = vector.load %arg12[%c0_131, %c0_132] : memref<2x128xf32, #tpu.memory_space<vmem>>, vector<2x128xf32>
    %cst_133 = arith.constant dense<0.000000e+00> : vector<2x384xf32>
    %321 = tpu.matmul %320, %24, %cst_133 {dimension_numbers = #tpu.dot_dimension_numbers<[1], [0], [0], [1], [0, 0, 1, 1], [], []>} : vector<2x128xf32>, vector<128x384xf32>, vector<2x384xf32> -> vector<2x384xf32>
    %322 = vector.extract_strided_slice %319 {offsets = [0, 0], sizes = [2, 128], strides = [1, 1]} : vector<2x384xf32> to vector<2x128xf32>
    %323 = vector.extract_strided_slice %321 {offsets = [0, 0], sizes = [2, 128], strides = [1, 1]} : vector<2x384xf32> to vector<2x128xf32>
    %324 = arith.addf %322, %323 : vector<2x128xf32>
    %325 = arith.negf %324 : vector<2x128xf32>
    %326 = math.exp %325 : vector<2x128xf32>
    %cst_134 = arith.constant 1.000000e+00 : f32
    %327 = vector.broadcast %cst_134 : f32 to vector<2x128xf32>
    %328 = arith.addf %327, %326 : vector<2x128xf32>
    %329 = arith.divf %327, %328 : vector<2x128xf32>
    %330 = vector.extract_strided_slice %319 {offsets = [0, 128], sizes = [2, 128], strides = [1, 1]} : vector<2x384xf32> to vector<2x128xf32>
    %331 = vector.extract_strided_slice %321 {offsets = [0, 128], sizes = [2, 128], strides = [1, 1]} : vector<2x384xf32> to vector<2x128xf32>
    %332 = arith.addf %330, %331 : vector<2x128xf32>
    %333 = arith.negf %332 : vector<2x128xf32>
    %334 = math.exp %333 : vector<2x128xf32>
    %cst_135 = arith.constant 1.000000e+00 : f32
    %335 = vector.broadcast %cst_135 : f32 to vector<2x128xf32>
    %336 = arith.addf %335, %334 : vector<2x128xf32>
    %337 = arith.divf %335, %336 : vector<2x128xf32>
    %338 = vector.extract_strided_slice %319 {offsets = [0, 256], sizes = [2, 128], strides = [1, 1]} : vector<2x384xf32> to vector<2x128xf32>
    %339 = vector.extract_strided_slice %321 {offsets = [0, 256], sizes = [2, 128], strides = [1, 1]} : vector<2x384xf32> to vector<2x128xf32>
    %340 = arith.addf %339, %32 : vector<2x128xf32>
    %341 = arith.mulf %329, %340 : vector<2x128xf32>
    %342 = arith.addf %338, %341 : vector<2x128xf32>
    %343 = math.tanh %342 : vector<2x128xf32>
    %cst_136 = arith.constant 1.000000e+00 : f32
    %344 = vector.broadcast %cst_136 : f32 to vector<2x128xf32>
    %345 = arith.subf %344, %337 : vector<2x128xf32>
    %346 = arith.mulf %345, %343 : vector<2x128xf32>
    %347 = arith.mulf %337, %320 : vector<2x128xf32>
    %348 = arith.addf %346, %347 : vector<2x128xf32>
    %c0_137 = arith.constant 0 : index
    %c0_138 = arith.constant 0 : index
    %349 = vector.load %arg11[%c0_137, %c0_138] : memref<2x128xf32, #tpu.memory_space<vmem>>, vector<2x128xf32>
    tpu.vector_store %arg11[%c0_137, %c0_138], %318 {strides = array<i32>} : memref<2x128xf32, #tpu.memory_space<vmem>>, vector<2x128xf32>,
    %c0_139 = arith.constant 0 : index
    %c0_140 = arith.constant 0 : index
    %350 = vector.load %arg12[%c0_139, %c0_140] : memref<2x128xf32, #tpu.memory_space<vmem>>, vector<2x128xf32>
    tpu.vector_store %arg12[%c0_139, %c0_140], %348 {strides = array<i32>} : memref<2x128xf32, #tpu.memory_space<vmem>>, vector<2x128xf32>,
    %c8_141 = arith.constant 8 : index
    %c0_142 = arith.constant 0 : index
    %351 = vector.load %arg7[%c8_141, %c0_142] : memref<16x128xf32, #tpu.memory_space<vmem>>, vector<2x128xf32>
    tpu.vector_store %arg7[%c8_141, %c0_142], %318 {strides = array<i32>} : memref<16x128xf32, #tpu.memory_space<vmem>>, vector<2x128xf32>,
    %c6_143 = arith.constant 6 : index
    %c0_144 = arith.constant 0 : index
    %352 = vector.load %arg8[%c6_143, %c0_144] : memref<16x128xf32, #tpu.memory_space<vmem>>, vector<2x128xf32>
    tpu.vector_store %arg8[%c6_143, %c0_144], %348 {strides = array<i32>} : memref<16x128xf32, #tpu.memory_space<vmem>>, vector<2x128xf32>,
    %c10_145 = arith.constant 10 : index
    %c0_146 = arith.constant 0 : index
    %353 = vector.load %arg9[%c10_145, %c0_146] : memref<16x384xf32, #tpu.memory_space<vmem>>, vector<2x384xf32>
    %c0_147 = arith.constant 0 : index
    %c0_148 = arith.constant 0 : index
    %354 = vector.load %arg11[%c0_147, %c0_148] : memref<2x128xf32, #tpu.memory_space<vmem>>, vector<2x128xf32>
    %cst_149 = arith.constant dense<0.000000e+00> : vector<2x384xf32>
    %355 = tpu.matmul %354, %22, %cst_149 {dimension_numbers = #tpu.dot_dimension_numbers<[1], [0], [0], [1], [0, 0, 1, 1], [], []>} : vector<2x128xf32>, vector<128x384xf32>, vector<2x384xf32> -> vector<2x384xf32>
    %356 = vector.extract_strided_slice %353 {offsets = [0, 0], sizes = [2, 128], strides = [1, 1]} : vector<2x384xf32> to vector<2x128xf32>
    %357 = vector.extract_strided_slice %355 {offsets = [0, 0], sizes = [2, 128], strides = [1, 1]} : vector<2x384xf32> to vector<2x128xf32>
    %358 = arith.addf %356, %357 : vector<2x128xf32>
    %359 = arith.negf %358 : vector<2x128xf32>
    %360 = math.exp %359 : vector<2x128xf32>
    %cst_150 = arith.constant 1.000000e+00 : f32
    %361 = vector.broadcast %cst_150 : f32 to vector<2x128xf32>
    %362 = arith.addf %361, %360 : vector<2x128xf32>
    %363 = arith.divf %361, %362 : vector<2x128xf32>
    %364 = vector.extract_strided_slice %353 {offsets = [0, 128], sizes = [2, 128], strides = [1, 1]} : vector<2x384xf32> to vector<2x128xf32>
    %365 = vector.extract_strided_slice %355 {offsets = [0, 128], sizes = [2, 128], strides = [1, 1]} : vector<2x384xf32> to vector<2x128xf32>
    %366 = arith.addf %364, %365 : vector<2x128xf32>
    %367 = arith.negf %366 : vector<2x128xf32>
    %368 = math.exp %367 : vector<2x128xf32>
    %cst_151 = arith.constant 1.000000e+00 : f32
    %369 = vector.broadcast %cst_151 : f32 to vector<2x128xf32>
    %370 = arith.addf %369, %368 : vector<2x128xf32>
    %371 = arith.divf %369, %370 : vector<2x128xf32>
    %372 = vector.extract_strided_slice %353 {offsets = [0, 256], sizes = [2, 128], strides = [1, 1]} : vector<2x384xf32> to vector<2x128xf32>
    %373 = vector.extract_strided_slice %355 {offsets = [0, 256], sizes = [2, 128], strides = [1, 1]} : vector<2x384xf32> to vector<2x128xf32>
    %374 = arith.addf %373, %28 : vector<2x128xf32>
    %375 = arith.mulf %363, %374 : vector<2x128xf32>
    %376 = arith.addf %372, %375 : vector<2x128xf32>
    %377 = math.tanh %376 : vector<2x128xf32>
    %cst_152 = arith.constant 1.000000e+00 : f32
    %378 = vector.broadcast %cst_152 : f32 to vector<2x128xf32>
    %379 = arith.subf %378, %371 : vector<2x128xf32>
    %380 = arith.mulf %379, %377 : vector<2x128xf32>
    %381 = arith.mulf %371, %354 : vector<2x128xf32>
    %382 = arith.addf %380, %381 : vector<2x128xf32>
    %c4_153 = arith.constant 4 : index
    %c0_154 = arith.constant 0 : index
    %383 = vector.load %arg10[%c4_153, %c0_154] : memref<16x384xf32, #tpu.memory_space<vmem>>, vector<2x384xf32>
    %c0_155 = arith.constant 0 : index
    %c0_156 = arith.constant 0 : index
    %384 = vector.load %arg12[%c0_155, %c0_156] : memref<2x128xf32, #tpu.memory_space<vmem>>, vector<2x128xf32>
    %cst_157 = arith.constant dense<0.000000e+00> : vector<2x384xf32>
    %385 = tpu.matmul %384, %24, %cst_157 {dimension_numbers = #tpu.dot_dimension_numbers<[1], [0], [0], [1], [0, 0, 1, 1], [], []>} : vector<2x128xf32>, vector<128x384xf32>, vector<2x384xf32> -> vector<2x384xf32>
    %386 = vector.extract_strided_slice %383 {offsets = [0, 0], sizes = [2, 128], strides = [1, 1]} : vector<2x384xf32> to vector<2x128xf32>
    %387 = vector.extract_strided_slice %385 {offsets = [0, 0], sizes = [2, 128], strides = [1, 1]} : vector<2x384xf32> to vector<2x128xf32>
    %388 = arith.addf %386, %387 : vector<2x128xf32>
    %389 = arith.negf %388 : vector<2x128xf32>
    %390 = math.exp %389 : vector<2x128xf32>
    %cst_158 = arith.constant 1.000000e+00 : f32
    %391 = vector.broadcast %cst_158 : f32 to vector<2x128xf32>
    %392 = arith.addf %391, %390 : vector<2x128xf32>
    %393 = arith.divf %391, %392 : vector<2x128xf32>
    %394 = vector.extract_strided_slice %383 {offsets = [0, 128], sizes = [2, 128], strides = [1, 1]} : vector<2x384xf32> to vector<2x128xf32>
    %395 = vector.extract_strided_slice %385 {offsets = [0, 128], sizes = [2, 128], strides = [1, 1]} : vector<2x384xf32> to vector<2x128xf32>
    %396 = arith.addf %394, %395 : vector<2x128xf32>
    %397 = arith.negf %396 : vector<2x128xf32>
    %398 = math.exp %397 : vector<2x128xf32>
    %cst_159 = arith.constant 1.000000e+00 : f32
    %399 = vector.broadcast %cst_159 : f32 to vector<2x128xf32>
    %400 = arith.addf %399, %398 : vector<2x128xf32>
    %401 = arith.divf %399, %400 : vector<2x128xf32>
    %402 = vector.extract_strided_slice %383 {offsets = [0, 256], sizes = [2, 128], strides = [1, 1]} : vector<2x384xf32> to vector<2x128xf32>
    %403 = vector.extract_strided_slice %385 {offsets = [0, 256], sizes = [2, 128], strides = [1, 1]} : vector<2x384xf32> to vector<2x128xf32>
    %404 = arith.addf %403, %32 : vector<2x128xf32>
    %405 = arith.mulf %393, %404 : vector<2x128xf32>
    %406 = arith.addf %402, %405 : vector<2x128xf32>
    %407 = math.tanh %406 : vector<2x128xf32>
    %cst_160 = arith.constant 1.000000e+00 : f32
    %408 = vector.broadcast %cst_160 : f32 to vector<2x128xf32>
    %409 = arith.subf %408, %401 : vector<2x128xf32>
    %410 = arith.mulf %409, %407 : vector<2x128xf32>
    %411 = arith.mulf %401, %384 : vector<2x128xf32>
    %412 = arith.addf %410, %411 : vector<2x128xf32>
    %c0_161 = arith.constant 0 : index
    %c0_162 = arith.constant 0 : index
    %413 = vector.load %arg11[%c0_161, %c0_162] : memref<2x128xf32, #tpu.memory_space<vmem>>, vector<2x128xf32>
    tpu.vector_store %arg11[%c0_161, %c0_162], %382 {strides = array<i32>} : memref<2x128xf32, #tpu.memory_space<vmem>>, vector<2x128xf32>,
    %c0_163 = arith.constant 0 : index
    %c0_164 = arith.constant 0 : index
    %414 = vector.load %arg12[%c0_163, %c0_164] : memref<2x128xf32, #tpu.memory_space<vmem>>, vector<2x128xf32>
    tpu.vector_store %arg12[%c0_163, %c0_164], %412 {strides = array<i32>} : memref<2x128xf32, #tpu.memory_space<vmem>>, vector<2x128xf32>,
    %c10_165 = arith.constant 10 : index
    %c0_166 = arith.constant 0 : index
    %415 = vector.load %arg7[%c10_165, %c0_166] : memref<16x128xf32, #tpu.memory_space<vmem>>, vector<2x128xf32>
    tpu.vector_store %arg7[%c10_165, %c0_166], %382 {strides = array<i32>} : memref<16x128xf32, #tpu.memory_space<vmem>>, vector<2x128xf32>,
    %c4_167 = arith.constant 4 : index
    %c0_168 = arith.constant 0 : index
    %416 = vector.load %arg8[%c4_167, %c0_168] : memref<16x128xf32, #tpu.memory_space<vmem>>, vector<2x128xf32>
    tpu.vector_store %arg8[%c4_167, %c0_168], %412 {strides = array<i32>} : memref<16x128xf32, #tpu.memory_space<vmem>>, vector<2x128xf32>,
    %c12_169 = arith.constant 12 : index
    %c0_170 = arith.constant 0 : index
    %417 = vector.load %arg9[%c12_169, %c0_170] : memref<16x384xf32, #tpu.memory_space<vmem>>, vector<2x384xf32>
    %c0_171 = arith.constant 0 : index
    %c0_172 = arith.constant 0 : index
    %418 = vector.load %arg11[%c0_171, %c0_172] : memref<2x128xf32, #tpu.memory_space<vmem>>, vector<2x128xf32>
    %cst_173 = arith.constant dense<0.000000e+00> : vector<2x384xf32>
    %419 = tpu.matmul %418, %22, %cst_173 {dimension_numbers = #tpu.dot_dimension_numbers<[1], [0], [0], [1], [0, 0, 1, 1], [], []>} : vector<2x128xf32>, vector<128x384xf32>, vector<2x384xf32> -> vector<2x384xf32>
    %420 = vector.extract_strided_slice %417 {offsets = [0, 0], sizes = [2, 128], strides = [1, 1]} : vector<2x384xf32> to vector<2x128xf32>
    %421 = vector.extract_strided_slice %419 {offsets = [0, 0], sizes = [2, 128], strides = [1, 1]} : vector<2x384xf32> to vector<2x128xf32>
    %422 = arith.addf %420, %421 : vector<2x128xf32>
    %423 = arith.negf %422 : vector<2x128xf32>
    %424 = math.exp %423 : vector<2x128xf32>
    %cst_174 = arith.constant 1.000000e+00 : f32
    %425 = vector.broadcast %cst_174 : f32 to vector<2x128xf32>
    %426 = arith.addf %425, %424 : vector<2x128xf32>
    %427 = arith.divf %425, %426 : vector<2x128xf32>
    %428 = vector.extract_strided_slice %417 {offsets = [0, 128], sizes = [2, 128], strides = [1, 1]} : vector<2x384xf32> to vector<2x128xf32>
    %429 = vector.extract_strided_slice %419 {offsets = [0, 128], sizes = [2, 128], strides = [1, 1]} : vector<2x384xf32> to vector<2x128xf32>
    %430 = arith.addf %428, %429 : vector<2x128xf32>
    %431 = arith.negf %430 : vector<2x128xf32>
    %432 = math.exp %431 : vector<2x128xf32>
    %cst_175 = arith.constant 1.000000e+00 : f32
    %433 = vector.broadcast %cst_175 : f32 to vector<2x128xf32>
    %434 = arith.addf %433, %432 : vector<2x128xf32>
    %435 = arith.divf %433, %434 : vector<2x128xf32>
    %436 = vector.extract_strided_slice %417 {offsets = [0, 256], sizes = [2, 128], strides = [1, 1]} : vector<2x384xf32> to vector<2x128xf32>
    %437 = vector.extract_strided_slice %419 {offsets = [0, 256], sizes = [2, 128], strides = [1, 1]} : vector<2x384xf32> to vector<2x128xf32>
    %438 = arith.addf %437, %28 : vector<2x128xf32>
    %439 = arith.mulf %427, %438 : vector<2x128xf32>
    %440 = arith.addf %436, %439 : vector<2x128xf32>
    %441 = math.tanh %440 : vector<2x128xf32>
    %cst_176 = arith.constant 1.000000e+00 : f32
    %442 = vector.broadcast %cst_176 : f32 to vector<2x128xf32>
    %443 = arith.subf %442, %435 : vector<2x128xf32>
    %444 = arith.mulf %443, %441 : vector<2x128xf32>
    %445 = arith.mulf %435, %418 : vector<2x128xf32>
    %446 = arith.addf %444, %445 : vector<2x128xf32>
    %c2_177 = arith.constant 2 : index
    %c0_178 = arith.constant 0 : index
    %447 = vector.load %arg10[%c2_177, %c0_178] : memref<16x384xf32, #tpu.memory_space<vmem>>, vector<2x384xf32>
    %c0_179 = arith.constant 0 : index
    %c0_180 = arith.constant 0 : index
    %448 = vector.load %arg12[%c0_179, %c0_180] : memref<2x128xf32, #tpu.memory_space<vmem>>, vector<2x128xf32>
    %cst_181 = arith.constant dense<0.000000e+00> : vector<2x384xf32>
    %449 = tpu.matmul %448, %24, %cst_181 {dimension_numbers = #tpu.dot_dimension_numbers<[1], [0], [0], [1], [0, 0, 1, 1], [], []>} : vector<2x128xf32>, vector<128x384xf32>, vector<2x384xf32> -> vector<2x384xf32>
    %450 = vector.extract_strided_slice %447 {offsets = [0, 0], sizes = [2, 128], strides = [1, 1]} : vector<2x384xf32> to vector<2x128xf32>
    %451 = vector.extract_strided_slice %449 {offsets = [0, 0], sizes = [2, 128], strides = [1, 1]} : vector<2x384xf32> to vector<2x128xf32>
    %452 = arith.addf %450, %451 : vector<2x128xf32>
    %453 = arith.negf %452 : vector<2x128xf32>
    %454 = math.exp %453 : vector<2x128xf32>
    %cst_182 = arith.constant 1.000000e+00 : f32
    %455 = vector.broadcast %cst_182 : f32 to vector<2x128xf32>
    %456 = arith.addf %455, %454 : vector<2x128xf32>
    %457 = arith.divf %455, %456 : vector<2x128xf32>
    %458 = vector.extract_strided_slice %447 {offsets = [0, 128], sizes = [2, 128], strides = [1, 1]} : vector<2x384xf32> to vector<2x128xf32>
    %459 = vector.extract_strided_slice %449 {offsets = [0, 128], sizes = [2, 128], strides = [1, 1]} : vector<2x384xf32> to vector<2x128xf32>
    %460 = arith.addf %458, %459 : vector<2x128xf32>
    %461 = arith.negf %460 : vector<2x128xf32>
    %462 = math.exp %461 : vector<2x128xf32>
    %cst_183 = arith.constant 1.000000e+00 : f32
    %463 = vector.broadcast %cst_183 : f32 to vector<2x128xf32>
    %464 = arith.addf %463, %462 : vector<2x128xf32>
    %465 = arith.divf %463, %464 : vector<2x128xf32>
    %466 = vector.extract_strided_slice %447 {offsets = [0, 256], sizes = [2, 128], strides = [1, 1]} : vector<2x384xf32> to vector<2x128xf32>
    %467 = vector.extract_strided_slice %449 {offsets = [0, 256], sizes = [2, 128], strides = [1, 1]} : vector<2x384xf32> to vector<2x128xf32>
    %468 = arith.addf %467, %32 : vector<2x128xf32>
    %469 = arith.mulf %457, %468 : vector<2x128xf32>
    %470 = arith.addf %466, %469 : vector<2x128xf32>
    %471 = math.tanh %470 : vector<2x128xf32>
    %cst_184 = arith.constant 1.000000e+00 : f32
    %472 = vector.broadcast %cst_184 : f32 to vector<2x128xf32>
    %473 = arith.subf %472, %465 : vector<2x128xf32>
    %474 = arith.mulf %473, %471 : vector<2x128xf32>
    %475 = arith.mulf %465, %448 : vector<2x128xf32>
    %476 = arith.addf %474, %475 : vector<2x128xf32>
    %c0_185 = arith.constant 0 : index
    %c0_186 = arith.constant 0 : index
    %477 = vector.load %arg11[%c0_185, %c0_186] : memref<2x128xf32, #tpu.memory_space<vmem>>, vector<2x128xf32>
    tpu.vector_store %arg11[%c0_185, %c0_186], %446 {strides = array<i32>} : memref<2x128xf32, #tpu.memory_space<vmem>>, vector<2x128xf32>,
    %c0_187 = arith.constant 0 : index
    %c0_188 = arith.constant 0 : index
    %478 = vector.load %arg12[%c0_187, %c0_188] : memref<2x128xf32, #tpu.memory_space<vmem>>, vector<2x128xf32>
    tpu.vector_store %arg12[%c0_187, %c0_188], %476 {strides = array<i32>} : memref<2x128xf32, #tpu.memory_space<vmem>>, vector<2x128xf32>,
    %c12_189 = arith.constant 12 : index
    %c0_190 = arith.constant 0 : index
    %479 = vector.load %arg7[%c12_189, %c0_190] : memref<16x128xf32, #tpu.memory_space<vmem>>, vector<2x128xf32>
    tpu.vector_store %arg7[%c12_189, %c0_190], %446 {strides = array<i32>} : memref<16x128xf32, #tpu.memory_space<vmem>>, vector<2x128xf32>,
    %c2_191 = arith.constant 2 : index
    %c0_192 = arith.constant 0 : index
    %480 = vector.load %arg8[%c2_191, %c0_192] : memref<16x128xf32, #tpu.memory_space<vmem>>, vector<2x128xf32>
    tpu.vector_store %arg8[%c2_191, %c0_192], %476 {strides = array<i32>} : memref<16x128xf32, #tpu.memory_space<vmem>>, vector<2x128xf32>,
    %c14_193 = arith.constant 14 : index
    %c0_194 = arith.constant 0 : index
    %481 = vector.load %arg9[%c14_193, %c0_194] : memref<16x384xf32, #tpu.memory_space<vmem>>, vector<2x384xf32>
    %c0_195 = arith.constant 0 : index
    %c0_196 = arith.constant 0 : index
    %482 = vector.load %arg11[%c0_195, %c0_196] : memref<2x128xf32, #tpu.memory_space<vmem>>, vector<2x128xf32>
    %cst_197 = arith.constant dense<0.000000e+00> : vector<2x384xf32>
    %483 = tpu.matmul %482, %22, %cst_197 {dimension_numbers = #tpu.dot_dimension_numbers<[1], [0], [0], [1], [0, 0, 1, 1], [], []>} : vector<2x128xf32>, vector<128x384xf32>, vector<2x384xf32> -> vector<2x384xf32>
    %484 = vector.extract_strided_slice %481 {offsets = [0, 0], sizes = [2, 128], strides = [1, 1]} : vector<2x384xf32> to vector<2x128xf32>
    %485 = vector.extract_strided_slice %483 {offsets = [0, 0], sizes = [2, 128], strides = [1, 1]} : vector<2x384xf32> to vector<2x128xf32>
    %486 = arith.addf %484, %485 : vector<2x128xf32>
    %487 = arith.negf %486 : vector<2x128xf32>
    %488 = math.exp %487 : vector<2x128xf32>
    %cst_198 = arith.constant 1.000000e+00 : f32
    %489 = vector.broadcast %cst_198 : f32 to vector<2x128xf32>
    %490 = arith.addf %489, %488 : vector<2x128xf32>
    %491 = arith.divf %489, %490 : vector<2x128xf32>
    %492 = vector.extract_strided_slice %481 {offsets = [0, 128], sizes = [2, 128], strides = [1, 1]} : vector<2x384xf32> to vector<2x128xf32>
    %493 = vector.extract_strided_slice %483 {offsets = [0, 128], sizes = [2, 128], strides = [1, 1]} : vector<2x384xf32> to vector<2x128xf32>
    %494 = arith.addf %492, %493 : vector<2x128xf32>
    %495 = arith.negf %494 : vector<2x128xf32>
    %496 = math.exp %495 : vector<2x128xf32>
    %cst_199 = arith.constant 1.000000e+00 : f32
    %497 = vector.broadcast %cst_199 : f32 to vector<2x128xf32>
    %498 = arith.addf %497, %496 : vector<2x128xf32>
    %499 = arith.divf %497, %498 : vector<2x128xf32>
    %500 = vector.extract_strided_slice %481 {offsets = [0, 256], sizes = [2, 128], strides = [1, 1]} : vector<2x384xf32> to vector<2x128xf32>
    %501 = vector.extract_strided_slice %483 {offsets = [0, 256], sizes = [2, 128], strides = [1, 1]} : vector<2x384xf32> to vector<2x128xf32>
    %502 = arith.addf %501, %28 : vector<2x128xf32>
    %503 = arith.mulf %491, %502 : vector<2x128xf32>
    %504 = arith.addf %500, %503 : vector<2x128xf32>
    %505 = math.tanh %504 : vector<2x128xf32>
    %cst_200 = arith.constant 1.000000e+00 : f32
    %506 = vector.broadcast %cst_200 : f32 to vector<2x128xf32>
    %507 = arith.subf %506, %499 : vector<2x128xf32>
    %508 = arith.mulf %507, %505 : vector<2x128xf32>
    %509 = arith.mulf %499, %482 : vector<2x128xf32>
    %510 = arith.addf %508, %509 : vector<2x128xf32>
    %c0_201 = arith.constant 0 : index
    %c0_202 = arith.constant 0 : index
    %511 = vector.load %arg10[%c0_201, %c0_202] : memref<16x384xf32, #tpu.memory_space<vmem>>, vector<2x384xf32>
    %c0_203 = arith.constant 0 : index
    %c0_204 = arith.constant 0 : index
    %512 = vector.load %arg12[%c0_203, %c0_204] : memref<2x128xf32, #tpu.memory_space<vmem>>, vector<2x128xf32>
    %cst_205 = arith.constant dense<0.000000e+00> : vector<2x384xf32>
    %513 = tpu.matmul %512, %24, %cst_205 {dimension_numbers = #tpu.dot_dimension_numbers<[1], [0], [0], [1], [0, 0, 1, 1], [], []>} : vector<2x128xf32>, vector<128x384xf32>, vector<2x384xf32> -> vector<2x384xf32>
    %514 = vector.extract_strided_slice %511 {offsets = [0, 0], sizes = [2, 128], strides = [1, 1]} : vector<2x384xf32> to vector<2x128xf32>
    %515 = vector.extract_strided_slice %513 {offsets = [0, 0], sizes = [2, 128], strides = [1, 1]} : vector<2x384xf32> to vector<2x128xf32>
    %516 = arith.addf %514, %515 : vector<2x128xf32>
    %517 = arith.negf %516 : vector<2x128xf32>
    %518 = math.exp %517 : vector<2x128xf32>
    %cst_206 = arith.constant 1.000000e+00 : f32
    %519 = vector.broadcast %cst_206 : f32 to vector<2x128xf32>
    %520 = arith.addf %519, %518 : vector<2x128xf32>
    %521 = arith.divf %519, %520 : vector<2x128xf32>
    %522 = vector.extract_strided_slice %511 {offsets = [0, 128], sizes = [2, 128], strides = [1, 1]} : vector<2x384xf32> to vector<2x128xf32>
    %523 = vector.extract_strided_slice %513 {offsets = [0, 128], sizes = [2, 128], strides = [1, 1]} : vector<2x384xf32> to vector<2x128xf32>
    %524 = arith.addf %522, %523 : vector<2x128xf32>
    %525 = arith.negf %524 : vector<2x128xf32>
    %526 = math.exp %525 : vector<2x128xf32>
    %cst_207 = arith.constant 1.000000e+00 : f32
    %527 = vector.broadcast %cst_207 : f32 to vector<2x128xf32>
    %528 = arith.addf %527, %526 : vector<2x128xf32>
    %529 = arith.divf %527, %528 : vector<2x128xf32>
    %530 = vector.extract_strided_slice %511 {offsets = [0, 256], sizes = [2, 128], strides = [1, 1]} : vector<2x384xf32> to vector<2x128xf32>
    %531 = vector.extract_strided_slice %513 {offsets = [0, 256], sizes = [2, 128], strides = [1, 1]} : vector<2x384xf32> to vector<2x128xf32>
    %532 = arith.addf %531, %32 : vector<2x128xf32>
    %533 = arith.mulf %521, %532 : vector<2x128xf32>
    %534 = arith.addf %530, %533 : vector<2x128xf32>
    %535 = math.tanh %534 : vector<2x128xf32>
    %cst_208 = arith.constant 1.000000e+00 : f32
    %536 = vector.broadcast %cst_208 : f32 to vector<2x128xf32>
    %537 = arith.subf %536, %529 : vector<2x128xf32>
    %538 = arith.mulf %537, %535 : vector<2x128xf32>
    %539 = arith.mulf %529, %512 : vector<2x128xf32>
    %540 = arith.addf %538, %539 : vector<2x128xf32>
    %c0_209 = arith.constant 0 : index
    %c0_210 = arith.constant 0 : index
    %541 = vector.load %arg11[%c0_209, %c0_210] : memref<2x128xf32, #tpu.memory_space<vmem>>, vector<2x128xf32>
    tpu.vector_store %arg11[%c0_209, %c0_210], %510 {strides = array<i32>} : memref<2x128xf32, #tpu.memory_space<vmem>>, vector<2x128xf32>,
    %c0_211 = arith.constant 0 : index
    %c0_212 = arith.constant 0 : index
    %542 = vector.load %arg12[%c0_211, %c0_212] : memref<2x128xf32, #tpu.memory_space<vmem>>, vector<2x128xf32>
    tpu.vector_store %arg12[%c0_211, %c0_212], %540 {strides = array<i32>} : memref<2x128xf32, #tpu.memory_space<vmem>>, vector<2x128xf32>,
    %c14_213 = arith.constant 14 : index
    %c0_214 = arith.constant 0 : index
    %543 = vector.load %arg7[%c14_213, %c0_214] : memref<16x128xf32, #tpu.memory_space<vmem>>, vector<2x128xf32>
    tpu.vector_store %arg7[%c14_213, %c0_214], %510 {strides = array<i32>} : memref<16x128xf32, #tpu.memory_space<vmem>>, vector<2x128xf32>,
    %c0_215 = arith.constant 0 : index
    %c0_216 = arith.constant 0 : index
    %544 = vector.load %arg8[%c0_215, %c0_216] : memref<16x128xf32, #tpu.memory_space<vmem>>, vector<2x128xf32>
    tpu.vector_store %arg8[%c0_215, %c0_216], %540 {strides = array<i32>} : memref<16x128xf32, #tpu.memory_space<vmem>>, vector<2x128xf32>,
    return
  }
  func.func @transform_0(%arg0: i32) -> (i32, i32) {
    %c0_i32 = arith.constant 0 : i32
    %c0_i32_0 = arith.constant 0 : i32
    return %arg0, %c0_i32 : i32, i32
  }
  func.func @transform_1(%arg0: i32) -> (i32, i32) {
    %c0_i32 = arith.constant 0 : i32
    %0 = arith.subi %c0_i32, %arg0 : i32
    %c0_i32_0 = arith.constant 0 : i32
    %c0_i32_1 = arith.constant 0 : i32
    return %0, %c0_i32_0 : i32, i32
  }
  func.func @transform_2(%arg0: i32) -> (i32, i32, i32) {
    %c0_i32 = arith.constant 0 : i32
    %c0_i32_0 = arith.constant 0 : i32
    %c0_i32_1 = arith.constant 0 : i32
    %c0_i32_2 = arith.constant 0 : i32
    return %c0_i32, %c0_i32_0, %c0_i32_1 : i32, i32, i32
  }
  func.func @transform_3(%arg0: i32) -> (i32, i32, i32) {
    %c0_i32 = arith.constant 0 : i32
    %c0_i32_0 = arith.constant 0 : i32
    %c0_i32_1 = arith.constant 0 : i32
    %c0_i32_2 = arith.constant 0 : i32
    return %c0_i32, %c0_i32_0, %c0_i32_1 : i32, i32, i32
  }
  func.func @transform_4(%arg0: i32) -> (i32, i32, i32) {
    %c0_i32 = arith.constant 0 : i32
    %c0_i32_0 = arith.constant 0 : i32
    %c0_i32_1 = arith.constant 0 : i32
    %c0_i32_2 = arith.constant 0 : i32
    return %c0_i32, %c0_i32_0, %c0_i32_1 : i32, i32, i32
  }
  func.func @transform_5(%arg0: i32) -> (i32, i32, i32) {
    %c0_i32 = arith.constant 0 : i32
    %c0_i32_0 = arith.constant 0 : i32
    %c0_i32_1 = arith.constant 0 : i32
    %c0_i32_2 = arith.constant 0 : i32
    return %c0_i32, %c0_i32_0, %c0_i32_1 : i32, i32, i32
  }
  func.func @transform_6(%arg0: i32) -> (i32, i32) {
    %c0_i32 = arith.constant 0 : i32
    %c0_i32_0 = arith.constant 0 : i32
    return %arg0, %c0_i32 : i32, i32
  }
  func.func @transform_7(%arg0: i32) -> (i32, i32) {
    %c0_i32 = arith.constant 0 : i32
    %0 = arith.subi %c0_i32, %arg0 : i32
    %c0_i32_0 = arith.constant 0 : i32
    %c0_i32_1 = arith.constant 0 : i32
    return %0, %c0_i32_0 : i32, i32
  }
}

</mosaic_0001>

<bundles_post_ra>
// kernel: tpu_custom_call.1
= control target key start
LH: loop header
LB: loop body
LE: loop exit
PB: predicated region body
PF: predicated region fallthrough
CT: control target
= control target key end

     0   :  { %13 = vsyncpa [#allocation7], 0  ;;  %s6543_s0 = inlined_call_operand.hbm [shape: f32[16,16], index: 0, kind: input, shape index: {}]   ;;  %s6544_s1 = inlined_call_operand.hbm [shape: f32[16,16], index: 1, kind: input, shape index: {}]   ;;  %s6545_s2 = inlined_call_operand.hbm [shape: f32[2,16,384], index: 2, kind: input, shape index: {}]   ;;  %s6546_s3 = inlined_call_operand.hbm [shape: f32[2,128,384], index: 3, kind: input, shape index: {}]   ;;  %s6547_s4 = inlined_call_operand.vmem [shape: f32[2,1,384], index: 4, kind: input, shape index: {}]   ;;  %s6548_s5 = inlined_call_operand.vmem [shape: f32[2,1,128], index: 5, kind: input, shape index: {}]   ;;  %s6549_s6 = inlined_call_operand.hbm [shape: f32[16,128], index: 6, kind: output, shape index: {0}]   ;;  %s6550_s7 = inlined_call_operand.hbm [shape: f32[16,128], index: 7, kind: output, shape index: {1}]  }
   0x1   :  { %14 = vsyncpa [#allocation10], 0 }
   0x2   :  { %15 = vsyncpa [#allocation13], 0 }
   0x3   :  { %16 = vsyncpa [#allocation8], 0 }
   0x4   :  { %17 = vsyncpa [#allocation16], 0  ;;  %s5607_s24 = smov [#allocation9]   ;;  %s5608_s26 = smov [#allocation6]  }
   0x5   :  { %s39_s25 = sshll.u32 %s5607_s24, 4  ;;  %s23_s27 = sshll.u32 %s5608_s26, 4  ;;  %s40_s25 = int_to_ptr.vmem [resolvable:$true] %s39_s25  ;;  %s5660_s27 = int_to_ptr.vmem [resolvable:$true] %s23_s27 }
   0x6   :  { %s5465_s30 = scalar_lea.hbm %s6544_s1, 256 }
   0x7   :  { %p5466_p0 = scmp.ne.s32.totalorder %s6544_s1, %s5465_s30  ;;  %p5469_p1 = scmp.lt.u32.totalorder %s5465_s30, %s6544_s1 }
   0x9   :  { %p5471_p2 = pnand %p5469_p1, %p5466_p0 }
   0xb   :  { %5474 = shalt.err (!%p5471_p2)
}
   0xc   :  { %s5475_s12 = scalar_lea.vmem %s40_s25, 256  ;;  %p5480_p4 = scmp.lt.s32.totalorder %s40_s25, %s40_s25 }
   0xd   :  { %p5476_p3 = scmp.ne.s32.totalorder %s40_s25, %s5475_s12  ;;  %p5481_p5 = scmp.lt.s32.totalorder %s5475_s12, %s5475_s12 }
   0xf   :  { %p5482_p6 = por %p5481_p5, %p5480_p4 }
  0x11   :  { %p5483_p7 = pnand %p5482_p6, %p5476_p3 }
  0x13   :  { %5486 = shalt.err (!%p5483_p7)
}
  0x14   :  { %s5609_s13 = smov 128   ;;  %s5610_s14 = smov 8  }
  0x15   :  { %45 = dma.hbm_to_vmem [thread:$0]  %s6544_s1, 256, %s40_s25, [#allocation10], %s5609_s13, %s5609_s13, %s5610_s14  }
  0x16   :  { %s5487_s19 = scalar_lea.hbm %s6543_s0, 256 }
  0x17   :  { %p5488_p8 = scmp.ne.s32.totalorder %s6543_s0, %s5487_s19  ;;  %p5491_p9 = scmp.lt.u32.totalorder %s5487_s19, %s6543_s0 }
  0x19   :  { %p5493_p10 = pnand %p5491_p9, %p5488_p8 }
  0x1b   :  { %5496 = shalt.err (!%p5493_p10)
}
  0x1c   :  { %s5497_s24 = scalar_lea.vmem %s5660_s27, 256  ;;  %p5502_p12 = scmp.lt.s32.totalorder %s5660_s27, %s5660_s27 }
  0x1d   :  { %p5498_p11 = scmp.ne.s32.totalorder %s5660_s27, %s5497_s24  ;;  %p5503_p13 = scmp.lt.s32.totalorder %s5497_s24, %s5497_s24 }
  0x1f   :  { %p5504_p0 = por %p5503_p13, %p5502_p12 }
  0x21   :  { %p5505_p1 = pnand %p5504_p0, %p5498_p11 }
  0x23   :  { %5508 = shalt.err (!%p5505_p1)
}
  0x24   :  { %29 = dma.hbm_to_vmem [thread:$0]  %s6543_s0, 256, %s5660_s27, [#allocation7], %s5609_s13, %s5609_s13, %s5610_s14  }
  0x25   :  { %s5611_s26 = smov [#allocation11]   ;;  %s5509_s8 = scalar_lea.hbm %s6545_s2, 1536 }
  0x26   :  { %s51_s28 = sshll.u32 %s5611_s26, 4  ;;  %p5510_p2 = scmp.ne.s32.totalorder %s6545_s2, %s5509_s8  ;;  %s52_s28 = int_to_ptr.vmem [resolvable:$true] %s51_s28 }
  0x27   :  { %p5513_p3 = scmp.lt.u32.totalorder %s5509_s8, %s6545_s2 }
  0x29   :  { %p5515_p4 = pnand %p5513_p3, %p5510_p2 }
  0x2b   :  { %5518 = shalt.err (!%p5515_p4)
}
  0x2c   :  { %s5519_s15 = scalar_lea.vmem %s52_s28, 1536  ;;  %p5524_p6 = scmp.lt.s32.totalorder %s52_s28, %s52_s28 }
  0x2d   :  { %p5520_p5 = scmp.ne.s32.totalorder %s52_s28, %s5519_s15  ;;  %p5525_p7 = scmp.lt.s32.totalorder %s5519_s15, %s5519_s15 }
  0x2f   :  { %p5526_p8 = por %p5525_p7, %p5524_p6 }
  0x31   :  { %p5527_p9 = pnand %p5526_p8, %p5520_p5 }
  0x33   :  { %5530 = shalt.err (!%p5527_p9)
}
  0x34   :  { %s5612_s0 = smov 384   ;;  %s5613_s27 = smov 24  }
  0x35   :  { %57 = dma.hbm_to_vmem [thread:$0]  %s6545_s2, 1536, %s52_s28, [#allocation10], %s5612_s0, %s5612_s0, %s5613_s27  }
  0x36   :  { %s5614_s18 = smov [#allocation12]   ;;  %s5531_s22 = scalar_lea.hbm %s6546_s3, 12288 }
  0x37   :  { %s63_s19 = sshll.u32 %s5614_s18, 4  ;;  %p5532_p10 = scmp.ne.s32.totalorder %s6546_s3, %s5531_s22  ;;  %s64_s19 = int_to_ptr.vmem [resolvable:$true] %s63_s19 }
  0x38   :  { %p5535_p11 = scmp.lt.u32.totalorder %s5531_s22, %s6546_s3 }
  0x3a   :  { %p5537_p12 = pnand %p5535_p11, %p5532_p10 }
  0x3c   :  { %5540 = shalt.err (!%p5537_p12)
}
  0x3d   :  { %s5541_s26 = scalar_lea.vmem %s64_s19, 12288  ;;  %p5546_p0 = scmp.lt.s32.totalorder %s64_s19, %s64_s19 }
  0x3e   :  { %p5542_p13 = scmp.ne.s32.totalorder %s64_s19, %s5541_s26  ;;  %p5547_p1 = scmp.lt.s32.totalorder %s5541_s26, %s5541_s26 }
  0x40   :  { %p5548_p2 = por %p5547_p1, %p5546_p0 }
  0x42   :  { %p5549_p3 = pnand %p5548_p2, %p5542_p13 }
  0x44   :  { %5552 = shalt.err (!%p5549_p3)
}
  0x45   :  { %69 = dma.hbm_to_vmem [thread:$0]  %s6546_s3, 12288, %s64_s19, [#allocation13], %s5612_s0, %s5612_s0, %s5613_s27  }
  0x46   :  { %5597 = dma.done.wait [#allocation7], 256  }
  0x47   :  { %5598 = vsyncadd [#allocation7], 4294967040 }
  0x48   :  { %5599 = dma.done.wait [#allocation10], 1792  }
  0x49   :  { %5600 = vsyncadd [#allocation10], 4294965504 }
  0x4a   :  { %5601 = dma.done.wait [#allocation13], 12288  }
  0x4b   :  { %5602 = vsyncadd [#allocation13], 4294955008  ;;  %v6551_v0 = vmov 0.0   ;;  %vm121_vm0 = vcmask 130048   ;;  %v100_v1 = vld [vmem:[#allocation11 + $0x10] sm:$0xff]  ;;  %v103_v2 = vld [vmem:[#allocation11 + $0x28] sm:$0xff] }
  0x4c   :  { %94 = vst [vmem:[#allocation4] sm:$0x3] %v6551_v0  ;;  %95 = vst [vmem:[#allocation5] sm:$0x3] %v6551_v0  ;;  %192 = vmatprep.mubr.f32.mxu0 %v6551_v0  ;;  %v96_v3 = vld [vmem:[#allocation6] sm:$0xff]  ;;  %v4382_v4 = vpack.c.bf16 %v103_v2, %v100_v1  ;;  %v290_v5 = vld [vmem:[#allocation11 + $0x38] sm:$0xff] }
  0x4d   :  { %3808 = vmatprep.mubr.msk.f32.mxu1 %vm121_vm0, %v96_v3  ;;  %v293_v6 = vld [vmem:[#allocation11 + $0x50] sm:$0xff]  ;;  %v292_v9 = vld [vmem:[#allocation11 + $0x48] sm:$0xff]  ;;  %v481_v11 = vld [vmem:[#allocation12 + $0x20] sm:$0xff]  ;;  %v6553_v50 = vmov 0.0|0.0   ;;  %vm5617_vm1 = vmmov 0  }
  0x4e   :  { %v4386_v7 = vpack.c.bf16 %v293_v6, %v290_v5  ;;  %v289_v8 = vld [vmem:[#allocation11 + $0x30] sm:$0xff]  ;;  %4383 = vmatprep.subr.bf16.mxu1 %v4382_v4  ;;  %v478_v10 = vld [vmem:[#allocation12 + $0x8] sm:$0xff]  ;;  %v477_v15 = vld [vmem:[#allocation12] sm:$0xff] }
  0x4f   :  { %4385 = vmatpush3.bf16.msra.mxu1 %v4382_v4  ;;  %v97_v12 = vld [vmem:[#allocation6 + $0x8] sm:$0xff]  ;;  %v4388_v13 = vpack.c.bf16 %v292_v9, %v289_v8  ;;  %v5725_v14 = vpack.c.bf16 %v481_v11, %v478_v10  ;;  %v480_v16 = vld [vmem:[#allocation12 + $0x18] sm:$0xff]  ;;  %v487_v18 = vld [vmem:[#allocation12 + $0x50] sm:$0xff] }
  0x50   :  { %4387 = vmatprep.subr.bf16.mxu1 %v4386_v7  ;;  %v484_v17 = vld [vmem:[#allocation12 + $0x38] sm:$0xff]  ;;  %v286_v19 = vld [vmem:[#allocation9] sm:$0xff]  ;;  %v5729_v20 = vpack.c.bf16 %v480_v16, %v477_v15  ;;  %v99_v22 = vld [vmem:[#allocation11 + $0x8] sm:$0xff] }
  0x51   :  { %v483_v21 = vld [vmem:[#allocation12 + $0x30] sm:$0xff]  ;;  %v102_v23 = vld [vmem:[#allocation11 + $0x20] sm:$0xff]  ;;  %v5732_v24 = vpack.c.bf16 %v487_v18, %v484_v17  ;;  %v486_v25 = vld [vmem:[#allocation12 + $0x48] sm:$0xff] }
  0x52   :  { %3809 = vmatmul.mubr.msk.f32.vlgmr.msra.gmra.mrb[0].mxu1 %vm121_vm0, %v97_v12  ;;  %v4378_v26 = vpack.c.bf16 %v102_v23, %v99_v22  ;;  %v98_v27 = vld [vmem:[#allocation11] sm:$0xff]  ;;  %v101_v28 = vld [vmem:[#allocation11 + $0x18] sm:$0xff]  ;;  %v490_v29 = vld [vmem:[#allocation12 + $0x68] sm:$0xff]  ;;  %v5736_v34 = vpack.c.bf16 %v486_v25, %v483_v21 }
  0x53   :  { %4389 = vmatpush1.bf16.msra.mxu1 %v4388_v13  ;;  %383 = vmatprep.mubr.f32.mxu1 %v6551_v0  ;;  %v493_v30 = vld [vmem:[#allocation12 + $0x80] sm:$0xff]  ;;  %v4380_v31 = vpack.c.bf16 %v101_v28, %v98_v27  ;;  %v294_v33 = vld [vmem:[#allocation11 + $0x58] sm:$0xff]  ;;  %v499_v40 = vld [vmem:[#allocation12 + $0xb0] sm:$0xff] }
  0x54   :  { %4395 = vmatprep.subr.bf16.mxu1 %v5725_v14  ;;  %4379 = vmatprep.subr.bf16.mxu0 %v4378_v26  ;;  %v291_v32 = vld [vmem:[#allocation11 + $0x40] sm:$0xff]  ;;  %v5739_v36 = vpack.c.bf16 %v493_v30, %v490_v29  ;;  %v492_v38 = vld [vmem:[#allocation12 + $0x78] sm:$0xff]  ;;  %v495_v43 = vld [vmem:[#allocation12 + $0x90] sm:$0xff] }
  0x55   :  { %4381 = vmatpush1.bf16.msra.mxu0 %v4380_v31  ;;  %v4390_v35 = vpack.c.bf16 %v294_v33, %v291_v32  ;;  %v489_v37 = vld [vmem:[#allocation12 + $0x60] sm:$0xff]  ;;  %v496_v39 = vld [vmem:[#allocation12 + $0x98] sm:$0xff]  ;;  %v498_v45 = vld [vmem:[#allocation12 + $0xa8] sm:$0xff] }
  0x56   :  { %3485 = vmatmul.mubr.msk.f32.vlgmr.msra.gmra.mrb[2].mxu1 %vm121_vm0, %v286_v19  ;;  %v287_v41 = vld [vmem:[#allocation9 + $0x8] sm:$0xff]  ;;  %v5745_v42 = vpack.c.bf16 %v492_v38, %v489_v37  ;;  %v5748_v44 = vpack.c.bf16 %v499_v40, %v496_v39  ;;  %v479_v46 = vld [vmem:[#allocation12 + $0x10] sm:$0xff]  ;;  %v482_v47 = vld [vmem:[#allocation12 + $0x28] sm:$0xff]  ;;  %v5755_v51 = vpack.c.bf16 %v498_v45, %v495_v43 }
  0x57   :  { %4397 = vmatpush1.bf16.msra.mxu1 %v5729_v20  ;;  %389 = vmatprep.mubr.f32.mxu1 %v6551_v0  ;;  %v502_v48 = vld [vmem:[#allocation12 + $0xc8] sm:$0xff]  ;;  %v505_v49 = vld [vmem:[#allocation12 + $0xe0] sm:$0xff]  ;;  %v5758_v53 = vpack.c.bf16 %v482_v47, %v479_v46  ;;  %v504_v55 = vld [vmem:[#allocation12 + $0xd8] sm:$0xff] }
  0x58   :  { %4399 = vmatprep.subr.bf16.mxu1 %v5732_v24  ;;  %4391 = vmatprep.subr.bf16.mxu0 %v4390_v35  ;;  %v501_v52 = vld [vmem:[#allocation12 + $0xc0] sm:$0xff]  ;;  %v5761_v54 = vpack.c.bf16 %v505_v49, %v502_v48  ;;  %v488_v57 = vld [vmem:[#allocation12 + $0x58] sm:$0xff]  ;;  %v511_v59 = vld [vmem:[#allocation12 + $0x110] sm:$0xff] }
  0x59   :  { %3480 = vmatmul.mubr.msk.f32.vlgmr.msra.gmra.mrb[0].mxu0 %vm121_vm0, %v96_v3  ;;  %v485_v56 = vld [vmem:[#allocation12 + $0x40] sm:$0xff]  ;;  %v508_v58 = vld [vmem:[#allocation12 + $0xf8] sm:$0xff]  ;;  %v5765_v60 = vpack.c.bf16 %v504_v55, %v501_v52  ;;  %v507_v61 = vld [vmem:[#allocation12 + $0xf0] sm:$0xff] }
  0x5a   :  { %3486 = vmatmul.mubr.msk.f32.gmra.mrb[4].mxu1 %vm121_vm0, %v287_v41  ;;  %4393 = vmatpush3.bf16.msra.mxu0 %v4390_v35  ;;  %v5768_v62 = vpack.c.bf16 %v488_v57, %v485_v56  ;;  %v5771_v63 = vpack.c.bf16 %v511_v59, %v508_v58  ;;  %v510_v1 = vld [vmem:[#allocation12 + $0x108] sm:$0xff]  ;;  %v491_v2 = vld [vmem:[#allocation12 + $0x70] sm:$0xff]  ;;  %v517_v5 = vld [vmem:[#allocation12 + $0x140] sm:$0xff] }
  0x5b   :  { %4401 = vmatpush1.bf16.msra.mxu1 %v5736_v34  ;;  %198 = vmatprep.mubr.f32.mxu0 %v6551_v0  ;;  %v494_v3 = vld [vmem:[#allocation12 + $0x88] sm:$0xff]  ;;  %v5777_v6 = vpack.c.bf16 %v510_v1, %v507_v61  ;;  %v513_v7 = vld [vmem:[#allocation12 + $0x120] sm:$0xff]  ;;  %v516_v10 = vld [vmem:[#allocation12 + $0x138] sm:$0xff] }
  0x5c   :  { %4403 = vmatprep.subr.bf16.mxu1 %v5739_v36  ;;  %4426 = vmatprep.subr.bf16.mxu0 %v6553_v50  ;;  %6581 = vst [vmem:[#allocation22_spill] sm:$0xff] %v5771_v63  ;;  %v514_v4 = vld [vmem:[#allocation12 + $0x128] sm:$0xff]  ;;  %v5780_v8 = vpack.c.bf16 %v494_v3, %v491_v2  ;;  %v497_v11 = vld [vmem:[#allocation12 + $0xa0] sm:$0xff]  ;;  %v520_v13 = vld [vmem:[#allocation12 + $0x158] sm:$0xff]  ;;  %v5787_v16 = vpack.c.bf16 %v516_v10, %v513_v7 }
  0x5d   :  { %657 = vmatprep.mubr.f32.mxu1 %v6551_v0  ;;  %3481 = vmatmul.mubr.msk.f32.gmra.mrb[2].mxu0 %vm121_vm0, %v97_v12  ;;  %6582 = vst [vmem:[#allocation23_spill] sm:$0xff] %v5777_v6  ;;  %v5783_v9 = vpack.c.bf16 %v517_v5, %v514_v4  ;;  %v500_v12 = vld [vmem:[#allocation12 + $0xb8] sm:$0xff]  ;;  %v523_v15 = vld [vmem:[#allocation12 + $0x170] sm:$0xff]  ;;  %v522_v21 = vld [vmem:[#allocation12 + $0x168] sm:$0xff] }
  0x5e   :  { %3815 = vmatprep.mubr.msk.f32.mxu0 %vm121_vm0, %v286_v19  ;;  %6584 = vst [vmem:[#allocation25_spill] sm:$0xff] %v5787_v16  ;;  %v519_v17 = vld [vmem:[#allocation12 + $0x150] sm:$0xff]  ;;  %v5790_v18 = vpack.c.bf16 %v500_v12, %v497_v11  ;;  %v5793_v19 = vpack.c.bf16 %v523_v15, %v520_v13  ;;  %v506_v23 = vld [vmem:[#allocation12 + $0xe8] sm:$0xff]  ;;  %v530_v26 = vld [vmem:[#allocation12 + $0x1a0] sm:$0xff] }
  0x5f   :  { %4405 = vmatpush1.bf16.msra.mxu1 %v5745_v42  ;;  %6583 = vst [vmem:[#allocation24_spill] sm:$0xff] %v5783_v9  ;;  %v503_v22 = vld [vmem:[#allocation12 + $0xd0] sm:$0xff]  ;;  %v527_v25 = vld [vmem:[#allocation12 + $0x188] sm:$0xff]  ;;  %v5797_v27 = vpack.c.bf16 %v522_v21, %v519_v17  ;;  %v526_v28 = vld [vmem:[#allocation12 + $0x180] sm:$0xff] }
  0x60   :  { %4407 = vmatprep.subr.bf16.mxu1 %v5748_v44  ;;  %6585 = vst [vmem:[#allocation26_spill] sm:$0xff] %v5793_v19  ;;  %v5800_v29 = vpack.c.bf16 %v506_v23, %v503_v22  ;;  %v5803_v30 = vpack.c.bf16 %v530_v26, %v527_v25  ;;  %v529_v31 = vld [vmem:[#allocation12 + $0x198] sm:$0xff]  ;;  %v509_v32 = vld [vmem:[#allocation12 + $0x100] sm:$0xff]  ;;  %v536_v37 = vld [vmem:[#allocation12 + $0x1d0] sm:$0xff] }
  0x61   :  { %3816 = vmatmul.mubr.msk.f32.vlgmr.msra.gmra.mrb[4].mxu0 %vm121_vm0, %v287_v41  ;;  %6586 = vst [vmem:[#allocation27_spill] sm:$0xff] %v5797_v27  ;;  %v512_v33 = vld [vmem:[#allocation12 + $0x118] sm:$0xff]  ;;  %v5809_v39 = vpack.c.bf16 %v529_v31, %v526_v28  ;;  %v532_v40 = vld [vmem:[#allocation12 + $0x1b0] sm:$0xff]  ;;  %v535_v45 = vld [vmem:[#allocation12 + $0x1c8] sm:$0xff] }
  0x62   :  { %4428 = vmatpush3.bf16.msra.mxu0 %v5758_v53  ;;  %3850 = vmatprep.mubr.msk.f32.mxu0 %vm5617_vm1, %v6551_v0  ;;  %6587 = vst [vmem:[#allocation28_spill] sm:$0xff] %v5800_v29  ;;  %6588 = vst [vmem:[#allocation29_spill] sm:$0xff] %v5803_v30  ;;  %v533_v35 = vld [vmem:[#allocation12 + $0x1b8] sm:$0xff]  ;;  %v5812_v41 = vpack.c.bf16 %v512_v33, %v509_v32  ;;  %v515_v46 = vld [vmem:[#allocation12 + $0x130] sm:$0xff]  ;;  %v5820_v52 = vpack.c.bf16 %v535_v45, %v532_v40 }
  0x63   :  { %4409 = vmatpush1.bf16.msra.mxu1 %v5755_v51  ;;  %4429 = vmatprep.subr.bf16.mxu0 %v6553_v50  ;;  %v5807_v38 = vld [vmem:[#allocation4] sm:$0x3]  ;;  %v5815_v43 = vpack.c.bf16 %v536_v37, %v533_v35  ;;  %v518_v47 = vld [vmem:[#allocation12 + $0x148] sm:$0xff]  ;;  %v542_v49 = vld [vmem:[#allocation12 + $0x200] sm:$0xff] }
  0x64   :  { %4411 = vmatprep.subr.bf16.mxu1 %v5761_v54  ;;  %6589 = vst [vmem:[#allocation30_spill] sm:$0xff] %v5812_v41  ;;  %v539_v48 = vld [vmem:[#allocation12 + $0x1e8] sm:$0xff]  ;;  %v538_v55 = vld [vmem:[#allocation12 + $0x1e0] sm:$0xff]  ;;  %v5823_v56 = vpack.c.bf16 %v518_v47, %v515_v46  ;;  %v541_v58 = vld [vmem:[#allocation12 + $0x1f8] sm:$0xff] }
  0x65   :  { %v5826_v57 = vpack.c.bf16 %v542_v49, %v539_v48  ;;  %v521_v59 = vld [vmem:[#allocation12 + $0x160] sm:$0xff]  ;;  %v524_v61 = vld [vmem:[#allocation12 + $0x178] sm:$0xff]  ;;  %v548_v2 = vld [vmem:[#allocation12 + $0x230] sm:$0xff]  ;;  %v5831_v3 = vpack.c.bf16 %v541_v58, %v538_v55 }
  0x66   :  { %4431 = vmatpush3.bf16.msra.mxu0 %v5768_v62  ;;  %6590 = vst [vmem:[#allocation31_spill] sm:$0xff] %v5823_v56  ;;  %v545_v1 = vld [vmem:[#allocation12 + $0x218] sm:$0xff]  ;;  %v544_v4 = vld [vmem:[#allocation12 + $0x210] sm:$0xff]  ;;  %v5834_v5 = vpack.c.bf16 %v524_v61, %v521_v59  ;;  %v547_v10 = vld [vmem:[#allocation12 + $0x228] sm:$0xff] }
  0x67   :  { %4413 = vmatpush1.bf16.msra.mxu1 %v5765_v60  ;;  %4432 = vmatprep.subr.bf16.mxu0 %v6553_v50  ;;  %v5837_v7 = vpack.c.bf16 %v548_v2, %v545_v1  ;;  %v528_v11 = vld [vmem:[#allocation12 + $0x190] sm:$0xff]  ;;  %v531_v12 = vld [vmem:[#allocation12 + $0x1a8] sm:$0xff]  ;;  %v554_v15 = vld [vmem:[#allocation12 + $0x260] sm:$0xff]  ;;  %v5841_v17 = vpack.c.bf16 %v547_v10, %v544_v4 }
  0x68   :  { %4415 = vmatprep.subr.bf16.mxu1 %v5771_v63  ;;  %6591 = vst [vmem:[#allocation32_spill] sm:$0xff] %v5834_v5  ;;  %v551_v13 = vld [vmem:[#allocation12 + $0x248] sm:$0xff]  ;;  %v550_v21 = vld [vmem:[#allocation12 + $0x240] sm:$0xff]  ;;  %v5844_v22 = vpack.c.bf16 %v531_v12, %v528_v11  ;;  %v553_v25 = vld [vmem:[#allocation12 + $0x258] sm:$0xff] }
  0x69   :  { %v5847_v23 = vpack.c.bf16 %v554_v15, %v551_v13  ;;  %v534_v26 = vld [vmem:[#allocation12 + $0x1c0] sm:$0xff]  ;;  %v537_v28 = vld [vmem:[#allocation12 + $0x1d8] sm:$0xff]  ;;  %v560_v32 = vld [vmem:[#allocation12 + $0x290] sm:$0xff]  ;;  %v5852_v33 = vpack.c.bf16 %v553_v25, %v550_v21 }
  0x6a   :  { %4434 = vmatpush3.bf16.msra.mxu0 %v5780_v8  ;;  %v557_v31 = vld [vmem:[#allocation12 + $0x278] sm:$0xff]  ;;  %v556_v35 = vld [vmem:[#allocation12 + $0x270] sm:$0xff]  ;;  %v5855_v37 = vpack.c.bf16 %v537_v28, %v534_v26  ;;  %v559_v45 = vld [vmem:[#allocation12 + $0x288] sm:$0xff] }
  0x6b   :  { %4417 = vmatpush1.bf16.msra.mxu1 %v5777_v6  ;;  %4435 = vmatprep.subr.bf16.mxu0 %v6553_v50  ;;  %v5858_v40 = vpack.c.bf16 %v560_v32, %v557_v31  ;;  %v540_v46 = vld [vmem:[#allocation12 + $0x1f0] sm:$0xff]  ;;  %v543_v47 = vld [vmem:[#allocation12 + $0x208] sm:$0xff]  ;;  %v566_v49 = vld [vmem:[#allocation12 + $0x2c0] sm:$0xff]  ;;  %v5864_v55 = vpack.c.bf16 %v559_v45, %v556_v35 }
  0x6c   :  { %4419 = vmatprep.subr.bf16.mxu1 %v5783_v9  ;;  %v563_v48 = vld [vmem:[#allocation12 + $0x2a8] sm:$0xff]  ;;  %v562_v58 = vld [vmem:[#allocation12 + $0x2a0] sm:$0xff]  ;;  %v5867_v59 = vpack.c.bf16 %v543_v47, %v540_v46  ;;  %v565_v1 = vld [vmem:[#allocation12 + $0x2b8] sm:$0xff] }
  0x6d   :  { %v5870_v61 = vpack.c.bf16 %v566_v49, %v563_v48  ;;  %v546_v2 = vld [vmem:[#allocation12 + $0x220] sm:$0xff]  ;;  %v549_v4 = vld [vmem:[#allocation12 + $0x238] sm:$0xff]  ;;  %v572_v11 = vld [vmem:[#allocation12 + $0x2f0] sm:$0xff]  ;;  %v5874_v12 = vpack.c.bf16 %v565_v1, %v562_v58 }
  0x6e   :  { %4437 = vmatpush3.bf16.msra.mxu0 %v5790_v18  ;;  %v569_v10 = vld [vmem:[#allocation12 + $0x2d8] sm:$0xff]  ;;  %v568_v13 = vld [vmem:[#allocation12 + $0x2d0] sm:$0xff]  ;;  %v5877_v15 = vpack.c.bf16 %v549_v4, %v546_v2  ;;  %v571_v25 = vld [vmem:[#allocation12 + $0x2e8] sm:$0xff] }
  0x6f   :  { %4421 = vmatpush1.bf16.msra.mxu1 %v5787_v16  ;;  %4438 = vmatprep.subr.bf16.mxu0 %v6553_v50  ;;  %v5880_v21 = vpack.c.bf16 %v572_v11, %v569_v10  ;;  %v552_v26 = vld [vmem:[#allocation12 + $0x250] sm:$0xff]  ;;  %v555_v28 = vld [vmem:[#allocation12 + $0x268] sm:$0xff]  ;;  %v5884_v31 = vpack.c.bf16 %v571_v25, %v568_v13  ;;  %v558_v35 = vld [vmem:[#allocation12 + $0x280] sm:$0xff]  ;;  %v106_v10 = vlaneseq }
  0x70   :  { %4423 = vmatprep.subr.bf16.mxu1 %v5793_v19  ;;  %v5887_v32 = vpack.c.bf16 %v555_v28, %v552_v26  ;;  %v561_v45 = vld [vmem:[#allocation12 + $0x298] sm:$0xff]  ;;  %v564_v48 = vld [vmem:[#allocation12 + $0x2b0] sm:$0xff]  ;;  %v567_v49 = vld [vmem:[#allocation12 + $0x2c8] sm:$0xff] }
  0x71   :  { %v5892_v46 = vld [vmem:[#allocation5] sm:$0x3]  ;;  %v5895_v47 = vpack.c.bf16 %v561_v45, %v558_v35  ;;  %v5901_v58 = vpack.c.bf16 %v567_v49, %v564_v48  ;;  %v570_v1 = vld [vmem:[#allocation12 + $0x2e0] sm:$0xff]  ;;  %v107_v11 = vshrl.u32 %v106_v10, 7 }
  0x72   :  { %4440 = vmatpush3.bf16.msra.mxu0 %v5800_v29  ;;  %v573_v2 = vld [vmem:[#allocation12 + $0x2f8] sm:$0xff] }
  0x73   :  { %4425 = vmatpush1.bf16.msra.mxu1 %v5797_v27  ;;  %4441 = vmatprep.subr.bf16.mxu0 %v6553_v50  ;;  %v5908_v4 = vpack.c.bf16 %v573_v2, %v570_v1  ;;  %v116_v13 = vsub.s32 2, %v107_v11  ;;  %v104_v25 = vld [vmem:[%s6547_s4] sm:$0x7]  ;;  %v108_v28 = vsub.s32 0, %v107_v11  ;;  %v3484_v35 = vld [vmem:[%s6547_s4 + $0x3] sm:$0x7] }
  0x74   :  { %4451 = vmatprep.subr.bf16.mxu1 %v5803_v30  ;;  %v112_v45 = vsub.s32 1, %v107_v11 }
  0x75   :  { %v117_v26 = vrot.slane %v104_v25, %v116_v13  ;;  %v301_v2 = vrot.slane %v3484_v35, %v108_v28 }
  0x76   :  { %658 = vmatmul.mubr.f32.vlgmr.msra.gmra.mrb[6].mxu1 %v5807_v38  ;;  %4443 = vmatpush3.bf16.msra.mxu0 %v5812_v41 }
  0x77   :  { %4453 = vmatpush1.bf16.msra.mxu1 %v5809_v39  ;;  %4444 = vmatprep.subr.bf16.mxu0 %v6553_v50 }
  0x78   :  { %4455 = vmatprep.subr.bf16.mxu1 %v5815_v43  ;;  %824 = vmatprep.mubr.f32.mxu1 %v6551_v0 }
  0x7a   :  { %4446 = vmatpush3.bf16.msra.mxu0 %v5823_v56 }
  0x7b   :  { %4457 = vmatpush1.bf16.msra.mxu1 %v5820_v52  ;;  %4447 = vmatprep.subr.bf16.mxu0 %v6553_v50 }
  0x7c   :  { %4459 = vmatprep.subr.bf16.mxu1 %v5826_v57 }
  0x7e   :  { %4449 = vmatpush3.bf16.msra.mxu0 %v5834_v5 }
  0x7f   :  { %4461 = vmatpush1.bf16.msra.mxu1 %v5831_v3  ;;  %4482 = vmatprep.subr.bf16.mxu0 %v6553_v50 }
  0x80   :  { %4463 = vmatprep.subr.bf16.mxu1 %v5837_v7 }
  0x81   :  { %3851 = vmatmul.mubr.f32.vlgmr.msra.gmra.mrb[6].mxu0 %v5807_v38 }
  0x82   :  { %4484 = vmatpush3.bf16.msra.mxu0 %v5844_v22  ;;  %3885 = vmatprep.mubr.msk.f32.mxu0 %vm5617_vm1, %v6551_v0 }
  0x83   :  { %4465 = vmatpush1.bf16.msra.mxu1 %v5841_v17  ;;  %4485 = vmatprep.subr.bf16.mxu0 %v6553_v50 }
  0x84   :  { %4467 = vmatprep.subr.bf16.mxu1 %v5847_v23 }
  0x86   :  { %4487 = vmatpush3.bf16.msra.mxu0 %v5855_v37 }
  0x87   :  { %4469 = vmatpush1.bf16.msra.mxu1 %v5852_v33  ;;  %4488 = vmatprep.subr.bf16.mxu0 %v6553_v50 }
  0x88   :  { %4471 = vmatprep.subr.bf16.mxu1 %v5858_v40 }
  0x8a   :  { %4490 = vmatpush3.bf16.msra.mxu0 %v5867_v59 }
  0x8b   :  { %4473 = vmatpush1.bf16.msra.mxu1 %v5864_v55  ;;  %4491 = vmatprep.subr.bf16.mxu0 %v6553_v50 }
  0x8c   :  { %4475 = vmatprep.subr.bf16.mxu1 %v5870_v61 }
  0x8e   :  { %4493 = vmatpush3.bf16.msra.mxu0 %v5877_v15 }
  0x8f   :  { %4477 = vmatpush1.bf16.msra.mxu1 %v5874_v12  ;;  %4494 = vmatprep.subr.bf16.mxu0 %v6553_v50 }
  0x90   :  { %4479 = vmatprep.subr.bf16.mxu1 %v5880_v21 }
  0x92   :  { %4496 = vmatpush3.bf16.msra.mxu0 %v5887_v32 }
  0x93   :  { %4481 = vmatpush1.bf16.msra.mxu1 %v5884_v31  ;;  %4497 = vmatprep.subr.bf16.mxu0 %v6553_v50 }
  0x94   :  { %4507 = vmatprep.subr.bf16.mxu1 %v5725_v14 }
  0x96   :  { %825 = vmatmul.mubr.f32.vlgmr.msra.gmra.mrb[8].mxu1 %v5892_v46  ;;  %4499 = vmatpush3.bf16.msra.mxu0 %v5895_v47 }
  0x97   :  { %4509 = vmatpush1.bf16.msra.mxu1 %v5729_v20  ;;  %4500 = vmatprep.subr.bf16.mxu0 %v6553_v50 }
  0x98   :  { %4511 = vmatprep.subr.bf16.mxu1 %v5732_v24  ;;  %1007 = vmatprep.mubr.f32.mxu1 %v6551_v0 }
  0x9a   :  { %4502 = vmatpush3.bf16.msra.mxu0 %v5901_v58 }
  0x9b   :  { %4513 = vmatpush1.bf16.msra.mxu1 %v5736_v34  ;;  %4503 = vmatprep.subr.bf16.mxu0 %v6553_v50 }
  0x9c   :  { %4515 = vmatprep.subr.bf16.mxu1 %v5739_v36 }
  0x9e   :  { %4505 = vmatpush3.bf16.msra.mxu0 %v5908_v4 }
  0x9f   :  { %4517 = vmatpush1.bf16.msra.mxu1 %v5745_v42  ;;  %4538 = vmatprep.subr.bf16.mxu0 %v6553_v50 }
  0xa0   :  { %4519 = vmatprep.subr.bf16.mxu1 %v5748_v44 }
  0xa1   :  { %3886 = vmatmul.mubr.f32.vlgmr.msra.gmra.mrb[8].mxu0 %v5892_v46 }
  0xa2   :  { %4540 = vmatpush3.bf16.msra.mxu0 %v5758_v53  ;;  %3920 = vmatprep.mubr.msk.f32.mxu0 %vm5617_vm1, %v6551_v0 }
  0xa3   :  { %4521 = vmatpush1.bf16.msra.mxu1 %v5755_v51  ;;  %4541 = vmatprep.subr.bf16.mxu0 %v6553_v50 }
  0xa4   :  { %4523 = vmatprep.subr.bf16.mxu1 %v5761_v54 }
  0xa6   :  { %4543 = vmatpush3.bf16.msra.mxu0 %v5768_v62 }
  0xa7   :  { %4525 = vmatpush1.bf16.msra.mxu1 %v5765_v60  ;;  %4544 = vmatprep.subr.bf16.mxu0 %v6553_v50 }
  0xa8   :  { %4527 = vmatprep.subr.bf16.mxu1 %v5771_v63 }
  0xaa   :  { %4546 = vmatpush3.bf16.msra.mxu0 %v5780_v8 }
  0xab   :  { %4529 = vmatpush1.bf16.msra.mxu1 %v5777_v6  ;;  %4547 = vmatprep.subr.bf16.mxu0 %v6553_v50 }
  0xac   :  { %4531 = vmatprep.subr.bf16.mxu1 %v5783_v9 }
  0xae   :  { %4549 = vmatpush3.bf16.msra.mxu0 %v5790_v18 }
  0xaf   :  { %4533 = vmatpush1.bf16.msra.mxu1 %v5787_v16  ;;  %4550 = vmatprep.subr.bf16.mxu0 %v6553_v50 }
  0xb0   :  { %4535 = vmatprep.subr.bf16.mxu1 %v5793_v19 }
  0xb2   :  { %4552 = vmatpush3.bf16.msra.mxu0 %v5800_v29 }
  0xb3   :  { %4537 = vmatpush1.bf16.msra.mxu1 %v5797_v27  ;;  %4553 = vmatprep.subr.bf16.mxu0 %v6553_v50  ;;  %v109_v27 = vrot.slane %v104_v25, %v108_v28  ;;  %v309_v28 = vrot.slane %v3484_v35, %v116_v13 }
  0xb4   :  { %4563 = vmatprep.subr.bf16.mxu1 %v5803_v30 }
  0xb6   :  { %4555 = vmatpush3.bf16.msra.mxu0 %v5812_v41 }
  0xb7   :  { %4556 = vmatprep.subr.bf16.mxu0 %v6553_v50 }
  0xba   :  { %4558 = vmatpush3.bf16.msra.mxu0 %v5823_v56  ;;  %v113_v56 = vrot.slane %v104_v25, %v112_v45 }
  0xbb   :  { %4559 = vmatprep.subr.bf16.mxu0 %v6553_v50 }
  0xbe   :  { %4561 = vmatpush3.bf16.msra.mxu0 %v5834_v5 }
  0xbf   :  { %4594 = vmatprep.subr.bf16.mxu0 %v6553_v50  ;;  %v305_v50 = vrot.slane %v3484_v35, %v112_v45 }
 0x125   :  { %v3810_v48 = vpop.f32.mrb[0].mxu1 }
 0x126   :  { %v277_v49 = vadd.f32 %v3810_v48, %v117_v26  ;;  %v271_v1 = vpop.f32.mrb[1].mxu1 }
 0x127   :  { %v272_v0 = vadd.f32 %v271_v1, %v117_v26 }
 0x128   :  { %285 = vst [vmem:[#allocation2 + $0x28] sm:$0xff] %v277_v49 }
 0x129   :  { %282 = vst [vmem:[#allocation2 + $0x10] sm:$0xff] %v272_v0  ;;  %v385_v10 = vpop.f32.mrb[2].mxu1 }
 0x12a   :  { %v386_v30 = vadd.f32 %v385_v10, %v301_v2  ;;  %v387_v5 = vpop.f32.mrb[3].mxu1  ;;  %v5955_v10 = vld [vmem:[%s6548_s5] ss:$0 sm:$0xff] }
 0x12b   :  { %v388_v19 = vadd.f32 %v387_v5, %v305_v50 }
 0x12c   :  { %471 = vst [vmem:[#allocation3] sm:$0xff] %v386_v30  ;;  %v194_v16 = vpop.f32.mrb[0].mxu0 }
 0x12d   :  { %472 = vst [vmem:[#allocation3 + $0x8] sm:$0xff] %v388_v19  ;;  %v391_v9 = vpop.f32.mrb[4].mxu1  ;;  %v195_v41 = vadd.f32 %v194_v16, %v109_v27  ;;  %v196_v11 = vpop.f32.mrb[1].mxu0 }
 0x12e   :  { %v392_v6 = vadd.f32 %v391_v9, %v301_v2  ;;  %v393_v48 = vpop.f32.mrb[5].mxu1  ;;  %v197_v63 = vadd.f32 %v196_v11, %v113_v56 }
 0x12f   :  { %v394_v29 = vadd.f32 %v393_v48, %v305_v50  ;;  %280 = vst [vmem:[#allocation2] sm:$0xff] %v195_v41 }
 0x130   :  { %474 = vst [vmem:[#allocation3 + $0x18] sm:$0xff] %v392_v6  ;;  %281 = vst [vmem:[#allocation2 + $0x8] sm:$0xff] %v197_v63  ;;  %v200_v0 = vpop.f32.mrb[2].mxu0 }
 0x131   :  { %475 = vst [vmem:[#allocation3 + $0x20] sm:$0xff] %v394_v29  ;;  %v201_v26 = vadd.f32 %v200_v0, %v109_v27  ;;  %v202_v49 = vpop.f32.mrb[3].mxu0 }
 0x132   :  { %v203_v5 = vadd.f32 %v202_v49, %v113_v56  ;;  %v591_v49 = vld [vmem:[#allocation2 + $0x10] sm:$0x3] }
 0x133   :  { %283 = vst [vmem:[#allocation2 + $0x18] sm:$0xff] %v201_v26 }
 0x134   :  { %284 = vst [vmem:[#allocation2 + $0x20] sm:$0xff] %v203_v5  ;;  %v3817_v19 = vpop.f32.mrb[4].mxu0 }
 0x135   :  { %v468_v30 = vadd.f32 %v3817_v19, %v309_v28  ;;  %v462_v25 = vpop.f32.mrb[5].mxu0 }
 0x136   :  { %v463_v16 = vadd.f32 %v462_v25, %v309_v28  ;;  %v589_v9 = vld [vmem:[#allocation2] sm:$0x3] }
 0x137   :  { %476 = vst [vmem:[#allocation3 + $0x28] sm:$0xff] %v468_v30  ;;  %v590_v63 = vld [vmem:[#allocation2 + $0x8] sm:$0x3]  ;;  %v756_v25 = vld [vmem:[#allocation3 + $0x18] sm:$0xc0] }
 0x138   :  { %473 = vst [vmem:[#allocation3 + $0x10] sm:$0xff] %v463_v16 }
 0x149   :  { %v659_v45 = vpop.f32.mrb[6].mxu1 }
 0x14a   :  { %v734_v50 = vadd.f32 %v659_v45, %v589_v9  ;;  %v661_v41 = vpop.f32.mrb[7].mxu1 }
 0x14b   :  { %v741_v1 = vadd.f32 %v661_v41, %v590_v63 }
 0x14c   :  { %v3492_v6 = vmul.f32 -1.442695, %v734_v50  ;;  %v757_v50 = vld [vmem:[#allocation3 + $0x20] sm:$0xc0] }
 0x14d   :  { %v3493_v27 = vmul.f32 -1.442695, %v741_v1 }
 0x14e   :  { %5303 = vpow2.f32 %v3492_v6 }
 0x14f   :  { %5305 = vpow2.f32 %v3493_v27 }
 0x154   :  { %v730_v29 = vpop.f32.mrb[6].mxu0 }
 0x155   :  { %v3852_v56 = vpop.f32.mrb[7].mxu0  ;;  %v748_v48 = vadd.f32 %v5955_v10, %v730_v29 }
 0x158   :  { %v5304_v13 = vpop.eup %5303 }
 0x159   :  { %v738_v35 = vadd.f32 1.0, %v5304_v13  ;;  %v5306_v2 = vpop.eup %5305 }
 0x15a   :  { %v745_v11 = vadd.f32 1.0, %v5306_v2 }
 0x15b   :  { %5307 = vrcp.f32 %v738_v35 }
 0x15c   :  { %5309 = vrcp.f32 %v745_v11 }
 0x165   :  { %v5308_v0 = vpop.eup %5307 }
 0x166   :  { %v749_v26 = vmul.f32 %v5308_v0, %v748_v48  ;;  %v5310_v6 = vpop.eup %5309  ;;  %v5962_v0 = vld [vmem:[%s6548_s5 + $0x1] ss:$0 sm:$0xff] }
 0x167   :  { %v752_v63 = vsub.f32 1.0, %v5310_v6  ;;  %v754_v29 = vmul.f32 %v5310_v6, %v5807_v38 }
 0x168   :  { %v750_v28 = vadd.f32 %v749_v26, %v591_v49 }
 0x169   :  { %v826_v5 = vpop.f32.mrb[8].mxu1 }
 0x16a   :  { %5311 = vtanh.f32 %v750_v28  ;;  %v902_v19 = vrot.slane %v826_v5, 2  ;;  %v828_v30 = vpop.f32.mrb[9].mxu1  ;;  %v6592_v28 = vmov 0.0|0.0  }
 0x16b   :  { %v912_v16 = vrot.slane %v828_v30, 2  ;;  %v6593_v30 = vmov 0.0  }
 0x16c   :  { %v904_v9 = vadd.f32 %v902_v19, %v756_v25 }
 0x16d   :  { %v914_v41 = vadd.f32 %v912_v16, %v757_v50 }
 0x16e   :  { %v3494_v45 = vmul.f32 -1.442695, %v904_v9  ;;  %v758_v9 = vld [vmem:[#allocation3 + $0x28] sm:$0xc0] }
 0x16f   :  { %v3495_v1 = vmul.f32 -1.442695, %v914_v41  ;;  %v931_v41 = vrot.slane %v5892_v46, 2 }
 0x170   :  { %5313 = vpow2.f32 %v3494_v45 }
 0x171   :  { %5315 = vpow2.f32 %v3495_v1 }
 0x174   :  { %v5312_v27 = vpop.eup %5311  ;;  %v897_v13 = vpop.f32.mrb[8].mxu0 }
 0x175   :  { %v753_v56 = vmul.f32 %v5312_v27, %v752_v63  ;;  %v3887_v35 = vpop.f32.mrb[9].mxu0  ;;  %v921_v49 = vadd.f32 %v5962_v0, %v897_v13  ;;  %v6595_v13 = vld [vmem:[#allocation22_spill] sm:$0xff] }
 0x176   :  { %v6596_v35 = vld [vmem:[#allocation23_spill] sm:$0xff] }
 0x177   :  { %v755_v2 = vadd.f32 %v754_v29, %v753_v56  ;;  %v923_v19 = vrot.slane %v921_v49, 2  ;;  %v6594_v56 = vld [vmem:[#allocation28_spill] sm:$0xff]  ;;  %v6600_v49 = vld [vmem:[#allocation31_spill] sm:$0xff] }
 0x179   :  { %935 = vst [vmem:[#allocation4] sm:$0x3] %v755_v2  ;;  %937 = vst [vmem:[#allocation14] sm:$0x3] %v755_v2  ;;  %v6597_v2 = vld [vmem:[#allocation30_spill] sm:$0xff] }
 0x17a   :  { %v5314_v11 = vpop.eup %5313 }
 0x17b   :  { %v908_v48 = vadd.f32 1.0, %v5314_v11  ;;  %v5316_v38 = vpop.eup %5315  ;;  %v6598_v11 = vld [vmem:[#allocation24_spill] sm:$0xff] }
 0x17c   :  { %v918_v5 = vadd.f32 1.0, %v5316_v38  ;;  %v6601_v38 = vld [vmem:[#allocation26_spill] sm:$0xff] }
 0x17d   :  { %5317 = vrcp.f32 %v908_v48  ;;  %v6599_v48 = vld [vmem:[#allocation25_spill] sm:$0xff] }
 0x17e   :  { %5319 = vrcp.f32 %v918_v5  ;;  %v6602_v5 = vld [vmem:[#allocation27_spill] sm:$0xff] }
 0x180   :  { %v5964_v26 = vld [vmem:[#allocation4] sm:$0x3] }
 0x181   :  { %1008 = vmatmul.mubr.f32.vlgmr.msra.gmra.mrb[10].mxu1 %v5964_v26  ;;  %3921 = vmatmul.mubr.f32.vlgmr.msra.gmra.mrb[10].mxu0 %v5964_v26 }
 0x182   :  { %4565 = vmatpush1.bf16.msra.mxu1 %v5809_v39  ;;  %4596 = vmatpush3.bf16.msra.mxu0 %v5844_v22 }
 0x183   :  { %4567 = vmatprep.subr.bf16.mxu1 %v5815_v43  ;;  %4597 = vmatprep.subr.bf16.mxu0 %v6592_v28 }
 0x184   :  { %1186 = vmatprep.mubr.f32.mxu1 %v6593_v30  ;;  %3955 = vmatprep.mubr.msk.f32.mxu0 %vm5617_vm1, %v6593_v30 }
 0x186   :  { %4569 = vmatpush1.bf16.msra.mxu1 %v5820_v52  ;;  %4599 = vmatpush3.bf16.msra.mxu0 %v5855_v37 }
 0x187   :  { %v5318_v25 = vpop.eup %5317  ;;  %4571 = vmatprep.subr.bf16.mxu1 %v5826_v57  ;;  %4600 = vmatprep.subr.bf16.mxu0 %v6592_v28 }
 0x188   :  { %v925_v16 = vmul.f32 %v5318_v25, %v923_v19  ;;  %v5320_v50 = vpop.eup %5319  ;;  %v6603_v19 = vld [vmem:[#allocation32_spill] sm:$0xff]  ;;  %v6604_v25 = vld [vmem:[#allocation29_spill] sm:$0xff] }
 0x189   :  { %v928_v6 = vsub.f32 1.0, %v5320_v50  ;;  %v933_v1 = vmul.f32 %v5320_v50, %v931_v41 }
 0x18a   :  { %v926_v45 = vadd.f32 %v925_v16, %v758_v9  ;;  %4573 = vmatpush1.bf16.msra.mxu1 %v5831_v3  ;;  %4602 = vmatpush3.bf16.msra.mxu0 %v5867_v59 }
 0x18b   :  { %4575 = vmatprep.subr.bf16.mxu1 %v5837_v7  ;;  %4603 = vmatprep.subr.bf16.mxu0 %v6592_v28 }
 0x18c   :  { %5321 = vtanh.f32 %v926_v45 }
 0x18e   :  { %4577 = vmatpush1.bf16.msra.mxu1 %v5841_v17  ;;  %4605 = vmatpush3.bf16.msra.mxu0 %v5877_v15 }
 0x18f   :  { %4579 = vmatprep.subr.bf16.mxu1 %v5847_v23  ;;  %4606 = vmatprep.subr.bf16.mxu0 %v6592_v28 }
 0x192   :  { %4581 = vmatpush1.bf16.msra.mxu1 %v5852_v33  ;;  %4608 = vmatpush3.bf16.msra.mxu0 %v5887_v32 }
 0x193   :  { %4583 = vmatprep.subr.bf16.mxu1 %v5858_v40  ;;  %4609 = vmatprep.subr.bf16.mxu0 %v6592_v28 }
 0x196   :  { %v5322_v63 = vpop.eup %5321  ;;  %4585 = vmatpush1.bf16.msra.mxu1 %v5864_v55  ;;  %4611 = vmatpush3.bf16.msra.mxu0 %v5895_v47 }
 0x197   :  { %v929_v27 = vmul.f32 %v5322_v63, %v928_v6  ;;  %4587 = vmatprep.subr.bf16.mxu1 %v5870_v61  ;;  %4612 = vmatprep.subr.bf16.mxu0 %v6592_v28  ;;  %v939_v6 = vld [vmem:[#allocation2] sm:$0xc] }
 0x199   :  { %v934_v29 = vadd.f32 %v933_v1, %v929_v27 }
 0x19a   :  { %4589 = vmatpush1.bf16.msra.mxu1 %v5874_v12  ;;  %4614 = vmatpush3.bf16.msra.mxu0 %v5901_v58 }
 0x19b   :  { %936 = vst [vmem:[#allocation5 - $0x6] sm:$0xc0] %v934_v29  ;;  %938 = vst [vmem:[#allocation15 + $0x8] sm:$0xc0] %v934_v29  ;;  %4591 = vmatprep.subr.bf16.mxu1 %v5880_v21  ;;  %4615 = vmatprep.subr.bf16.mxu0 %v6592_v28  ;;  %v940_v29 = vld [vmem:[#allocation2 + $0x8] sm:$0xc] }
 0x19e   :  { %4593 = vmatpush1.bf16.msra.mxu1 %v5884_v31  ;;  %4617 = vmatpush3.bf16.msra.mxu0 %v5908_v4 }
 0x19f   :  { %4619 = vmatprep.subr.bf16.mxu1 %v5725_v14  ;;  %4650 = vmatprep.subr.bf16.mxu0 %v6592_v28 }
 0x1a2   :  { %v6005_v46 = vld [vmem:[#allocation5] sm:$0x3] }
 0x1a3   :  { %1187 = vmatmul.mubr.f32.vlgmr.msra.gmra.mrb[12].mxu1 %v6005_v46  ;;  %3956 = vmatmul.mubr.f32.vlgmr.msra.gmra.mrb[12].mxu0 %v6005_v46 }
 0x1a4   :  { %4621 = vmatpush1.bf16.msra.mxu1 %v5729_v20  ;;  %4652 = vmatpush3.bf16.msra.mxu0 %v5758_v53 }
 0x1a5   :  { %4623 = vmatprep.subr.bf16.mxu1 %v5732_v24  ;;  %4653 = vmatprep.subr.bf16.mxu0 %v6592_v28 }
 0x1a6   :  { %1369 = vmatprep.mubr.f32.mxu1 %v6593_v30  ;;  %3990 = vmatprep.mubr.msk.f32.mxu0 %vm5617_vm1, %v6593_v30 }
 0x1a8   :  { %4625 = vmatpush1.bf16.msra.mxu1 %v5736_v34  ;;  %4655 = vmatpush3.bf16.msra.mxu0 %v5768_v62 }
 0x1a9   :  { %4627 = vmatprep.subr.bf16.mxu1 %v5739_v36  ;;  %4656 = vmatprep.subr.bf16.mxu0 %v6592_v28 }
 0x1ac   :  { %4629 = vmatpush1.bf16.msra.mxu1 %v5745_v42  ;;  %4658 = vmatpush3.bf16.msra.mxu0 %v5780_v8 }
 0x1ad   :  { %4631 = vmatprep.subr.bf16.mxu1 %v5748_v44  ;;  %4659 = vmatprep.subr.bf16.mxu0 %v6592_v28 }
 0x1b0   :  { %4633 = vmatpush1.bf16.msra.mxu1 %v5755_v51  ;;  %4661 = vmatpush3.bf16.msra.mxu0 %v5790_v18 }
 0x1b1   :  { %4635 = vmatprep.subr.bf16.mxu1 %v5761_v54  ;;  %4662 = vmatprep.subr.bf16.mxu0 %v6592_v28 }
 0x1b4   :  { %4637 = vmatpush1.bf16.msra.mxu1 %v5765_v60  ;;  %4664 = vmatpush3.bf16.msra.mxu0 %v6594_v56 }
 0x1b5   :  { %4639 = vmatprep.subr.bf16.mxu1 %v6595_v13  ;;  %4665 = vmatprep.subr.bf16.mxu0 %v6592_v28 }
 0x1b8   :  { %4641 = vmatpush1.bf16.msra.mxu1 %v6596_v35  ;;  %4667 = vmatpush3.bf16.msra.mxu0 %v6597_v2 }
 0x1b9   :  { %4643 = vmatprep.subr.bf16.mxu1 %v6598_v11  ;;  %4668 = vmatprep.subr.bf16.mxu0 %v6592_v28 }
 0x1bc   :  { %4645 = vmatpush1.bf16.msra.mxu1 %v6599_v48  ;;  %4670 = vmatpush3.bf16.msra.mxu0 %v6600_v49 }
 0x1bd   :  { %4647 = vmatprep.subr.bf16.mxu1 %v6601_v38  ;;  %4671 = vmatprep.subr.bf16.mxu0 %v6592_v28 }
 0x1c0   :  { %4649 = vmatpush1.bf16.msra.mxu1 %v6602_v5  ;;  %4673 = vmatpush3.bf16.msra.mxu0 %v6603_v19 }
 0x1c1   :  { %4675 = vmatprep.subr.bf16.mxu1 %v6604_v25  ;;  %4706 = vmatprep.subr.bf16.mxu0 %v6592_v28 }
 0x254   :  { %v1009_v16 = vpop.f32.mrb[10].mxu1  ;;  %v1080_v9 = vpop.f32.mrb[10].mxu0 }
 0x255   :  { %v1085_v45 = vrot.slane %v1009_v16, 6  ;;  %v1011_v50 = vpop.f32.mrb[11].mxu1  ;;  %v3922_v41 = vpop.f32.mrb[11].mxu0  ;;  %v1104_v48 = vadd.f32 %v5955_v10, %v1080_v9 }
 0x256   :  { %v1095_v63 = vrot.slane %v1011_v50, 6  ;;  %v941_v41 = vld [vmem:[#allocation2 + $0x10] sm:$0xc] }
 0x257   :  { %v1087_v1 = vadd.f32 %v1085_v45, %v939_v6  ;;  %v1106_v2 = vrot.slane %v1104_v48, 6 }
 0x258   :  { %v1097_v38 = vadd.f32 %v1095_v63, %v940_v29  ;;  %v1119_v29 = vld [vmem:[#allocation3 + $0x20] sm:$0x30] }
 0x259   :  { %v3496_v27 = vmul.f32 -1.442695, %v1087_v1 }
 0x25a   :  { %v3497_v49 = vmul.f32 -1.442695, %v1097_v38 }
 0x25b   :  { %5323 = vpow2.f32 %v3496_v27 }
 0x25c   :  { %5325 = vpow2.f32 %v3497_v49  ;;  %v1118_v49 = vld [vmem:[#allocation3 + $0x18] sm:$0x30] }
 0x265   :  { %v5324_v5 = vpop.eup %5323 }
 0x266   :  { %v1091_v19 = vadd.f32 1.0, %v5324_v5  ;;  %v5326_v25 = vpop.eup %5325 }
 0x267   :  { %v1101_v11 = vadd.f32 1.0, %v5326_v25 }
 0x268   :  { %5327 = vrcp.f32 %v1091_v19 }
 0x269   :  { %5329 = vrcp.f32 %v1101_v11 }
 0x272   :  { %v5328_v16 = vpop.eup %5327 }
 0x273   :  { %v1108_v35 = vmul.f32 %v5328_v16, %v1106_v2  ;;  %v5330_v9 = vpop.eup %5329  ;;  %v1114_v2 = vrot.slane %v5964_v26, 6 }
 0x274   :  { %v1111_v48 = vsub.f32 1.0, %v5330_v9 }
 0x275   :  { %v1109_v50 = vadd.f32 %v1108_v35, %v941_v41  ;;  %v1116_v16 = vmul.f32 %v5330_v9, %v1114_v2  ;;  %v1293_v9 = vrot.slane %v6005_v46, 4 }
 0x276   :  { %v1188_v45 = vpop.f32.mrb[12].mxu1  ;;  %v1259_v6 = vpop.f32.mrb[12].mxu0 }
 0x277   :  { %5331 = vtanh.f32 %v1109_v50  ;;  %v1264_v63 = vrot.slane %v1188_v45, 4  ;;  %v1190_v1 = vpop.f32.mrb[13].mxu1  ;;  %v3957_v38 = vpop.f32.mrb[13].mxu0  ;;  %v1283_v26 = vadd.f32 %v5962_v0, %v1259_v6 }
 0x278   :  { %v1274_v27 = vrot.slane %v1190_v1, 4 }
 0x279   :  { %v1266_v5 = vadd.f32 %v1264_v63, %v1118_v49  ;;  %v1285_v38 = vrot.slane %v1283_v26, 4  ;;  %v6611_v26 = vld [vmem:[#allocation26_spill] sm:$0xff] }
 0x27a   :  { %v1276_v13 = vadd.f32 %v1274_v27, %v1119_v29  ;;  %v1120_v27 = vld [vmem:[#allocation3 + $0x28] sm:$0x30] }
 0x27b   :  { %v3498_v19 = vmul.f32 -1.442695, %v1266_v5 }
 0x27c   :  { %v3499_v11 = vmul.f32 -1.442695, %v1276_v13 }
 0x27d   :  { %5333 = vpow2.f32 %v3498_v19 }
 0x27e   :  { %5335 = vpow2.f32 %v3499_v11 }
 0x281   :  { %v5332_v25 = vpop.eup %5331 }
 0x282   :  { %v1112_v35 = vmul.f32 %v5332_v25, %v1111_v48 }
 0x284   :  { %v1117_v41 = vadd.f32 %v1116_v16, %v1112_v35  ;;  %v6605_v35 = vld [vmem:[#allocation22_spill] sm:$0xff]  ;;  %v6606_v16 = vld [vmem:[#allocation23_spill] sm:$0xff] }
 0x286   :  { %1297 = vst [vmem:[#allocation4 - $0x2] sm:$0xc] %v1117_v41  ;;  %1299 = vst [vmem:[#allocation14] sm:$0xc] %v1117_v41  ;;  %v6607_v41 = vld [vmem:[#allocation30_spill] sm:$0xff] }
 0x287   :  { %v5334_v50 = vpop.eup %5333 }
 0x288   :  { %v1270_v45 = vadd.f32 1.0, %v5334_v50  ;;  %v5336_v1 = vpop.eup %5335  ;;  %v6608_v50 = vld [vmem:[#allocation24_spill] sm:$0xff] }
 0x289   :  { %v1280_v13 = vadd.f32 1.0, %v5336_v1  ;;  %v6610_v1 = vld [vmem:[#allocation31_spill] sm:$0xff] }
 0x28a   :  { %5337 = vrcp.f32 %v1270_v45  ;;  %v6609_v45 = vld [vmem:[#allocation25_spill] sm:$0xff] }
 0x28b   :  { %5339 = vrcp.f32 %v1280_v13  ;;  %v6612_v13 = vld [vmem:[#allocation27_spill] sm:$0xff] }
 0x28d   :  { %v6046_v63 = vld [vmem:[#allocation4] sm:$0x3] }
 0x28e   :  { %1370 = vmatmul.mubr.f32.vlgmr.msra.gmra.mrb[14].mxu1 %v6046_v63  ;;  %3991 = vmatmul.mubr.f32.vlgmr.msra.gmra.mrb[14].mxu0 %v6046_v63 }
 0x28f   :  { %4677 = vmatpush1.bf16.msra.mxu1 %v5809_v39  ;;  %4708 = vmatpush3.bf16.msra.mxu0 %v5844_v22 }
 0x290   :  { %4679 = vmatprep.subr.bf16.mxu1 %v5815_v43  ;;  %4709 = vmatprep.subr.bf16.mxu0 %v6592_v28 }
 0x291   :  { %1548 = vmatprep.mubr.f32.mxu1 %v6593_v30  ;;  %4025 = vmatprep.mubr.msk.f32.mxu0 %vm5617_vm1, %v6593_v30 }
 0x293   :  { %4681 = vmatpush1.bf16.msra.mxu1 %v5820_v52  ;;  %4711 = vmatpush3.bf16.msra.mxu0 %v5855_v37 }
 0x294   :  { %v5338_v6 = vpop.eup %5337  ;;  %4683 = vmatprep.subr.bf16.mxu1 %v5826_v57  ;;  %4712 = vmatprep.subr.bf16.mxu0 %v6592_v28 }
 0x295   :  { %v1287_v49 = vmul.f32 %v5338_v6, %v1285_v38  ;;  %v5340_v19 = vpop.eup %5339  ;;  %v6613_v38 = vld [vmem:[#allocation32_spill] sm:$0xff]  ;;  %v6614_v6 = vld [vmem:[#allocation29_spill] sm:$0xff] }
 0x296   :  { %v1290_v29 = vsub.f32 1.0, %v5340_v19  ;;  %v1295_v11 = vmul.f32 %v5340_v19, %v1293_v9  ;;  %v1301_v9 = vld [vmem:[#allocation2] sm:$0x30] }
 0x297   :  { %v1288_v5 = vadd.f32 %v1287_v49, %v1120_v27  ;;  %4685 = vmatpush1.bf16.msra.mxu1 %v5831_v3  ;;  %4714 = vmatpush3.bf16.msra.mxu0 %v5867_v59 }
 0x298   :  { %4687 = vmatprep.subr.bf16.mxu1 %v5837_v7  ;;  %4715 = vmatprep.subr.bf16.mxu0 %v6592_v28 }
 0x299   :  { %5341 = vtanh.f32 %v1288_v5 }
 0x29b   :  { %4689 = vmatpush1.bf16.msra.mxu1 %v5841_v17  ;;  %4717 = vmatpush3.bf16.msra.mxu0 %v5877_v15 }
 0x29c   :  { %4691 = vmatprep.subr.bf16.mxu1 %v5847_v23  ;;  %4718 = vmatprep.subr.bf16.mxu0 %v6592_v28 }
 0x29f   :  { %4693 = vmatpush1.bf16.msra.mxu1 %v5852_v33  ;;  %4720 = vmatpush3.bf16.msra.mxu0 %v5887_v32 }
 0x2a0   :  { %4695 = vmatprep.subr.bf16.mxu1 %v5858_v40  ;;  %4721 = vmatprep.subr.bf16.mxu0 %v6592_v28 }
 0x2a3   :  { %v5342_v48 = vpop.eup %5341  ;;  %4697 = vmatpush1.bf16.msra.mxu1 %v5864_v55  ;;  %4723 = vmatpush3.bf16.msra.mxu0 %v5895_v47 }
 0x2a4   :  { %v1291_v2 = vmul.f32 %v5342_v48, %v1290_v29  ;;  %4699 = vmatprep.subr.bf16.mxu1 %v5870_v61  ;;  %4724 = vmatprep.subr.bf16.mxu0 %v6592_v28 }
 0x2a6   :  { %v1296_v25 = vadd.f32 %v1295_v11, %v1291_v2 }
 0x2a7   :  { %4701 = vmatpush1.bf16.msra.mxu1 %v5874_v12  ;;  %4726 = vmatpush3.bf16.msra.mxu0 %v5901_v58 }
 0x2a8   :  { %1298 = vst [vmem:[#allocation5 - $0x4] sm:$0x30] %v1296_v25  ;;  %1300 = vst [vmem:[#allocation15 + $0x8] sm:$0x30] %v1296_v25  ;;  %4703 = vmatprep.subr.bf16.mxu1 %v5880_v21  ;;  %4727 = vmatprep.subr.bf16.mxu0 %v6592_v28  ;;  %v1302_v25 = vld [vmem:[#allocation2 + $0x8] sm:$0x30] }
 0x2ab   :  { %4705 = vmatpush1.bf16.msra.mxu1 %v5884_v31  ;;  %4729 = vmatpush3.bf16.msra.mxu0 %v5908_v4 }
 0x2ac   :  { %4731 = vmatprep.subr.bf16.mxu1 %v5725_v14  ;;  %4762 = vmatprep.subr.bf16.mxu0 %v6592_v28 }
 0x2af   :  { %v6087_v46 = vld [vmem:[#allocation5] sm:$0x3] }
 0x2b0   :  { %1549 = vmatmul.mubr.f32.vlgmr.msra.gmra.mrb[16].mxu1 %v6087_v46  ;;  %4026 = vmatmul.mubr.f32.vlgmr.msra.gmra.mrb[16].mxu0 %v6087_v46 }
 0x2b1   :  { %4733 = vmatpush1.bf16.msra.mxu1 %v5729_v20  ;;  %4764 = vmatpush3.bf16.msra.mxu0 %v5758_v53 }
 0x2b2   :  { %4735 = vmatprep.subr.bf16.mxu1 %v5732_v24  ;;  %4765 = vmatprep.subr.bf16.mxu0 %v6592_v28 }
 0x2b3   :  { %1731 = vmatprep.mubr.f32.mxu1 %v6593_v30  ;;  %4060 = vmatprep.mubr.msk.f32.mxu0 %vm5617_vm1, %v6593_v30 }
 0x2b5   :  { %4737 = vmatpush1.bf16.msra.mxu1 %v5736_v34  ;;  %4767 = vmatpush3.bf16.msra.mxu0 %v5768_v62 }
 0x2b6   :  { %4739 = vmatprep.subr.bf16.mxu1 %v5739_v36  ;;  %4768 = vmatprep.subr.bf16.mxu0 %v6592_v28 }
 0x2b9   :  { %4741 = vmatpush1.bf16.msra.mxu1 %v5745_v42  ;;  %4770 = vmatpush3.bf16.msra.mxu0 %v5780_v8 }
 0x2ba   :  { %4743 = vmatprep.subr.bf16.mxu1 %v5748_v44  ;;  %4771 = vmatprep.subr.bf16.mxu0 %v6592_v28 }
 0x2bd   :  { %4745 = vmatpush1.bf16.msra.mxu1 %v5755_v51  ;;  %4773 = vmatpush3.bf16.msra.mxu0 %v5790_v18 }
 0x2be   :  { %4747 = vmatprep.subr.bf16.mxu1 %v5761_v54  ;;  %4774 = vmatprep.subr.bf16.mxu0 %v6592_v28 }
 0x2c1   :  { %4749 = vmatpush1.bf16.msra.mxu1 %v5765_v60  ;;  %4776 = vmatpush3.bf16.msra.mxu0 %v6594_v56 }
 0x2c2   :  { %4751 = vmatprep.subr.bf16.mxu1 %v6605_v35  ;;  %4777 = vmatprep.subr.bf16.mxu0 %v6592_v28 }
 0x2c5   :  { %4753 = vmatpush1.bf16.msra.mxu1 %v6606_v16  ;;  %4779 = vmatpush3.bf16.msra.mxu0 %v6607_v41 }
 0x2c6   :  { %4755 = vmatprep.subr.bf16.mxu1 %v6608_v50  ;;  %4780 = vmatprep.subr.bf16.mxu0 %v6592_v28 }
 0x2c9   :  { %4757 = vmatpush1.bf16.msra.mxu1 %v6609_v45  ;;  %4782 = vmatpush3.bf16.msra.mxu0 %v6610_v1 }
 0x2ca   :  { %4759 = vmatprep.subr.bf16.mxu1 %v6611_v26  ;;  %4783 = vmatprep.subr.bf16.mxu0 %v6592_v28 }
 0x2cd   :  { %4761 = vmatpush1.bf16.msra.mxu1 %v6612_v13  ;;  %4785 = vmatpush3.bf16.msra.mxu0 %v6613_v38 }
 0x2ce   :  { %4787 = vmatprep.subr.bf16.mxu1 %v6614_v6  ;;  %4818 = vmatprep.subr.bf16.mxu0 %v6592_v28 }
 0x361   :  { %v1371_v49 = vpop.f32.mrb[14].mxu1  ;;  %v1442_v27 = vpop.f32.mrb[14].mxu0 }
 0x362   :  { %v1447_v5 = vrot.slane %v1371_v49, 4  ;;  %v1373_v19 = vpop.f32.mrb[15].mxu1  ;;  %v3992_v29 = vpop.f32.mrb[15].mxu0  ;;  %v1466_v45 = vadd.f32 %v5955_v10, %v1442_v27 }
 0x363   :  { %v1457_v48 = vrot.slane %v1373_v19, 4  ;;  %v1303_v29 = vld [vmem:[#allocation2 + $0x10] sm:$0x30] }
 0x364   :  { %v1449_v2 = vadd.f32 %v1447_v5, %v1301_v9  ;;  %v1468_v41 = vrot.slane %v1466_v45, 4 }
 0x365   :  { %v1459_v26 = vadd.f32 %v1457_v48, %v1302_v25  ;;  %v1481_v25 = vld [vmem:[#allocation3 + $0x20] sm:$0xc] }
 0x366   :  { %v3500_v11 = vmul.f32 -1.442695, %v1449_v2 }
 0x367   :  { %v3501_v1 = vmul.f32 -1.442695, %v1459_v26 }
 0x368   :  { %5343 = vpow2.f32 %v3500_v11 }
 0x369   :  { %5345 = vpow2.f32 %v3501_v1  ;;  %v1480_v1 = vld [vmem:[#allocation3 + $0x18] sm:$0xc] }
 0x372   :  { %v5344_v13 = vpop.eup %5343 }
 0x373   :  { %v1453_v38 = vadd.f32 1.0, %v5344_v13  ;;  %v5346_v6 = vpop.eup %5345 }
 0x374   :  { %v1463_v50 = vadd.f32 1.0, %v5346_v6 }
 0x375   :  { %5347 = vrcp.f32 %v1453_v38 }
 0x376   :  { %5349 = vrcp.f32 %v1463_v50 }
 0x37f   :  { %v5348_v49 = vpop.eup %5347 }
 0x380   :  { %v1470_v16 = vmul.f32 %v5348_v49, %v1468_v41  ;;  %v5350_v27 = vpop.eup %5349  ;;  %v1476_v41 = vrot.slane %v6046_v63, 4 }
 0x381   :  { %v1473_v45 = vsub.f32 1.0, %v5350_v27 }
 0x382   :  { %v1471_v19 = vadd.f32 %v1470_v16, %v1303_v29  ;;  %v1478_v49 = vmul.f32 %v5350_v27, %v1476_v41  ;;  %v1655_v27 = vrot.slane %v6087_v46, 6 }
 0x383   :  { %v1550_v5 = vpop.f32.mrb[16].mxu1  ;;  %v1621_v9 = vpop.f32.mrb[16].mxu0 }
 0x384   :  { %5351 = vtanh.f32 %v1471_v19  ;;  %v1626_v48 = vrot.slane %v1550_v5, 6  ;;  %v1552_v2 = vpop.f32.mrb[17].mxu1  ;;  %v4027_v26 = vpop.f32.mrb[17].mxu0  ;;  %v1645_v63 = vadd.f32 %v5962_v0, %v1621_v9 }
 0x385   :  { %v1636_v11 = vrot.slane %v1552_v2, 6 }
 0x386   :  { %v1628_v13 = vadd.f32 %v1626_v48, %v1480_v1  ;;  %v1647_v26 = vrot.slane %v1645_v63, 6  ;;  %v6621_v63 = vld [vmem:[#allocation26_spill] sm:$0xff] }
 0x387   :  { %v1638_v35 = vadd.f32 %v1636_v11, %v1481_v25  ;;  %v1482_v11 = vld [vmem:[#allocation3 + $0x28] sm:$0xc] }
 0x388   :  { %v3502_v38 = vmul.f32 -1.442695, %v1628_v13 }
 0x389   :  { %v3503_v50 = vmul.f32 -1.442695, %v1638_v35 }
 0x38a   :  { %5353 = vpow2.f32 %v3502_v38 }
 0x38b   :  { %5355 = vpow2.f32 %v3503_v50 }
 0x38e   :  { %v5352_v6 = vpop.eup %5351 }
 0x38f   :  { %v1474_v16 = vmul.f32 %v5352_v6, %v1473_v45 }
 0x391   :  { %v1479_v29 = vadd.f32 %v1478_v49, %v1474_v16  ;;  %v6615_v16 = vld [vmem:[#allocation22_spill] sm:$0xff]  ;;  %v6616_v49 = vld [vmem:[#allocation23_spill] sm:$0xff] }
 0x393   :  { %1659 = vst [vmem:[#allocation4 - $0x4] sm:$0x30] %v1479_v29  ;;  %1661 = vst [vmem:[#allocation14] sm:$0x30] %v1479_v29  ;;  %v6617_v29 = vld [vmem:[#allocation30_spill] sm:$0xff] }
 0x394   :  { %v5354_v19 = vpop.eup %5353 }
 0x395   :  { %v1632_v5 = vadd.f32 1.0, %v5354_v19  ;;  %v5356_v2 = vpop.eup %5355  ;;  %v6618_v19 = vld [vmem:[#allocation24_spill] sm:$0xff] }
 0x396   :  { %v1642_v35 = vadd.f32 1.0, %v5356_v2  ;;  %v6620_v2 = vld [vmem:[#allocation31_spill] sm:$0xff] }
 0x397   :  { %5357 = vrcp.f32 %v1632_v5  ;;  %v6619_v5 = vld [vmem:[#allocation25_spill] sm:$0xff] }
 0x398   :  { %5359 = vrcp.f32 %v1642_v35  ;;  %v6622_v35 = vld [vmem:[#allocation27_spill] sm:$0xff] }
 0x39a   :  { %v6128_v48 = vld [vmem:[#allocation4] sm:$0x3] }
 0x39b   :  { %1732 = vmatmul.mubr.f32.vlgmr.msra.gmra.mrb[18].mxu1 %v6128_v48  ;;  %4061 = vmatmul.mubr.f32.vlgmr.msra.gmra.mrb[18].mxu0 %v6128_v48 }
 0x39c   :  { %4789 = vmatpush1.bf16.msra.mxu1 %v5809_v39  ;;  %4820 = vmatpush3.bf16.msra.mxu0 %v5844_v22 }
 0x39d   :  { %4791 = vmatprep.subr.bf16.mxu1 %v5815_v43  ;;  %4821 = vmatprep.subr.bf16.mxu0 %v6592_v28 }
 0x39e   :  { %1910 = vmatprep.mubr.f32.mxu1 %v6593_v30  ;;  %4095 = vmatprep.mubr.msk.f32.mxu0 %vm5617_vm1, %v6593_v30 }
 0x3a0   :  { %4793 = vmatpush1.bf16.msra.mxu1 %v5820_v52  ;;  %4823 = vmatpush3.bf16.msra.mxu0 %v5855_v37 }
 0x3a1   :  { %v5358_v9 = vpop.eup %5357  ;;  %4795 = vmatprep.subr.bf16.mxu1 %v5826_v57  ;;  %4824 = vmatprep.subr.bf16.mxu0 %v6592_v28 }
 0x3a2   :  { %v1649_v1 = vmul.f32 %v5358_v9, %v1647_v26  ;;  %v5360_v38 = vpop.eup %5359  ;;  %v6623_v26 = vld [vmem:[#allocation32_spill] sm:$0xff]  ;;  %v6624_v9 = vld [vmem:[#allocation29_spill] sm:$0xff] }
 0x3a3   :  { %v1652_v25 = vsub.f32 1.0, %v5360_v38  ;;  %v1657_v50 = vmul.f32 %v5360_v38, %v1655_v27  ;;  %v1663_v27 = vld [vmem:[#allocation2] sm:$0xc0] }
 0x3a4   :  { %v1650_v13 = vadd.f32 %v1649_v1, %v1482_v11  ;;  %4797 = vmatpush1.bf16.msra.mxu1 %v5831_v3  ;;  %4826 = vmatpush3.bf16.msra.mxu0 %v5867_v59 }
 0x3a5   :  { %4799 = vmatprep.subr.bf16.mxu1 %v5837_v7  ;;  %4827 = vmatprep.subr.bf16.mxu0 %v6592_v28 }
 0x3a6   :  { %5361 = vtanh.f32 %v1650_v13 }
 0x3a8   :  { %4801 = vmatpush1.bf16.msra.mxu1 %v5841_v17  ;;  %4829 = vmatpush3.bf16.msra.mxu0 %v5877_v15 }
 0x3a9   :  { %4803 = vmatprep.subr.bf16.mxu1 %v5847_v23  ;;  %4830 = vmatprep.subr.bf16.mxu0 %v6592_v28 }
 0x3ac   :  { %4805 = vmatpush1.bf16.msra.mxu1 %v5852_v33  ;;  %4832 = vmatpush3.bf16.msra.mxu0 %v5887_v32 }
 0x3ad   :  { %4807 = vmatprep.subr.bf16.mxu1 %v5858_v40  ;;  %4833 = vmatprep.subr.bf16.mxu0 %v6592_v28 }
 0x3b0   :  { %v5362_v45 = vpop.eup %5361  ;;  %4809 = vmatpush1.bf16.msra.mxu1 %v5864_v55  ;;  %4835 = vmatpush3.bf16.msra.mxu0 %v5895_v47 }
 0x3b1   :  { %v1653_v41 = vmul.f32 %v5362_v45, %v1652_v25  ;;  %4811 = vmatprep.subr.bf16.mxu1 %v5870_v61  ;;  %4836 = vmatprep.subr.bf16.mxu0 %v6592_v28 }
 0x3b3   :  { %v1658_v6 = vadd.f32 %v1657_v50, %v1653_v41 }
 0x3b4   :  { %4813 = vmatpush1.bf16.msra.mxu1 %v5874_v12  ;;  %4838 = vmatpush3.bf16.msra.mxu0 %v5901_v58 }
 0x3b5   :  { %1660 = vst [vmem:[#allocation5 - $0x2] sm:$0xc] %v1658_v6  ;;  %1662 = vst [vmem:[#allocation15 + $0x8] sm:$0xc] %v1658_v6  ;;  %4815 = vmatprep.subr.bf16.mxu1 %v5880_v21  ;;  %4839 = vmatprep.subr.bf16.mxu0 %v6592_v28  ;;  %v1664_v6 = vld [vmem:[#allocation2 + $0x8] sm:$0xc0] }
 0x3b8   :  { %4817 = vmatpush1.bf16.msra.mxu1 %v5884_v31  ;;  %4841 = vmatpush3.bf16.msra.mxu0 %v5908_v4 }
 0x3b9   :  { %4843 = vmatprep.subr.bf16.mxu1 %v5725_v14  ;;  %4874 = vmatprep.subr.bf16.mxu0 %v6592_v28 }
 0x3bc   :  { %v6169_v46 = vld [vmem:[#allocation5] sm:$0x3] }
 0x3bd   :  { %1911 = vmatmul.mubr.f32.vlgmr.msra.gmra.mrb[20].mxu1 %v6169_v46  ;;  %4096 = vmatmul.mubr.f32.vlgmr.msra.gmra.mrb[20].mxu0 %v6169_v46 }
 0x3be   :  { %4845 = vmatpush1.bf16.msra.mxu1 %v5729_v20  ;;  %4876 = vmatpush3.bf16.msra.mxu0 %v5758_v53 }
 0x3bf   :  { %4847 = vmatprep.subr.bf16.mxu1 %v5732_v24  ;;  %4877 = vmatprep.subr.bf16.mxu0 %v6592_v28 }
 0x3c0   :  { %2081 = vmatprep.mubr.f32.mxu1 %v6593_v30  ;;  %4130 = vmatprep.mubr.msk.f32.mxu0 %vm5617_vm1, %v6593_v30 }
 0x3c2   :  { %4849 = vmatpush1.bf16.msra.mxu1 %v5736_v34  ;;  %4879 = vmatpush3.bf16.msra.mxu0 %v5768_v62 }
 0x3c3   :  { %4851 = vmatprep.subr.bf16.mxu1 %v5739_v36  ;;  %4880 = vmatprep.subr.bf16.mxu0 %v6592_v28 }
 0x3c6   :  { %4853 = vmatpush1.bf16.msra.mxu1 %v5745_v42  ;;  %4882 = vmatpush3.bf16.msra.mxu0 %v5780_v8 }
 0x3c7   :  { %4855 = vmatprep.subr.bf16.mxu1 %v5748_v44  ;;  %4883 = vmatprep.subr.bf16.mxu0 %v6592_v28 }
 0x3ca   :  { %4857 = vmatpush1.bf16.msra.mxu1 %v5755_v51  ;;  %4885 = vmatpush3.bf16.msra.mxu0 %v5790_v18 }
 0x3cb   :  { %4859 = vmatprep.subr.bf16.mxu1 %v5761_v54  ;;  %4886 = vmatprep.subr.bf16.mxu0 %v6592_v28 }
 0x3ce   :  { %4861 = vmatpush1.bf16.msra.mxu1 %v5765_v60  ;;  %4888 = vmatpush3.bf16.msra.mxu0 %v6594_v56 }
 0x3cf   :  { %4863 = vmatprep.subr.bf16.mxu1 %v6615_v16  ;;  %4889 = vmatprep.subr.bf16.mxu0 %v6592_v28 }
 0x3d2   :  { %4865 = vmatpush1.bf16.msra.mxu1 %v6616_v49  ;;  %4891 = vmatpush3.bf16.msra.mxu0 %v6617_v29 }
 0x3d3   :  { %4867 = vmatprep.subr.bf16.mxu1 %v6618_v19  ;;  %4892 = vmatprep.subr.bf16.mxu0 %v6592_v28 }
 0x3d6   :  { %4869 = vmatpush1.bf16.msra.mxu1 %v6619_v5  ;;  %4894 = vmatpush3.bf16.msra.mxu0 %v6620_v2 }
 0x3d7   :  { %4871 = vmatprep.subr.bf16.mxu1 %v6621_v63  ;;  %4895 = vmatprep.subr.bf16.mxu0 %v6592_v28 }
 0x3da   :  { %4873 = vmatpush1.bf16.msra.mxu1 %v6622_v35  ;;  %4897 = vmatpush3.bf16.msra.mxu0 %v6623_v26 }
 0x3db   :  { %4899 = vmatprep.subr.bf16.mxu1 %v6624_v9  ;;  %4930 = vmatprep.subr.bf16.mxu0 %v6592_v28 }
 0x46e   :  { %v1733_v1 = vpop.f32.mrb[18].mxu1  ;;  %v1804_v11 = vpop.f32.mrb[18].mxu0 }
 0x46f   :  { %v1809_v13 = vrot.slane %v1733_v1, 2  ;;  %v1735_v38 = vpop.f32.mrb[19].mxu1  ;;  %v4062_v25 = vpop.f32.mrb[19].mxu0  ;;  %v1828_v5 = vadd.f32 %v5955_v10, %v1804_v11 }
 0x470   :  { %v1819_v45 = vrot.slane %v1735_v38, 2  ;;  %v1665_v25 = vld [vmem:[#allocation2 + $0x10] sm:$0xc0] }
 0x471   :  { %v1811_v41 = vadd.f32 %v1809_v13, %v1663_v27  ;;  %v1830_v29 = vrot.slane %v1828_v5, 2  ;;  %v1842_v13 = vld [vmem:[#allocation3 + $0x18] sm:$0x3]  ;;  %v1838_v5 = vrot.slane %v6128_v48, 2 }
 0x472   :  { %v1821_v63 = vadd.f32 %v1819_v45, %v1664_v6 }
 0x473   :  { %v3504_v50 = vmul.f32 -1.442695, %v1811_v41 }
 0x474   :  { %v3505_v2 = vmul.f32 -1.442695, %v1821_v63 }
 0x475   :  { %5363 = vpow2.f32 %v3504_v50 }
 0x476   :  { %5365 = vpow2.f32 %v3505_v2 }
 0x47f   :  { %v5364_v35 = vpop.eup %5363 }
 0x480   :  { %v1815_v26 = vadd.f32 1.0, %v5364_v35  ;;  %v5366_v9 = vpop.eup %5365  ;;  %v1843_v35 = vld [vmem:[#allocation3 + $0x20] sm:$0x3] }
 0x481   :  { %v1825_v19 = vadd.f32 1.0, %v5366_v9 }
 0x482   :  { %5367 = vrcp.f32 %v1815_v26 }
 0x483   :  { %5369 = vrcp.f32 %v1825_v19 }
 0x48c   :  { %v5368_v1 = vpop.eup %5367 }
 0x48d   :  { %v1832_v49 = vmul.f32 %v5368_v1, %v1830_v29  ;;  %v5370_v6 = vpop.eup %5369 }
 0x48e   :  { %v1835_v9 = vsub.f32 1.0, %v5370_v6  ;;  %v1840_v11 = vmul.f32 %v5370_v6, %v1838_v5  ;;  %v6626_v5 = vld [vmem:[#allocation30_spill] sm:$0xff] }
 0x48f   :  { %v1833_v38 = vadd.f32 %v1832_v49, %v1665_v25 }
 0x490   :  { %v1912_v27 = vpop.f32.mrb[20].mxu1  ;;  %v1983_v41 = vpop.f32.mrb[20].mxu0 }
 0x491   :  { %5371 = vtanh.f32 %v1833_v38  ;;  %v1987_v45 = vadd.f32 %v1912_v27, %v1842_v13  ;;  %v1914_v63 = vpop.f32.mrb[21].mxu1  ;;  %v4097_v2 = vpop.f32.mrb[21].mxu0  ;;  %v2001_v48 = vadd.f32 %v5962_v0, %v1983_v41 }
 0x492   :  { %v1994_v26 = vadd.f32 %v1914_v63, %v1843_v35  ;;  %v1844_v2 = vld [vmem:[#allocation3 + $0x28] sm:$0x3] }
 0x493   :  { %v3506_v50 = vmul.f32 -1.442695, %v1987_v45 }
 0x494   :  { %v3507_v10 = vmul.f32 -1.442695, %v1994_v26 }
 0x495   :  { %5373 = vpow2.f32 %v3506_v50 }
 0x496   :  { %5375 = vpow2.f32 %v3507_v10 }
 0x49b   :  { %v5372_v29 = vpop.eup %5371 }
 0x49c   :  { %v1836_v19 = vmul.f32 %v5372_v29, %v1835_v9  ;;  %v6625_v9 = vld [vmem:[#allocation23_spill] sm:$0xff]  ;;  %v6627_v29 = vld [vmem:[#allocation24_spill] sm:$0xff] }
 0x49e   :  { %v1841_v49 = vadd.f32 %v1840_v11, %v1836_v19  ;;  %v6628_v19 = vld [vmem:[#allocation25_spill] sm:$0xff]  ;;  %v6629_v11 = vld [vmem:[#allocation31_spill] sm:$0xff] }
 0x49f   :  { %v5374_v1 = vpop.eup %5373 }
 0x4a0   :  { %2011 = vst [vmem:[#allocation14] sm:$0xc0] %v1841_v49  ;;  %2009 = vst [vmem:[#allocation4 - $0x6] sm:$0xc0] %v1841_v49  ;;  %v1991_v25 = vadd.f32 1.0, %v5374_v1  ;;  %v5376_v38 = vpop.eup %5375  ;;  %v6630_v49 = vld [vmem:[#allocation26_spill] sm:$0xff] }
 0x4a1   :  { %v1998_v27 = vadd.f32 1.0, %v5376_v38  ;;  %v6631_v1 = vld [vmem:[#allocation27_spill] sm:$0xff]  ;;  %v6633_v38 = vld [vmem:[#allocation29_spill] sm:$0xff] }
 0x4a2   :  { %5377 = vrcp.f32 %v1991_v25  ;;  %v6632_v25 = vld [vmem:[#allocation32_spill] sm:$0xff] }
 0x4a3   :  { %5379 = vrcp.f32 %v1998_v27  ;;  %v2013_v27 = vld [vmem:[#allocation2 + $0x18] sm:$0x3] }
 0x4a7   :  { %v6210_v13 = vld [vmem:[#allocation4] sm:$0x3] }
 0x4a8   :  { %2082 = vmatmul.mubr.f32.vlgmr.msra.gmra.mrb[22].mxu1 %v6210_v13  ;;  %4131 = vmatmul.mubr.f32.vlgmr.msra.gmra.mrb[22].mxu0 %v6210_v13 }
 0x4a9   :  { %4901 = vmatpush1.bf16.msra.mxu1 %v5809_v39  ;;  %4932 = vmatpush3.bf16.msra.mxu0 %v5844_v22 }
 0x4aa   :  { %4903 = vmatprep.subr.bf16.mxu1 %v5815_v43  ;;  %4933 = vmatprep.subr.bf16.mxu0 %v6592_v28 }
 0x4ab   :  { %2248 = vmatprep.mubr.f32.mxu1 %v6593_v30  ;;  %4165 = vmatprep.mubr.msk.f32.mxu0 %vm5617_vm1, %v6593_v30 }
 0x4ac   :  { %v5378_v45 = vpop.eup %5377 }
 0x4ad   :  { %v2002_v63 = vmul.f32 %v5378_v45, %v2001_v48  ;;  %4905 = vmatpush1.bf16.msra.mxu1 %v5820_v52  ;;  %4935 = vmatpush3.bf16.msra.mxu0 %v5855_v37  ;;  %v5380_v0 = vpop.eup %5379 }
 0x4ae   :  { %4907 = vmatprep.subr.bf16.mxu1 %v5826_v57  ;;  %4936 = vmatprep.subr.bf16.mxu0 %v6592_v28  ;;  %v2005_v41 = vsub.f32 1.0, %v5380_v0  ;;  %v2007_v6 = vmul.f32 %v5380_v0, %v6169_v46 }
 0x4af   :  { %v2003_v50 = vadd.f32 %v2002_v63, %v1844_v2 }
 0x4b1   :  { %5381 = vtanh.f32 %v2003_v50  ;;  %4909 = vmatpush1.bf16.msra.mxu1 %v5831_v3  ;;  %4938 = vmatpush3.bf16.msra.mxu0 %v5867_v59 }
 0x4b2   :  { %4911 = vmatprep.subr.bf16.mxu1 %v5837_v7  ;;  %4939 = vmatprep.subr.bf16.mxu0 %v6592_v28 }
 0x4b5   :  { %4913 = vmatpush1.bf16.msra.mxu1 %v5841_v17  ;;  %4941 = vmatpush3.bf16.msra.mxu0 %v5877_v15 }
 0x4b6   :  { %4915 = vmatprep.subr.bf16.mxu1 %v5847_v23  ;;  %4942 = vmatprep.subr.bf16.mxu0 %v6592_v28 }
 0x4b9   :  { %4917 = vmatpush1.bf16.msra.mxu1 %v5852_v33  ;;  %4944 = vmatpush3.bf16.msra.mxu0 %v5887_v32 }
 0x4ba   :  { %4919 = vmatprep.subr.bf16.mxu1 %v5858_v40  ;;  %4945 = vmatprep.subr.bf16.mxu0 %v6592_v28 }
 0x4bb   :  { %v5382_v35 = vpop.eup %5381 }
 0x4bc   :  { %v2006_v26 = vmul.f32 %v5382_v35, %v2005_v41  ;;  %v2014_v41 = vld [vmem:[#allocation2 + $0x20] sm:$0x3] }
 0x4bd   :  { %4921 = vmatpush1.bf16.msra.mxu1 %v5864_v55  ;;  %4947 = vmatpush3.bf16.msra.mxu0 %v5895_v47 }
 0x4be   :  { %v2008_v10 = vadd.f32 %v2007_v6, %v2006_v26  ;;  %4923 = vmatprep.subr.bf16.mxu1 %v5870_v61  ;;  %4948 = vmatprep.subr.bf16.mxu0 %v6592_v28 }
 0x4c0   :  { %2010 = vst [vmem:[#allocation5] sm:$0x3] %v2008_v10  ;;  %2012 = vst [vmem:[#allocation15 + $0x8] sm:$0x3] %v2008_v10 }
 0x4c1   :  { %4925 = vmatpush1.bf16.msra.mxu1 %v5874_v12  ;;  %4950 = vmatpush3.bf16.msra.mxu0 %v5901_v58 }
 0x4c2   :  { %4927 = vmatprep.subr.bf16.mxu1 %v5880_v21  ;;  %4951 = vmatprep.subr.bf16.mxu0 %v6592_v28 }
 0x4c5   :  { %4929 = vmatpush1.bf16.msra.mxu1 %v5884_v31  ;;  %4953 = vmatpush3.bf16.msra.mxu0 %v5908_v4 }
 0x4c6   :  { %4955 = vmatprep.subr.bf16.mxu1 %v5725_v14  ;;  %4986 = vmatprep.subr.bf16.mxu0 %v6592_v28 }
 0x4c7   :  { %v6251_v46 = vld [vmem:[#allocation5] sm:$0x3] }
 0x4c8   :  { %2249 = vmatmul.mubr.f32.vlgmr.msra.gmra.mrb[24].mxu1 %v6251_v46  ;;  %4166 = vmatmul.mubr.f32.vlgmr.msra.gmra.mrb[24].mxu0 %v6251_v46 }
 0x4c9   :  { %4957 = vmatpush1.bf16.msra.mxu1 %v5729_v20  ;;  %4988 = vmatpush3.bf16.msra.mxu0 %v5758_v53 }
 0x4ca   :  { %4959 = vmatprep.subr.bf16.mxu1 %v5732_v24  ;;  %4989 = vmatprep.subr.bf16.mxu0 %v6592_v28 }
 0x4cb   :  { %2431 = vmatprep.mubr.f32.mxu1 %v6593_v30  ;;  %4200 = vmatprep.mubr.msk.f32.mxu0 %vm5617_vm1, %v6593_v30 }
 0x4cd   :  { %4961 = vmatpush1.bf16.msra.mxu1 %v5736_v34  ;;  %4991 = vmatpush3.bf16.msra.mxu0 %v5768_v62 }
 0x4ce   :  { %4963 = vmatprep.subr.bf16.mxu1 %v5739_v36  ;;  %4992 = vmatprep.subr.bf16.mxu0 %v6592_v28 }
 0x4d1   :  { %4965 = vmatpush1.bf16.msra.mxu1 %v5745_v42  ;;  %4994 = vmatpush3.bf16.msra.mxu0 %v5780_v8 }
 0x4d2   :  { %4967 = vmatprep.subr.bf16.mxu1 %v5748_v44  ;;  %4995 = vmatprep.subr.bf16.mxu0 %v6592_v28 }
 0x4d5   :  { %4969 = vmatpush1.bf16.msra.mxu1 %v5755_v51  ;;  %4997 = vmatpush3.bf16.msra.mxu0 %v5790_v18 }
 0x4d6   :  { %4971 = vmatprep.subr.bf16.mxu1 %v5761_v54  ;;  %4998 = vmatprep.subr.bf16.mxu0 %v6592_v28 }
 0x4d9   :  { %4973 = vmatpush1.bf16.msra.mxu1 %v5765_v60  ;;  %5000 = vmatpush3.bf16.msra.mxu0 %v6594_v56 }
 0x4da   :  { %4975 = vmatprep.subr.bf16.mxu1 %v6615_v16  ;;  %5001 = vmatprep.subr.bf16.mxu0 %v6592_v28 }
 0x4dd   :  { %4977 = vmatpush1.bf16.msra.mxu1 %v6625_v9  ;;  %5003 = vmatpush3.bf16.msra.mxu0 %v6626_v5 }
 0x4de   :  { %4979 = vmatprep.subr.bf16.mxu1 %v6627_v29  ;;  %5004 = vmatprep.subr.bf16.mxu0 %v6592_v28 }
 0x4e1   :  { %4981 = vmatpush1.bf16.msra.mxu1 %v6628_v19  ;;  %5006 = vmatpush3.bf16.msra.mxu0 %v6629_v11  ;;  %v2181_v19 = vld [vmem:[#allocation3 + $0x8] sm:$0xc0] }
 0x4e2   :  { %4983 = vmatprep.subr.bf16.mxu1 %v6630_v49  ;;  %5007 = vmatprep.subr.bf16.mxu0 %v6592_v28 }
 0x4e5   :  { %4985 = vmatpush1.bf16.msra.mxu1 %v6631_v1  ;;  %5009 = vmatpush3.bf16.msra.mxu0 %v6632_v25 }
 0x4e6   :  { %5011 = vmatprep.subr.bf16.mxu1 %v6633_v38  ;;  %5042 = vmatprep.subr.bf16.mxu0 %v6592_v28  ;;  %v6293_v38 = vld [vmem:[%s6548_s5] ss:$0 sm:$0xff] }
 0x4e7   :  { %6634 = vst [vmem:[#allocation28_spill] sm:$0xff] %v6293_v38 }
 0x57b   :  { %v2083_v48 = vpop.f32.mrb[22].mxu1  ;;  %v2154_v45 = vpop.f32.mrb[22].mxu0 }
 0x57c   :  { %v2158_v63 = vadd.f32 %v2083_v48, %v2013_v27  ;;  %v2085_v2 = vpop.f32.mrb[23].mxu1  ;;  %v4132_v50 = vpop.f32.mrb[23].mxu0  ;;  %v2172_v27 = vadd.f32 %v6293_v38, %v2154_v45 }
 0x57d   :  { %v2165_v35 = vadd.f32 %v2085_v2, %v2014_v41 }
 0x57e   :  { %v3508_v0 = vmul.f32 -1.442695, %v2158_v63  ;;  %v2015_v63 = vld [vmem:[#allocation2 + $0x28] sm:$0x3] }
 0x57f   :  { %v3509_v26 = vmul.f32 -1.442695, %v2165_v35 }
 0x580   :  { %5383 = vpow2.f32 %v3508_v0 }
 0x581   :  { %5385 = vpow2.f32 %v3509_v26 }
 0x58a   :  { %v5384_v6 = vpop.eup %5383 }
 0x58b   :  { %v2162_v10 = vadd.f32 1.0, %v5384_v6  ;;  %v5386_v25 = vpop.eup %5385 }
 0x58c   :  { %v2169_v1 = vadd.f32 1.0, %v5386_v25 }
 0x58d   :  { %5387 = vrcp.f32 %v2162_v10  ;;  %v2180_v10 = vld [vmem:[#allocation3] sm:$0xc0] }
 0x58e   :  { %5389 = vrcp.f32 %v2169_v1 }
 0x597   :  { %v5388_v48 = vpop.eup %5387 }
 0x598   :  { %v2173_v50 = vmul.f32 %v5388_v48, %v2172_v27  ;;  %v5390_v5 = vpop.eup %5389 }
 0x599   :  { %v2176_v45 = vsub.f32 1.0, %v5390_v5  ;;  %v2178_v48 = vmul.f32 %v5390_v5, %v6210_v13 }
 0x59a   :  { %v2174_v2 = vadd.f32 %v2173_v50, %v2015_v63 }
 0x59b   :  { %v2250_v0 = vpop.f32.mrb[24].mxu1  ;;  %v2321_v41 = vpop.f32.mrb[24].mxu0 }
 0x59c   :  { %5391 = vtanh.f32 %v2174_v2  ;;  %v2326_v35 = vrot.slane %v2250_v0, 2  ;;  %v2252_v26 = vpop.f32.mrb[25].mxu1  ;;  %v4167_v6 = vpop.f32.mrb[25].mxu0 }
 0x59d   :  { %v2336_v25 = vrot.slane %v2252_v26, 2 }
 0x59e   :  { %v2328_v49 = vadd.f32 %v2326_v35, %v2180_v10  ;;  %v2355_v10 = vrot.slane %v6251_v46, 2 }
 0x59f   :  { %v2338_v29 = vadd.f32 %v2336_v25, %v2181_v19 }
 0x5a0   :  { %v3510_v11 = vmul.f32 -1.442695, %v2328_v49 }
 0x5a1   :  { %v3511_v38 = vmul.f32 -1.442695, %v2338_v29  ;;  %v6304_v29 = vld [vmem:[%s6548_s5 + $0x1] ss:$0 sm:$0xff]  ;;  %s5618_s5 = smov [#allocation14]  }
 0x5a2   :  { %5393 = vpow2.f32 %v3510_v11  ;;  %v2345_v13 = vadd.f32 %v6304_v29, %v2321_v41  ;;  %v2182_v41 = vld [vmem:[#allocation3 + $0x10] sm:$0xc0]  ;;  %s3442_s16 = sshll.u32 %s5618_s5, 4  ;;  %s3443_s16 = int_to_ptr.vmem [resolvable:$true] %s3442_s16 }
 0x5a3   :  { %5395 = vpow2.f32 %v3511_v38  ;;  %s5553_s17 = scalar_lea.vmem %s3443_s16, 256  ;;  %p5558_p5 = scmp.lt.s32.totalorder %s3443_s16, %s3443_s16 }
 0x5a4   :  { %v2347_v19 = vrot.slane %v2345_v13, 2  ;;  %v6640_v13 = vld [vmem:[#allocation27_spill] sm:$0xff]  ;;  %p5554_p4 = scmp.ne.s32.totalorder %s3443_s16, %s5553_s17  ;;  %p5559_p6 = scmp.lt.s32.totalorder %s5553_s17, %s5553_s17 }
 0x5a6   :  { %v5392_v27 = vpop.eup %5391  ;;  %p5560_p7 = por %p5559_p6, %p5558_p5 }
 0x5a7   :  { %v2177_v1 = vmul.f32 %v5392_v27, %v2176_v45 }
 0x5a8   :  { %p5561_p8 = pnand %p5560_p7, %p5554_p4 }
 0x5a9   :  { %v2179_v50 = vadd.f32 %v2178_v48, %v2177_v1  ;;  %v6635_v48 = vld [vmem:[#allocation30_spill] sm:$0xff] }
 0x5ab   :  { %2361 = vst [vmem:[#allocation14 + $0x8] sm:$0x3] %v2179_v50  ;;  %2359 = vst [vmem:[#allocation4] sm:$0x3] %v2179_v50  ;;  %v6636_v50 = vld [vmem:[#allocation24_spill] sm:$0xff] }
 0x5ac   :  { %v5394_v63 = vpop.eup %5393 }
 0x5ad   :  { %v2332_v2 = vadd.f32 1.0, %v5394_v63  ;;  %v5396_v49 = vpop.eup %5395  ;;  %v6637_v63 = vld [vmem:[#allocation25_spill] sm:$0xff] }
 0x5ae   :  { %v2342_v5 = vadd.f32 1.0, %v5396_v49  ;;  %v6639_v49 = vld [vmem:[#allocation26_spill] sm:$0xff] }
 0x5af   :  { %5397 = vrcp.f32 %v2332_v2  ;;  %v6638_v2 = vld [vmem:[#allocation31_spill] sm:$0xff] }
 0x5b0   :  { %5399 = vrcp.f32 %v2342_v5  ;;  %v6641_v5 = vld [vmem:[#allocation32_spill] sm:$0xff] }
 0x5b2   :  { %v6297_v0 = vld [vmem:[#allocation4] sm:$0x3] }
 0x5b3   :  { %2432 = vmatmul.mubr.f32.vlgmr.msra.gmra.mrb[26].mxu1 %v6297_v0  ;;  %4201 = vmatmul.mubr.f32.vlgmr.msra.gmra.mrb[26].mxu0 %v6297_v0 }
 0x5b4   :  { %5013 = vmatpush1.bf16.msra.mxu1 %v5809_v39  ;;  %5044 = vmatpush3.bf16.msra.mxu0 %v5844_v22 }
 0x5b5   :  { %5015 = vmatprep.subr.bf16.mxu1 %v5815_v43  ;;  %5045 = vmatprep.subr.bf16.mxu0 %v6592_v28 }
 0x5b6   :  { %2610 = vmatprep.mubr.f32.mxu1 %v6593_v30  ;;  %4235 = vmatprep.mubr.msk.f32.mxu0 %vm5617_vm1, %v6593_v30 }
 0x5b8   :  { %5017 = vmatpush1.bf16.msra.mxu1 %v5820_v52  ;;  %5047 = vmatpush3.bf16.msra.mxu0 %v5855_v37 }
 0x5b9   :  { %v5398_v11 = vpop.eup %5397  ;;  %5019 = vmatprep.subr.bf16.mxu1 %v5826_v57  ;;  %5048 = vmatprep.subr.bf16.mxu0 %v6592_v28 }
 0x5ba   :  { %v2349_v38 = vmul.f32 %v5398_v11, %v2347_v19  ;;  %v5400_v26 = vpop.eup %5399  ;;  %v6642_v19 = vld [vmem:[#allocation29_spill] sm:$0xff] }
 0x5bb   :  { %v2352_v6 = vsub.f32 1.0, %v5400_v26  ;;  %v2357_v27 = vmul.f32 %v5400_v26, %v2355_v10 }
 0x5bc   :  { %v2350_v35 = vadd.f32 %v2349_v38, %v2182_v41  ;;  %5021 = vmatpush1.bf16.msra.mxu1 %v5831_v3  ;;  %5050 = vmatpush3.bf16.msra.mxu0 %v5867_v59 }
 0x5bd   :  { %5023 = vmatprep.subr.bf16.mxu1 %v5837_v7  ;;  %5051 = vmatprep.subr.bf16.mxu0 %v6592_v28 }
 0x5be   :  { %5401 = vtanh.f32 %v2350_v35 }
 0x5c0   :  { %5025 = vmatpush1.bf16.msra.mxu1 %v5841_v17  ;;  %5053 = vmatpush3.bf16.msra.mxu0 %v5877_v15 }
 0x5c1   :  { %5027 = vmatprep.subr.bf16.mxu1 %v5847_v23  ;;  %5054 = vmatprep.subr.bf16.mxu0 %v6592_v28 }
 0x5c4   :  { %5029 = vmatpush1.bf16.msra.mxu1 %v5852_v33  ;;  %5056 = vmatpush3.bf16.msra.mxu0 %v5887_v32 }
 0x5c5   :  { %5031 = vmatprep.subr.bf16.mxu1 %v5858_v40  ;;  %5057 = vmatprep.subr.bf16.mxu0 %v6592_v28 }
 0x5c8   :  { %v5402_v25 = vpop.eup %5401  ;;  %5033 = vmatpush1.bf16.msra.mxu1 %v5864_v55  ;;  %5059 = vmatpush3.bf16.msra.mxu0 %v5895_v47 }
 0x5c9   :  { %v2353_v45 = vmul.f32 %v5402_v25, %v2352_v6  ;;  %5035 = vmatprep.subr.bf16.mxu1 %v5870_v61  ;;  %5060 = vmatprep.subr.bf16.mxu0 %v6592_v28  ;;  %v2363_v6 = vld [vmem:[#allocation2 + $0x18] sm:$0xc] }
 0x5cb   :  { %v2358_v1 = vadd.f32 %v2357_v27, %v2353_v45  ;;  %v2364_v27 = vld [vmem:[#allocation2 + $0x20] sm:$0xc] }
 0x5cc   :  { %5037 = vmatpush1.bf16.msra.mxu1 %v5874_v12  ;;  %5062 = vmatpush3.bf16.msra.mxu0 %v5901_v58 }
 0x5cd   :  { %2362 = vst [vmem:[#allocation15] sm:$0xc0] %v2358_v1  ;;  %2360 = vst [vmem:[#allocation5 - $0x6] sm:$0xc0] %v2358_v1  ;;  %5039 = vmatprep.subr.bf16.mxu1 %v5880_v21  ;;  %5063 = vmatprep.subr.bf16.mxu0 %v6592_v28 }
 0x5d0   :  { %5041 = vmatpush1.bf16.msra.mxu1 %v5884_v31  ;;  %5065 = vmatpush3.bf16.msra.mxu0 %v5908_v4 }
 0x5d1   :  { %5067 = vmatprep.subr.bf16.mxu1 %v5725_v14  ;;  %5098 = vmatprep.subr.bf16.mxu0 %v6592_v28 }
 0x5d4   :  { %v6343_v46 = vld [vmem:[#allocation5] sm:$0x3] }
 0x5d5   :  { %2611 = vmatmul.mubr.f32.vlgmr.msra.gmra.mrb[28].mxu1 %v6343_v46  ;;  %4236 = vmatmul.mubr.f32.vlgmr.msra.gmra.mrb[28].mxu0 %v6343_v46 }
 0x5d6   :  { %5069 = vmatpush1.bf16.msra.mxu1 %v5729_v20  ;;  %5100 = vmatpush3.bf16.msra.mxu0 %v5758_v53 }
 0x5d7   :  { %5071 = vmatprep.subr.bf16.mxu1 %v5732_v24  ;;  %5101 = vmatprep.subr.bf16.mxu0 %v6592_v28 }
 0x5d8   :  { %2793 = vmatprep.mubr.f32.mxu1 %v6593_v30  ;;  %4270 = vmatprep.mubr.msk.f32.mxu0 %vm5617_vm1, %v6593_v30 }
 0x5da   :  { %5073 = vmatpush1.bf16.msra.mxu1 %v5736_v34  ;;  %5103 = vmatpush3.bf16.msra.mxu0 %v5768_v62 }
 0x5db   :  { %5075 = vmatprep.subr.bf16.mxu1 %v5739_v36  ;;  %5104 = vmatprep.subr.bf16.mxu0 %v6592_v28 }
 0x5de   :  { %5077 = vmatpush1.bf16.msra.mxu1 %v5745_v42  ;;  %5106 = vmatpush3.bf16.msra.mxu0 %v5780_v8 }
 0x5df   :  { %5079 = vmatprep.subr.bf16.mxu1 %v5748_v44  ;;  %5107 = vmatprep.subr.bf16.mxu0 %v6592_v28 }
 0x5e2   :  { %5081 = vmatpush1.bf16.msra.mxu1 %v5755_v51  ;;  %5109 = vmatpush3.bf16.msra.mxu0 %v5790_v18 }
 0x5e3   :  { %5083 = vmatprep.subr.bf16.mxu1 %v5761_v54  ;;  %5110 = vmatprep.subr.bf16.mxu0 %v6592_v28 }
 0x5e6   :  { %5085 = vmatpush1.bf16.msra.mxu1 %v5765_v60  ;;  %5112 = vmatpush3.bf16.msra.mxu0 %v6594_v56 }
 0x5e7   :  { %5087 = vmatprep.subr.bf16.mxu1 %v6615_v16  ;;  %5113 = vmatprep.subr.bf16.mxu0 %v6592_v28 }
 0x5ea   :  { %5089 = vmatpush1.bf16.msra.mxu1 %v6625_v9  ;;  %5115 = vmatpush3.bf16.msra.mxu0 %v6635_v48 }
 0x5eb   :  { %5091 = vmatprep.subr.bf16.mxu1 %v6636_v50  ;;  %5116 = vmatprep.subr.bf16.mxu0 %v6592_v28 }
 0x5ee   :  { %5093 = vmatpush1.bf16.msra.mxu1 %v6637_v63  ;;  %5118 = vmatpush3.bf16.msra.mxu0 %v6638_v2  ;;  %v6643_v2 = vld [vmem:[#allocation28_spill] sm:$0xff] }
 0x5ef   :  { %5095 = vmatprep.subr.bf16.mxu1 %v6639_v49  ;;  %5119 = vmatprep.subr.bf16.mxu0 %v6592_v28 }
 0x5f2   :  { %5097 = vmatpush1.bf16.msra.mxu1 %v6640_v13  ;;  %5121 = vmatpush3.bf16.msra.mxu0 %v6641_v5 }
 0x5f3   :  { %5123 = vmatprep.subr.bf16.mxu1 %v6642_v19  ;;  %5154 = vmatprep.subr.bf16.mxu0 %v6592_v28 }
 0x686   :  { %v2433_v11 = vpop.f32.mrb[26].mxu1  ;;  %v2504_v38 = vpop.f32.mrb[26].mxu0 }
 0x687   :  { %v2509_v41 = vrot.slane %v2433_v11, 6  ;;  %v2435_v35 = vpop.f32.mrb[27].mxu1  ;;  %v4202_v26 = vpop.f32.mrb[27].mxu0  ;;  %v2528_v63 = vadd.f32 %v6643_v2, %v2504_v38 }
 0x688   :  { %v2519_v10 = vrot.slane %v2435_v35, 6  ;;  %v2365_v26 = vld [vmem:[#allocation2 + $0x28] sm:$0xc] }
 0x689   :  { %v2511_v25 = vadd.f32 %v2509_v41, %v2363_v6  ;;  %v2530_v48 = vrot.slane %v2528_v63, 6  ;;  %v2538_v63 = vrot.slane %v6297_v0, 6 }
 0x68a   :  { %v2521_v1 = vadd.f32 %v2519_v10, %v2364_v27 }
 0x68b   :  { %v3512_v45 = vmul.f32 -1.442695, %v2511_v25 }
 0x68c   :  { %v3513_v49 = vmul.f32 -1.442695, %v2521_v1  ;;  %v2543_v1 = vld [vmem:[#allocation3 + $0x8] sm:$0x30] }
 0x68d   :  { %5403 = vpow2.f32 %v3512_v45 }
 0x68e   :  { %5405 = vpow2.f32 %v3513_v49  ;;  %v2542_v49 = vld [vmem:[#allocation3] sm:$0x30] }
 0x697   :  { %v5404_v13 = vpop.eup %5403 }
 0x698   :  { %v2515_v5 = vadd.f32 1.0, %v5404_v13  ;;  %v5406_v19 = vpop.eup %5405 }
 0x699   :  { %v2525_v50 = vadd.f32 1.0, %v5406_v19 }
 0x69a   :  { %5407 = vrcp.f32 %v2515_v5 }
 0x69b   :  { %5409 = vrcp.f32 %v2525_v50 }
 0x6a4   :  { %v5408_v11 = vpop.eup %5407 }
 0x6a5   :  { %v2532_v9 = vmul.f32 %v5408_v11, %v2530_v48  ;;  %v5410_v38 = vpop.eup %5409 }
 0x6a6   :  { %v2535_v48 = vsub.f32 1.0, %v5410_v38  ;;  %v2540_v11 = vmul.f32 %v5410_v38, %v2538_v63 }
 0x6a7   :  { %v2533_v35 = vadd.f32 %v2532_v9, %v2365_v26 }
 0x6a8   :  { %v2612_v41 = vpop.f32.mrb[28].mxu1  ;;  %v2683_v6 = vpop.f32.mrb[28].mxu0 }
 0x6a9   :  { %5411 = vtanh.f32 %v2533_v35  ;;  %v2688_v10 = vrot.slane %v2612_v41, 4  ;;  %v2614_v25 = vpop.f32.mrb[29].mxu1  ;;  %v4237_v45 = vpop.f32.mrb[29].mxu0  ;;  %v2707_v0 = vadd.f32 %v6304_v29, %v2683_v6 }
 0x6aa   :  { %v2698_v27 = vrot.slane %v2614_v25, 4 }
 0x6ab   :  { %v2690_v13 = vadd.f32 %v2688_v10, %v2542_v49  ;;  %v2709_v45 = vrot.slane %v2707_v0, 4 }
 0x6ac   :  { %v2700_v16 = vadd.f32 %v2698_v27, %v2543_v1  ;;  %v2544_v27 = vld [vmem:[#allocation3 + $0x10] sm:$0x30]  ;;  %v2717_v1 = vrot.slane %v6343_v46, 4 }
 0x6ad   :  { %v3514_v5 = vmul.f32 -1.442695, %v2690_v13 }
 0x6ae   :  { %v3515_v50 = vmul.f32 -1.442695, %v2700_v16 }
 0x6af   :  { %5413 = vpow2.f32 %v3514_v5 }
 0x6b0   :  { %5415 = vpow2.f32 %v3515_v50 }
 0x6b3   :  { %v5412_v19 = vpop.eup %5411 }
 0x6b4   :  { %v2536_v9 = vmul.f32 %v5412_v19, %v2535_v48 }
 0x6b6   :  { %v2541_v26 = vadd.f32 %v2540_v11, %v2536_v9  ;;  %v2725_v9 = vld [vmem:[#allocation2 + $0x18] sm:$0x30] }
 0x6b8   :  { %2723 = vst [vmem:[#allocation14 + $0x8] sm:$0xc] %v2541_v26  ;;  %2721 = vst [vmem:[#allocation4 - $0x2] sm:$0xc] %v2541_v26 }
 0x6b9   :  { %v5414_v35 = vpop.eup %5413 }
 0x6ba   :  { %v2694_v41 = vadd.f32 1.0, %v5414_v35  ;;  %v5416_v25 = vpop.eup %5415 }
 0x6bb   :  { %v2704_v16 = vadd.f32 1.0, %v5416_v25 }
 0x6bc   :  { %5417 = vrcp.f32 %v2694_v41  ;;  %v2726_v41 = vld [vmem:[#allocation2 + $0x20] sm:$0x30] }
 0x6bd   :  { %5419 = vrcp.f32 %v2704_v16 }
 0x6bf   :  { %v6384_v10 = vld [vmem:[#allocation4] sm:$0x3] }
 0x6c0   :  { %2794 = vmatmul.mubr.f32.vlgmr.msra.gmra.mrb[30].mxu1 %v6384_v10  ;;  %4271 = vmatmul.mubr.f32.vlgmr.msra.gmra.mrb[30].mxu0 %v6384_v10 }
 0x6c1   :  { %5125 = vmatpush1.bf16.msra.mxu1 %v5809_v39  ;;  %5156 = vmatpush3.bf16.msra.mxu0 %v5844_v22 }
 0x6c2   :  { %5127 = vmatprep.subr.bf16.mxu1 %v5815_v43  ;;  %5157 = vmatprep.subr.bf16.mxu0 %v6592_v28 }
 0x6c3   :  { %2972 = vmatprep.mubr.f32.mxu1 %v6593_v30  ;;  %4305 = vmatprep.mubr.msk.f32.mxu0 %vm5617_vm1, %v6593_v30 }
 0x6c5   :  { %5129 = vmatpush1.bf16.msra.mxu1 %v5820_v52  ;;  %5159 = vmatpush3.bf16.msra.mxu0 %v5855_v37 }
 0x6c6   :  { %v5418_v6 = vpop.eup %5417  ;;  %5131 = vmatprep.subr.bf16.mxu1 %v5826_v57  ;;  %5160 = vmatprep.subr.bf16.mxu0 %v6592_v28 }
 0x6c7   :  { %v2711_v49 = vmul.f32 %v5418_v6, %v2709_v45  ;;  %v5420_v5 = vpop.eup %5419 }
 0x6c8   :  { %v2714_v38 = vsub.f32 1.0, %v5420_v5  ;;  %v2719_v50 = vmul.f32 %v5420_v5, %v2717_v1 }
 0x6c9   :  { %v2712_v13 = vadd.f32 %v2711_v49, %v2544_v27  ;;  %5133 = vmatpush1.bf16.msra.mxu1 %v5831_v3  ;;  %5162 = vmatpush3.bf16.msra.mxu0 %v5867_v59 }
 0x6ca   :  { %5135 = vmatprep.subr.bf16.mxu1 %v5837_v7  ;;  %5163 = vmatprep.subr.bf16.mxu0 %v6592_v28 }
 0x6cb   :  { %5421 = vtanh.f32 %v2712_v13 }
 0x6cd   :  { %5137 = vmatpush1.bf16.msra.mxu1 %v5841_v17  ;;  %5165 = vmatpush3.bf16.msra.mxu0 %v5877_v15 }
 0x6ce   :  { %5139 = vmatprep.subr.bf16.mxu1 %v5847_v23  ;;  %5166 = vmatprep.subr.bf16.mxu0 %v6592_v28 }
 0x6d1   :  { %5141 = vmatpush1.bf16.msra.mxu1 %v5852_v33  ;;  %5168 = vmatpush3.bf16.msra.mxu0 %v5887_v32 }
 0x6d2   :  { %5143 = vmatprep.subr.bf16.mxu1 %v5858_v40  ;;  %5169 = vmatprep.subr.bf16.mxu0 %v6592_v28 }
 0x6d5   :  { %v5422_v63 = vpop.eup %5421  ;;  %5145 = vmatpush1.bf16.msra.mxu1 %v5864_v55  ;;  %5171 = vmatpush3.bf16.msra.mxu0 %v5895_v47 }
 0x6d6   :  { %v2715_v48 = vmul.f32 %v5422_v63, %v2714_v38  ;;  %5147 = vmatprep.subr.bf16.mxu1 %v5870_v61  ;;  %5172 = vmatprep.subr.bf16.mxu0 %v6592_v28  ;;  %v2727_v38 = vld [vmem:[#allocation2 + $0x28] sm:$0x30] }
 0x6d8   :  { %v2720_v19 = vadd.f32 %v2719_v50, %v2715_v48 }
 0x6d9   :  { %5149 = vmatpush1.bf16.msra.mxu1 %v5874_v12  ;;  %5174 = vmatpush3.bf16.msra.mxu0 %v5901_v58 }
 0x6da   :  { %2724 = vst [vmem:[#allocation15] sm:$0x30] %v2720_v19  ;;  %2722 = vst [vmem:[#allocation5 - $0x4] sm:$0x30] %v2720_v19  ;;  %5151 = vmatprep.subr.bf16.mxu1 %v5880_v21  ;;  %5175 = vmatprep.subr.bf16.mxu0 %v6592_v28 }
 0x6dd   :  { %5153 = vmatpush1.bf16.msra.mxu1 %v5884_v31  ;;  %5177 = vmatpush3.bf16.msra.mxu0 %v5908_v4 }
 0x6de   :  { %5179 = vmatprep.subr.bf16.mxu1 %v5725_v14  ;;  %5210 = vmatprep.subr.bf16.mxu0 %v6592_v28  ;;  %v6644_v14 = vld [vmem:[#allocation22_spill] sm:$0xff] }
 0x6e1   :  { %v6425_v46 = vld [vmem:[#allocation5] sm:$0x3] }
 0x6e2   :  { %2973 = vmatmul.mubr.f32.vlgmr.msra.gmra.mrb[32].mxu1 %v6425_v46  ;;  %4306 = vmatmul.mubr.f32.vlgmr.msra.gmra.mrb[32].mxu0 %v6425_v46 }
 0x6e3   :  { %5181 = vmatpush1.bf16.msra.mxu1 %v5729_v20  ;;  %5212 = vmatpush3.bf16.msra.mxu0 %v5758_v53  ;;  %v6645_v20 = vld [vmem:[#allocation23_spill] sm:$0xff]  ;;  %v6652_v53 = vld [vmem:[#allocation32_spill] sm:$0xff] }
 0x6e4   :  { %5183 = vmatprep.subr.bf16.mxu1 %v5732_v24  ;;  %5213 = vmatprep.subr.bf16.mxu0 %v6592_v28  ;;  %v6646_v24 = vld [vmem:[#allocation30_spill] sm:$0xff] }
 0x6e5   :  { %3155 = vmatprep.mubr.f32.mxu1 %v6593_v30  ;;  %4340 = vmatprep.mubr.msk.f32.mxu0 %vm5617_vm1, %v6593_v30 }
 0x6e7   :  { %5185 = vmatpush1.bf16.msra.mxu1 %v5736_v34  ;;  %5215 = vmatpush3.bf16.msra.mxu0 %v5768_v62  ;;  %v6647_v34 = vld [vmem:[#allocation24_spill] sm:$0xff] }
 0x6e8   :  { %5187 = vmatprep.subr.bf16.mxu1 %v5739_v36  ;;  %5216 = vmatprep.subr.bf16.mxu0 %v6592_v28  ;;  %v6648_v36 = vld [vmem:[#allocation25_spill] sm:$0xff] }
 0x6eb   :  { %5189 = vmatpush1.bf16.msra.mxu1 %v5745_v42  ;;  %5218 = vmatpush3.bf16.msra.mxu0 %v5780_v8  ;;  %v6649_v42 = vld [vmem:[#allocation31_spill] sm:$0xff] }
 0x6ec   :  { %5191 = vmatprep.subr.bf16.mxu1 %v5748_v44  ;;  %5219 = vmatprep.subr.bf16.mxu0 %v6592_v28  ;;  %v6650_v44 = vld [vmem:[#allocation26_spill] sm:$0xff] }
 0x6ef   :  { %5193 = vmatpush1.bf16.msra.mxu1 %v5755_v51  ;;  %5221 = vmatpush3.bf16.msra.mxu0 %v5790_v18  ;;  %v6651_v51 = vld [vmem:[#allocation27_spill] sm:$0xff] }
 0x6f0   :  { %5195 = vmatprep.subr.bf16.mxu1 %v5761_v54  ;;  %5222 = vmatprep.subr.bf16.mxu0 %v6592_v28  ;;  %v6653_v54 = vld [vmem:[#allocation29_spill] sm:$0xff] }
 0x6f3   :  { %5197 = vmatpush1.bf16.msra.mxu1 %v5765_v60  ;;  %5224 = vmatpush3.bf16.msra.mxu0 %v6594_v56 }
 0x6f4   :  { %5199 = vmatprep.subr.bf16.mxu1 %v6644_v14  ;;  %5225 = vmatprep.subr.bf16.mxu0 %v6592_v28 }
 0x6f7   :  { %5201 = vmatpush1.bf16.msra.mxu1 %v6645_v20  ;;  %5227 = vmatpush3.bf16.msra.mxu0 %v6646_v24  ;;  %v2904_v24 = vld [vmem:[#allocation3] sm:$0xc] }
 0x6f8   :  { %5203 = vmatprep.subr.bf16.mxu1 %v6647_v34  ;;  %5228 = vmatprep.subr.bf16.mxu0 %v6592_v28 }
 0x6fb   :  { %5205 = vmatpush1.bf16.msra.mxu1 %v6648_v36  ;;  %5230 = vmatpush3.bf16.msra.mxu0 %v6649_v42 }
 0x6fc   :  { %5207 = vmatprep.subr.bf16.mxu1 %v6650_v44  ;;  %5231 = vmatprep.subr.bf16.mxu0 %v6592_v28  ;;  %v2905_v44 = vld [vmem:[#allocation3 + $0x8] sm:$0xc] }
 0x6ff   :  { %5209 = vmatpush1.bf16.msra.mxu1 %v6651_v51  ;;  %5233 = vmatpush3.bf16.msra.mxu0 %v6652_v53 }
 0x700   :  { %5235 = vmatprep.subr.bf16.mxu1 %v6653_v54  ;;  %5266 = vmatprep.subr.bf16.mxu0 %v6592_v28  ;;  %v2900_v54 = vrot.slane %v6384_v10, 4 }
 0x793   :  { %v2795_v60 = vpop.f32.mrb[30].mxu1  ;;  %v2866_v62 = vpop.f32.mrb[30].mxu0 }
 0x794   :  { %v2871_v8 = vrot.slane %v2795_v60, 4  ;;  %v2797_v18 = vpop.f32.mrb[31].mxu1  ;;  %v4272_v56 = vpop.f32.mrb[31].mxu0  ;;  %v2890_v49 = vadd.f32 %v6643_v2, %v2866_v62 }
 0x795   :  { %v2881_v11 = vrot.slane %v2797_v18, 4 }
 0x796   :  { %v2873_v26 = vadd.f32 %v2871_v8, %v2725_v9  ;;  %v2892_v13 = vrot.slane %v2890_v49, 4 }
 0x797   :  { %v2883_v25 = vadd.f32 %v2881_v11, %v2726_v41 }
 0x798   :  { %v3516_v35 = vmul.f32 -1.442695, %v2873_v26 }
 0x799   :  { %v3517_v0 = vmul.f32 -1.442695, %v2883_v25 }
 0x79a   :  { %5423 = vpow2.f32 %v3516_v35 }
 0x79b   :  { %5425 = vpow2.f32 %v3517_v0 }
 0x7a4   :  { %v5424_v16 = vpop.eup %5423 }
 0x7a5   :  { %v2877_v45 = vadd.f32 1.0, %v5424_v16  ;;  %v5426_v6 = vpop.eup %5425 }
 0x7a6   :  { %v2887_v27 = vadd.f32 1.0, %v5426_v6 }
 0x7a7   :  { %5427 = vrcp.f32 %v2877_v45 }
 0x7a8   :  { %5429 = vrcp.f32 %v2887_v27 }
 0x7b1   :  { %v5428_v5 = vpop.eup %5427 }
 0x7b2   :  { %v2894_v1 = vmul.f32 %v5428_v5, %v2892_v13  ;;  %v5430_v53 = vpop.eup %5429  ;;  %v3089_v5 = vld [vmem:[#allocation2 + $0x28] sm:$0xc0] }
 0x7b3   :  { %v2897_v60 = vsub.f32 1.0, %v5430_v53  ;;  %v2902_v56 = vmul.f32 %v5430_v53, %v2900_v54 }
 0x7b4   :  { %v2895_v63 = vadd.f32 %v2894_v1, %v2727_v38  ;;  %v3266_v38 = vld [vmem:[#allocation3] sm:$0x3] }
 0x7b5   :  { %v2974_v48 = vpop.f32.mrb[32].mxu1  ;;  %v3045_v50 = vpop.f32.mrb[32].mxu0 }
 0x7b6   :  { %5431 = vtanh.f32 %v2895_v63  ;;  %v3050_v19 = vrot.slane %v2974_v48, 6  ;;  %v2976_v14 = vpop.f32.mrb[33].mxu1  ;;  %v4307_v20 = vpop.f32.mrb[33].mxu0  ;;  %v3069_v10 = vadd.f32 %v6304_v29, %v3045_v50 }
 0x7b7   :  { %v3060_v34 = vrot.slane %v2976_v14, 6 }
 0x7b8   :  { %v3052_v36 = vadd.f32 %v3050_v19, %v2904_v24  ;;  %v3071_v0 = vrot.slane %v3069_v10, 6  ;;  %v3267_v24 = vld [vmem:[#allocation3 + $0x8] sm:$0x3] }
 0x7b9   :  { %v3062_v51 = vadd.f32 %v3060_v34, %v2905_v44 }
 0x7ba   :  { %v3518_v42 = vmul.f32 -1.442695, %v3052_v36 }
 0x7bb   :  { %v3519_v62 = vmul.f32 -1.442695, %v3062_v51 }
 0x7bc   :  { %5433 = vpow2.f32 %v3518_v42 }
 0x7bd   :  { %5435 = vpow2.f32 %v3519_v62 }
 0x7c0   :  { %v5432_v8 = vpop.eup %5431 }
 0x7c1   :  { %v2898_v18 = vmul.f32 %v5432_v8, %v2897_v60 }
 0x7c3   :  { %v2903_v9 = vadd.f32 %v2902_v56, %v2898_v18 }
 0x7c5   :  { %3085 = vst [vmem:[#allocation14 + $0x8] sm:$0x30] %v2903_v9  ;;  %3083 = vst [vmem:[#allocation4 - $0x4] sm:$0x30] %v2903_v9 }
 0x7c6   :  { %v5434_v11 = vpop.eup %5433 }
 0x7c7   :  { %v3056_v26 = vadd.f32 1.0, %v5434_v11  ;;  %v5436_v41 = vpop.eup %5435 }
 0x7c8   :  { %v3066_v25 = vadd.f32 1.0, %v5436_v41 }
 0x7c9   :  { %5437 = vrcp.f32 %v3056_v26 }
 0x7ca   :  { %5439 = vrcp.f32 %v3066_v25 }
 0x7cc   :  { %v6466_v35 = vld [vmem:[#allocation4] sm:$0x3] }
 0x7cd   :  { %3156 = vmatmul.mubr.f32.vlgmr.msra.gmra.mrb[34].mxu1 %v6466_v35  ;;  %4341 = vmatmul.mubr.f32.vlgmr.msra.gmra.mrb[34].mxu0 %v6466_v35  ;;  %v3262_v42 = vrot.slane %v6466_v35, 2 }
 0x7ce   :  { %5237 = vmatpush1.bf16.msra.mxu1 %v5809_v39  ;;  %5268 = vmatpush3.bf16.msra.mxu0 %v5844_v22 }
 0x7cf   :  { %5239 = vmatprep.subr.bf16.mxu1 %v5815_v43  ;;  %5269 = vmatprep.subr.bf16.mxu0 %v6592_v28  ;;  %v2906_v43 = vld [vmem:[#allocation3 + $0x10] sm:$0xc] }
 0x7d0   :  { %3334 = vmatprep.mubr.f32.mxu1 %v6593_v30  ;;  %4375 = vmatprep.mubr.msk.f32.mxu0 %vm5617_vm1, %v6593_v30 }
 0x7d2   :  { %5241 = vmatpush1.bf16.msra.mxu1 %v5820_v52  ;;  %5271 = vmatpush3.bf16.msra.mxu0 %v5855_v37 }
 0x7d3   :  { %v5438_v16 = vpop.eup %5437  ;;  %5243 = vmatprep.subr.bf16.mxu1 %v5826_v57  ;;  %5272 = vmatprep.subr.bf16.mxu0 %v6592_v28  ;;  %v3079_v57 = vrot.slane %v6425_v46, 6 }
 0x7d4   :  { %v3073_v39 = vmul.f32 %v5438_v16, %v3071_v0  ;;  %v5440_v52 = vpop.eup %5439 }
 0x7d6   :  { %v3074_v22 = vadd.f32 %v3073_v39, %v2906_v43  ;;  %5245 = vmatpush1.bf16.msra.mxu1 %v5831_v3  ;;  %5274 = vmatpush3.bf16.msra.mxu0 %v5867_v59  ;;  %v3076_v3 = vsub.f32 1.0, %v5440_v52 }
 0x7d7   :  { %5247 = vmatprep.subr.bf16.mxu1 %v5837_v7  ;;  %5275 = vmatprep.subr.bf16.mxu0 %v6592_v28 }
 0x7d8   :  { %5441 = vtanh.f32 %v3074_v22 }
 0x7da   :  { %5249 = vmatpush1.bf16.msra.mxu1 %v5841_v17  ;;  %5277 = vmatpush3.bf16.msra.mxu0 %v5877_v15  ;;  %v3087_v15 = vld [vmem:[#allocation2 + $0x18] sm:$0xc0] }
 0x7db   :  { %5251 = vmatprep.subr.bf16.mxu1 %v5847_v23  ;;  %5278 = vmatprep.subr.bf16.mxu0 %v6592_v28  ;;  %v3081_v23 = vmul.f32 %v5440_v52, %v3079_v57 }
 0x7de   :  { %5253 = vmatpush1.bf16.msra.mxu1 %v5852_v33  ;;  %5280 = vmatpush3.bf16.msra.mxu0 %v5887_v32 }
 0x7df   :  { %5255 = vmatprep.subr.bf16.mxu1 %v5858_v40  ;;  %5281 = vmatprep.subr.bf16.mxu0 %v6592_v28 }
 0x7e2   :  { %v5442_v7 = vpop.eup %5441  ;;  %5257 = vmatpush1.bf16.msra.mxu1 %v5864_v55  ;;  %5283 = vmatpush3.bf16.msra.mxu0 %v5895_v47 }
 0x7e3   :  { %v3077_v17 = vmul.f32 %v5442_v7, %v3076_v3  ;;  %5259 = vmatprep.subr.bf16.mxu1 %v5870_v61  ;;  %5284 = vmatprep.subr.bf16.mxu0 %v6592_v28 }
 0x7e5   :  { %v3082_v33 = vadd.f32 %v3081_v23, %v3077_v17 }
 0x7e6   :  { %5261 = vmatpush1.bf16.msra.mxu1 %v5874_v12  ;;  %5286 = vmatpush3.bf16.msra.mxu0 %v5901_v58  ;;  %v3088_v58 = vld [vmem:[#allocation2 + $0x20] sm:$0xc0] }
 0x7e7   :  { %3086 = vst [vmem:[#allocation15] sm:$0xc] %v3082_v33  ;;  %3084 = vst [vmem:[#allocation5 - $0x2] sm:$0xc] %v3082_v33  ;;  %5263 = vmatprep.subr.bf16.mxu1 %v5880_v21  ;;  %5287 = vmatprep.subr.bf16.mxu0 %v6592_v28 }
 0x7ea   :  { %5265 = vmatpush1.bf16.msra.mxu1 %v5884_v31  ;;  %5289 = vmatpush3.bf16.msra.mxu0 %v5908_v4 }
 0x7ee   :  { %v6505_v37 = vld [vmem:[#allocation5] sm:$0x3] }
 0x7ef   :  { %3335 = vmatmul.mubr.f32.vlgmr.msra.gmra.mrb[36].mxu1 %v6505_v37  ;;  %4376 = vmatmul.mubr.f32.vlgmr.msra.gmra.mrb[36].mxu0 %v6505_v37 }
 0x8a0   :  { %v3157_v40 = vpop.f32.mrb[34].mxu1  ;;  %v3228_v55 = vpop.f32.mrb[34].mxu0 }
 0x8a1   :  { %v3233_v59 = vrot.slane %v3157_v40, 2  ;;  %v3159_v61 = vpop.f32.mrb[35].mxu1  ;;  %v4342_v12 = vpop.f32.mrb[35].mxu0  ;;  %v3252_v45 = vadd.f32 %v6643_v2, %v3228_v55 }
 0x8a2   :  { %v3243_v32 = vrot.slane %v3159_v61, 2 }
 0x8a3   :  { %v3235_v21 = vadd.f32 %v3233_v59, %v3087_v15  ;;  %v3254_v49 = vrot.slane %v3252_v45, 2 }
 0x8a4   :  { %v3245_v28 = vadd.f32 %v3243_v32, %v3088_v58 }
 0x8a5   :  { %v3520_v47 = vmul.f32 -1.442695, %v3235_v21 }
 0x8a6   :  { %v3521_v31 = vmul.f32 -1.442695, %v3245_v28 }
 0x8a7   :  { %5443 = vpow2.f32 %v3520_v47 }
 0x8a8   :  { %5445 = vpow2.f32 %v3521_v31 }
 0x8b1   :  { %v5444_v4 = vpop.eup %5443 }
 0x8b2   :  { %v3239_v30 = vadd.f32 1.0, %v5444_v4  ;;  %v5446_v46 = vpop.eup %5445 }
 0x8b3   :  { %v3249_v6 = vadd.f32 1.0, %v5446_v46 }
 0x8b4   :  { %5447 = vrcp.f32 %v3239_v30 }
 0x8b5   :  { %5449 = vrcp.f32 %v3249_v6 }
 0x8be   :  { %v5448_v27 = vpop.eup %5447 }
 0x8bf   :  { %v3256_v13 = vmul.f32 %v5448_v27, %v3254_v49  ;;  %v5450_v36 = vpop.eup %5449 }
 0x8c0   :  { %v3259_v44 = vsub.f32 1.0, %v5450_v36  ;;  %v3264_v54 = vmul.f32 %v5450_v36, %v3262_v42 }
 0x8c1   :  { %v3257_v1 = vadd.f32 %v3256_v13, %v3089_v5 }
 0x8c2   :  { %v3336_v63 = vpop.f32.mrb[36].mxu1  ;;  %v3407_v48 = vpop.f32.mrb[36].mxu0 }
 0x8c3   :  { %5451 = vtanh.f32 %v3257_v1  ;;  %v3411_v50 = vadd.f32 %v3336_v63, %v3266_v38  ;;  %v3338_v19 = vpop.f32.mrb[37].mxu1  ;;  %v4377_v14 = vpop.f32.mrb[37].mxu0 }
 0x8c4   :  { %v3418_v34 = vadd.f32 %v3338_v19, %v3267_v24 }
 0x8c5   :  { %v3522_v20 = vmul.f32 -1.442695, %v3411_v50 }
 0x8c6   :  { %v3523_v2 = vmul.f32 -1.442695, %v3418_v34 }
 0x8c7   :  { %5453 = vpow2.f32 %v3522_v20 }
 0x8c8   :  { %5455 = vpow2.f32 %v3523_v2 }
 0x8cd   :  { %v5452_v51 = vpop.eup %5451 }
 0x8ce   :  { %v3260_v53 = vmul.f32 %v5452_v51, %v3259_v44 }
 0x8d0   :  { %v3265_v60 = vadd.f32 %v3264_v54, %v3260_v53 }
 0x8d1   :  { %v5454_v62 = vpop.eup %5453 }
 0x8d2   :  { %3433 = vst [vmem:[#allocation4 - $0x6] sm:$0xc0] %v3265_v60  ;;  %3435 = vst [vmem:[#allocation14 + $0x8] sm:$0xc0] %v3265_v60  ;;  %v3415_v8 = vadd.f32 1.0, %v5454_v62 }
 0x8d3   :  { %5564 = shalt.err (!%p5561_p8)
}
 0x8d4   :  { %s5565_s20 = scalar_lea.hbm %s6549_s6, 256 }
 0x8d5   :  { %p5566_p9 = scmp.ne.s32.totalorder %s6549_s6, %s5565_s20  ;;  %p5569_p10 = scmp.lt.u32.totalorder %s5565_s20, %s6549_s6 }
 0x8d7   :  { %p5571_p11 = pnand %p5569_p10, %p5566_p9 }
 0x8d9   :  { %5574 = shalt.err (!%p5571_p11)
}
 0x8da   :  { %3448 = dma.vmem_to_hbm [thread:$0]  %s3443_s16, 256, %s6549_s6, [#allocation8], %s5609_s13, %s5609_s13, %s5610_s14   ;;  %5457 = vrcp.f32 %v3415_v8  ;;  %v5456_v18 = vpop.eup %5455  ;;  %v3425_v9 = vadd.f32 %v6304_v29, %v3407_v48  ;;  %v3268_v35 = vld [vmem:[#allocation3 + $0x10] sm:$0x3] }
 0x8db   :  { %v3422_v56 = vadd.f32 1.0, %v5456_v18  ;;  %s5619_s26 = smov [#allocation15]  }
 0x8dc   :  { %s3458_s2 = sshll.u32 %s5619_s26, 4  ;;  %s3459_s2 = int_to_ptr.vmem [resolvable:$true] %s3458_s2 }
 0x8dd   :  { %5459 = vrcp.f32 %v3422_v56  ;;  %s5575_s6 = scalar_lea.vmem %s3459_s2, 256  ;;  %p5580_p13 = scmp.lt.s32.totalorder %s3459_s2, %s3459_s2 }
 0x8de   :  { %p5576_p12 = scmp.ne.s32.totalorder %s3459_s2, %s5575_s6  ;;  %p5581_p0 = scmp.lt.s32.totalorder %s5575_s6, %s5575_s6 }
 0x8e0   :  { %p5582_p1 = por %p5581_p0, %p5580_p13 }
 0x8e2   :  { %p5583_p2 = pnand %p5582_p1, %p5576_p12 }
 0x8e4   :  { %v5458_v11 = vpop.eup %5457 }
 0x8e5   :  { %v3426_v26 = vmul.f32 %v5458_v11, %v3425_v9 }
 0x8e7   :  { %v3427_v41 = vadd.f32 %v3426_v26, %v3268_v35  ;;  %v5460_v10 = vpop.eup %5459 }
 0x8e8   :  { %v3429_v25 = vsub.f32 1.0, %v5460_v10  ;;  %v3431_v39 = vmul.f32 %v5460_v10, %v6505_v37 }
 0x8e9   :  { %5461 = vtanh.f32 %v3427_v41 }
 0x8f3   :  { %v5462_v0 = vpop.eup %5461 }
 0x8f4   :  { %v3430_v16 = vmul.f32 %v5462_v0, %v3429_v25 }
 0x8f6   :  { %v3432_v43 = vadd.f32 %v3431_v39, %v3430_v16 }
 0x8f8   :  { %3434 = vst [vmem:[#allocation5] sm:$0x3] %v3432_v43  ;;  %3436 = vst [vmem:[#allocation15] sm:$0x3] %v3432_v43 }
 0x8f9   :  { %5586 = shalt.err (!%p5583_p2)
}
 0x8fa   :  { %s5587_s29 = scalar_lea.hbm %s6550_s7, 256 }
 0x8fb   :  { %p5588_p3 = scmp.ne.s32.totalorder %s6550_s7, %s5587_s29  ;;  %p5591_p4 = scmp.lt.u32.totalorder %s5587_s29, %s6550_s7 }
 0x8fd   :  { %p5593_p5 = pnand %p5591_p4, %p5588_p3 }
 0x8ff   :  { %5596 = shalt.err (!%p5593_p5)
}
 0x900   :  { %3464 = dma.vmem_to_hbm [thread:$0]  %s3459_s2, 256, %s6550_s7, [#allocation16], %s5609_s13, %s5609_s13, %s5610_s14  }
 0x901   :  { %5603 = dma.done.wait [#allocation8], 256  }
 0x902   :  { %5604 = vsyncadd [#allocation8], 4294967040 }
 0x903   :  { %5605 = dma.done.wait [#allocation16], 256  }
 0x904   :  { %5606 = vsyncadd [#allocation16], 4294967040 }
 0x905   :  { %3471 = vsyncpa [#allocation7], 1 }
 0x906   :  { %3472 = vsyncpa [#allocation10], 1 }
 0x907   :  { %3473 = vsyncpa [#allocation13], 1 }
 0x908   :  { %3474 = vsyncpa [#allocation8], 1 }
 0x909   :  { %3475 = vsyncpa [#allocation16], 1 }

</bundles_post_ra>
